<compile_context>
chip_gen: v7x
topology: tpu7x:2x2x1
jax: 0.10.0
libtpu: 0.0.40
codegen_flags: <defaults>
</compile_context>

<pallas_src>
import jax
import jax.numpy as jnp
from jax.experimental import pallas as pl
from jax.experimental.pallas import tpu as pltpu

_LANE = 128


def _round_up(x, m):
    return ((x + m - 1) // m) * m


# ----------------------------------------------------------------------------
# Weight preparation (done once, outside the kernel).
# ----------------------------------------------------------------------------
def _pad_gate_cols(w, H, Hp):
    """(rows, 4H) -> (rows, 4Hp): each PyTorch gate block (i,f,g,o) is placed at
    the start of its own 128-aligned Hp block; remaining columns are zero so the
    padded recurrence is exact and gate slices are lane-aligned."""
    rows = w.shape[0]
    w4 = w.reshape(rows, 4, H)
    out = jnp.zeros((rows, 4, Hp), w.dtype).at[:, :, :H].set(w4)
    return out.reshape(rows, 4 * Hp)


def prepare_params(params):
    """Pad / fuse / cast weights for the fused kernel. Call once."""
    lstm = params["lstm_layers"]
    L = len(lstm)
    H = lstm[0][1].shape[0]
    Hp = _round_up(H, _LANE)

    wcats, biases = [], []
    for (wx, wh, b) in lstm:
        in_dim = wx.shape[0]
        wh_pad = jnp.zeros((Hp, 4 * Hp), jnp.float32).at[:H, :].set(
            _pad_gate_cols(wh, H, Hp))
        wx_pad = jnp.zeros((Hp, 4 * Hp), jnp.float32).at[:in_dim, :].set(
            _pad_gate_cols(wx, H, Hp))
        # Fused weight: rows [0:Hp] multiply h, rows [Hp:2Hp] multiply x_t.
        wcats.append(jnp.concatenate([wh_pad, wx_pad], axis=0).astype(jnp.bfloat16))
        biases.append(_pad_gate_cols(b, H, Hp).astype(jnp.float32))  # (1, 4Hp)

    w1 = params["w1"]
    lin_hidden = w1.shape[1]
    w1_layers = []
    for l in range(L):
        blk = jnp.zeros((Hp, lin_hidden), jnp.float32).at[:H, :].set(
            w1[l * H:(l + 1) * H, :])
        w1_layers.append(blk.astype(jnp.bfloat16))
    w1_extra = w1[L * H:, :].astype(jnp.bfloat16)

    return {
        "L": L, "H": H, "Hp": Hp,
        "wcats": wcats, "biases": biases,
        "w1_layers": w1_layers, "w1_extra": w1_extra,
        "b1": params["b1"].reshape(1, -1).astype(jnp.float32),
        "w2": params["w2"].astype(jnp.bfloat16),
        "b2": params["b2"].reshape(1, -1).astype(jnp.float32),
    }


# ----------------------------------------------------------------------------
# Fused kernel: L LSTM layers + FC head + softmax, all VMEM resident.
# ----------------------------------------------------------------------------
def _make_fused_kernel(L, T, B, Hp):
    H4 = 4 * Hp

    def kernel(*refs):
        # ---- parse refs (inputs, output, scratch) ----
        x_ref, extra_ref = refs[0], refs[1]
        idx = 2
        wcat_refs = [refs[idx + 2 * l] for l in range(L)]
        b_refs = [refs[idx + 2 * l + 1] for l in range(L)]
        idx += 2 * L
        w1_refs = [refs[idx + l] for l in range(L)]
        idx += L
        w1e_ref, b1_ref, w2_ref, b2_ref = refs[idx:idx + 4]
        idx += 4
        out_ref = refs[idx]
        y_scr, stage = refs[idx + 1], refs[idx + 2]

        hn = []
        for l in range(L):                      # static Python loop over layers
            wcat_ref = wcat_refs[l]
            # Hoist the bias broadcast out of the recurrence.
            bias = jnp.broadcast_to(b_refs[l][...], (B, H4))

            def step(t, carry):
                h, c = carry                    # f32 (B, Hp) — live in vregs
                # Persistent staging tile [h | x_t]; both stores lane-aligned.
                stage[:, :Hp] = h.astype(jnp.bfloat16)
                if l == 0:
                    stage[:, Hp:2 * Hp] = x_ref[t]
                else:
                    stage[:, Hp:2 * Hp] = y_scr[t]
                # One fused bf16 matmul per step, f32 accumulation.
                gates = jnp.dot(stage[...], wcat_ref[...],
                                preferred_element_type=jnp.float32) + bias
                # 128-lane-aligned gate slices (PyTorch order i, f, g, o).
                i_g = jax.nn.sigmoid(gates[:, 0 * Hp:1 * Hp])
                f_g = jax.nn.sigmoid(gates[:, 1 * Hp:2 * Hp])
                g_g = jnp.tanh(gates[:, 2 * Hp:3 * Hp])
                o_g = jax.nn.sigmoid(gates[:, 3 * Hp:4 * Hp])
                c_new = f_g * c + i_g * g_g
                h_new = o_g * jnp.tanh(c_new)
                # y_scr[t] was already consumed above -> safe in-place reuse.
                y_scr[t] = h_new.astype(jnp.bfloat16)
                return h_new, c_new

            init = (jnp.zeros((B, Hp), jnp.float32),
                    jnp.zeros((B, Hp), jnp.float32))
            h_fin, _c_fin = jax.lax.fori_loop(0, T, step, init, unroll=True)
            hn.append(h_fin)
            # Dropout between LSTM layers: identity in eval mode.

        # ---- FC head: concat(hn..., extra) @ w1 expressed as a sum of dots ----
        fc = jnp.dot(extra_ref[...], w1e_ref[...],
                     preferred_element_type=jnp.float32)
        for l in range(L):
            fc = fc + jnp.dot(hn[l].astype(jnp.bfloat16), w1_refs[l][...],
                              preferred_element_type=jnp.float32)
        h1 = jnp.maximum(fc + b1_ref[...], 0.0)          # ReLU; Dropout = identity
        logits = jnp.dot(h1.astype(jnp.bfloat16), w2_ref[...],
                         preferred_element_type=jnp.float32) + b2_ref[...]
        # Softmax(dim=1) with an EXACT f32 normalization.  (The previous
        # approx-reciprocal introduced up to ~0.4% error in the row sums.)
        m = jnp.max(logits, axis=1, keepdims=True)
        e = jnp.exp(logits - m)
        s = jnp.sum(e, axis=1, keepdims=True)
        out_ref[...] = e / s

    return kernel


# ----------------------------------------------------------------------------
# Full SeparatedLSTM forward (one pallas_call).
# ----------------------------------------------------------------------------
def separated_lstm_forward(text_data, extra_data, prepped):
    """text_data: (B, T, input_length) batch_first; extra_data: (B, extra)."""
    L, Hp = prepped["L"], prepped["Hp"]
    B, T, I = text_data.shape
    bins = prepped["w2"].shape[1]

    # Time-major, feature dim zero-padded to Hp lanes, bf16 matmul operand.
    x_tm = jnp.transpose(text_data, (1, 0, 2))
    x_pad = jnp.zeros((T, B, Hp), jnp.bfloat16).at[:, :, :I].set(
        x_tm.astype(jnp.bfloat16))
    extra_bf = extra_data.astype(jnp.bfloat16)

    args = [x_pad, extra_bf]
    for l in range(L):
        args += [prepped["wcats"][l], prepped["biases"][l]]
    args += list(prepped["w1_layers"])
    args += [prepped["w1_extra"], prepped["b1"], prepped["w2"], prepped["b2"]]

    kernel = _make_fused_kernel(L, T, B, Hp)
    probs = pl.pallas_call(
        kernel,
        out_shape=jax.ShapeDtypeStruct((B, bins), jnp.float32),
        # No grid: everything (a few hundred KiB) is VMEM resident, so this
        # fits comfortably even within v7x's 64 MiB VMEM at these shapes.
        scratch_shapes=[
            pltpu.VMEM((T, B, Hp), jnp.bfloat16),   # layer output sequence
            pltpu.VMEM((B, 2 * Hp), jnp.bfloat16),  # [h | x_t] staging tile
        ],
    )(*args)
    loss = 0.0                                         # tag is None
    return probs, loss


# ----------------------------------------------------------------------------
# Pure-JAX reference mirroring the kernel's numerics (bf16 matmul operands,
# f32 accumulation / state) for a tight sanity check.
# ----------------------------------------------------------------------------
def _reference_forward(text_data, extra_data, params):
    def mm(a, b):
        return jax.lax.dot(a.astype(jnp.bfloat16), b.astype(jnp.bfloat16),
                           preferred_element_type=jnp.float32)

    x = jnp.transpose(text_data, (1, 0, 2))
    hns = []
    for (wx, wh, b) in params["lstm_layers"]:
        H = wh.shape[0]
        B = x.shape[1]

        def step(carry, x_t):
            h, c = carry
            g = mm(x_t, wx) + mm(h, wh) + b[0]
            i = jax.nn.sigmoid(g[:, 0 * H:1 * H])
            f = jax.nn.sigmoid(g[:, 1 * H:2 * H])
            gg = jnp.tanh(g[:, 2 * H:3 * H])
            o = jax.nn.sigmoid(g[:, 3 * H:4 * H])
            c = f * c + i * gg
            h = o * jnp.tanh(c)
            return (h, c), h

        (h, _c), ys = jax.lax.scan(
            step, (jnp.zeros((B, H)), jnp.zeros((B, H))), x)
        hns.append(h)
        x = ys
    z = jnp.concatenate(hns + [extra_data], axis=1)
    h1 = jnp.maximum(mm(z, params["w1"]) + params["b1"], 0.0)
    logits = mm(h1, params["w2"]) + params["b2"]
    return jax.nn.softmax(logits, axis=1)


# ----------------------------------------------------------------------------
# Deterministic parameter construction (synthetic, no checkpoint).
# ----------------------------------------------------------------------------
def make_params(key, input_length, hidden_length, layer_number,
                extra_length, linear_hidden_length, bin_number):
    keys = jax.random.split(key, 4 * layer_number + 4)
    scale = 1.0 / jnp.sqrt(hidden_length)
    lstm_layers = []
    k = 0
    for layer in range(layer_number):
        in_dim = input_length if layer == 0 else hidden_length
        wx = scale * jax.random.normal(keys[k], (in_dim, 4 * hidden_length),
                                       jnp.float32); k += 1
        wh = scale * jax.random.normal(keys[k], (hidden_length, 4 * hidden_length),
                                       jnp.float32); k += 1
        b = scale * jax.random.normal(keys[k], (1, 4 * hidden_length),
                                      jnp.float32); k += 1
        lstm_layers.append((wx, wh, b))
    fc_in = hidden_length * layer_number + extra_length
    w1 = scale * jax.random.normal(keys[k], (fc_in, linear_hidden_length),
                                   jnp.float32); k += 1
    b1 = scale * jax.random.normal(keys[k], (linear_hidden_length,),
                                   jnp.float32); k += 1
    w2 = scale * jax.random.normal(keys[k], (linear_hidden_length, bin_number),
                                   jnp.float32); k += 1
    b2 = scale * jax.random.normal(keys[k], (bin_number,), jnp.float32); k += 1
    return {"lstm_layers": lstm_layers, "w1": w1, "b1": b1, "w2": w2, "b2": b2}


if __name__ == "__main__":
    # Small, forward-consistent shapes.
    B, T = 2, 8
    INPUT_LENGTH = 16
    EXTRA_LENGTH = 4
    HIDDEN_LENGTH = 32
    LAYER_NUMBER = 2
    LINEAR_HIDDEN_LENGTH = 32
    BIN_NUMBER = 8            # stands in for config.bin_number

    key = jax.random.PRNGKey(0)
    k_text, k_extra, k_params = jax.random.split(key, 3)
    text_data = jax.random.normal(k_text, (B, T, INPUT_LENGTH), jnp.float32)
    extra_data = jax.random.normal(k_extra, (B, EXTRA_LENGTH), jnp.float32)
    params = make_params(k_params, INPUT_LENGTH, HIDDEN_LENGTH, LAYER_NUMBER,
                         EXTRA_LENGTH, LINEAR_HIDDEN_LENGTH, BIN_NUMBER)
    prepped = prepare_params(params)

    probs, loss = separated_lstm_forward(text_data, extra_data, prepped)
    probs = jax.block_until_ready(probs)

    ref = _reference_forward(text_data, extra_data, params)
    assert probs.shape == (B, BIN_NUMBER)
    assert bool(jnp.all(jnp.isfinite(probs)))
    assert bool(jnp.allclose(jnp.sum(probs, axis=1), 1.0, atol=2e-3))
    assert bool(jnp.allclose(probs, ref, rtol=2e-2, atol=2e-2)), \
        "mismatch vs reference"

    print("KERNEL_OK")
</pallas_src>

<mosaic_0001>
module attributes {stable_mosaic.version = 11 : i64} {
  func.func @kernel(%arg0: memref<8x2x128xbf16, #tpu.memory_space<vmem>>, %arg1: memref<2x4xbf16, #tpu.memory_space<vmem>>, %arg2: memref<256x512xbf16, #tpu.memory_space<vmem>>, %arg3: memref<1x512xf32, #tpu.memory_space<vmem>>, %arg4: memref<256x512xbf16, #tpu.memory_space<vmem>>, %arg5: memref<1x512xf32, #tpu.memory_space<vmem>>, %arg6: memref<128x32xbf16, #tpu.memory_space<vmem>>, %arg7: memref<128x32xbf16, #tpu.memory_space<vmem>>, %arg8: memref<4x32xbf16, #tpu.memory_space<vmem>>, %arg9: memref<1x32xf32, #tpu.memory_space<vmem>>, %arg10: memref<32x8xbf16, #tpu.memory_space<vmem>>, %arg11: memref<1x8xf32, #tpu.memory_space<vmem>>, %arg12: memref<2x8xf32, #tpu.memory_space<vmem>>, %arg13: memref<8x2x128xbf16, #tpu.memory_space<vmem>>, %arg14: memref<2x256xbf16, #tpu.memory_space<vmem>>) attributes {dimension_semantics = [], scalar_prefetch = 0 : i64, scratch_operands = 2 : i64, tpu.core_type = #tpu.core_type<tc>} {
    %c0 = arith.constant 0 : index
    %c0_0 = arith.constant 0 : index
    %0 = vector.load %arg3[%c0, %c0_0] : memref<1x512xf32, #tpu.memory_space<vmem>>, vector<1x512xf32>
    %1 = vector.shape_cast %0 : vector<1x512xf32> to vector<1x512xf32>
    %2 = vector.broadcast %1 : vector<1x512xf32> to vector<2x512xf32>
    %cst = arith.constant 0.000000e+00 : f32
    %3 = vector.broadcast %cst : f32 to vector<2x128xf32>
    %cst_1 = arith.constant 0.000000e+00 : f32
    %4 = vector.broadcast %cst_1 : f32 to vector<2x128xf32>
    %c0_i32 = arith.constant 0 : i32
    %5 = arith.truncf %3 : vector<2x128xf32> to vector<2x128xbf16>
    %c0_2 = arith.constant 0 : index
    %c0_3 = arith.constant 0 : index
    %6 = vector.load %arg14[%c0_2, %c0_3] : memref<2x256xbf16, #tpu.memory_space<vmem>>, vector<2x128xbf16>
    tpu.vector_store %arg14[%c0_2, %c0_3], %5 {strides = array<i32>} : memref<2x256xbf16, #tpu.memory_space<vmem>>, vector<2x128xbf16>,
    %7 = arith.index_cast %c0_i32 : i32 to index
    %c0_4 = arith.constant 0 : index
    %c0_5 = arith.constant 0 : index
    %8 = vector.load %arg0[%7, %c0_4, %c0_5] : memref<8x2x128xbf16, #tpu.memory_space<vmem>>, vector<1x2x128xbf16>
    %9 = vector.shape_cast %8 : vector<1x2x128xbf16> to vector<2x128xbf16>
    %c0_6 = arith.constant 0 : index
    %c128 = arith.constant 128 : index
    %10 = vector.load %arg14[%c0_6, %c128] : memref<2x256xbf16, #tpu.memory_space<vmem>>, vector<2x128xbf16>
    tpu.vector_store %arg14[%c0_6, %c128], %9 {strides = array<i32>} : memref<2x256xbf16, #tpu.memory_space<vmem>>, vector<2x128xbf16>,
    %c0_7 = arith.constant 0 : index
    %c0_8 = arith.constant 0 : index
    %11 = vector.load %arg14[%c0_7, %c0_8] : memref<2x256xbf16, #tpu.memory_space<vmem>>, vector<2x256xbf16>
    %c0_9 = arith.constant 0 : index
    %c0_10 = arith.constant 0 : index
    %12 = vector.load %arg2[%c0_9, %c0_10] : memref<256x512xbf16, #tpu.memory_space<vmem>>, vector<256x512xbf16>
    %cst_11 = arith.constant dense<0.000000e+00> : vector<2x512xf32>
    %13 = tpu.matmul %11, %12, %cst_11 {dimension_numbers = #tpu.dot_dimension_numbers<[1], [0], [0], [1], [0, 0, 1, 1], [], []>} : vector<2x256xbf16>, vector<256x512xbf16>, vector<2x512xf32> -> vector<2x512xf32>
    %14 = arith.addf %13, %2 : vector<2x512xf32>
    %15 = vector.extract_strided_slice %14 {offsets = [0, 0], sizes = [2, 128], strides = [1, 1]} : vector<2x512xf32> to vector<2x128xf32>
    %16 = arith.negf %15 : vector<2x128xf32>
    %17 = math.exp %16 : vector<2x128xf32>
    %cst_12 = arith.constant 1.000000e+00 : f32
    %18 = vector.broadcast %cst_12 : f32 to vector<2x128xf32>
    %19 = arith.addf %18, %17 : vector<2x128xf32>
    %20 = arith.divf %18, %19 : vector<2x128xf32>
    %21 = vector.extract_strided_slice %14 {offsets = [0, 128], sizes = [2, 128], strides = [1, 1]} : vector<2x512xf32> to vector<2x128xf32>
    %22 = arith.negf %21 : vector<2x128xf32>
    %23 = math.exp %22 : vector<2x128xf32>
    %cst_13 = arith.constant 1.000000e+00 : f32
    %24 = vector.broadcast %cst_13 : f32 to vector<2x128xf32>
    %25 = arith.addf %24, %23 : vector<2x128xf32>
    %26 = arith.divf %24, %25 : vector<2x128xf32>
    %27 = vector.extract_strided_slice %14 {offsets = [0, 256], sizes = [2, 128], strides = [1, 1]} : vector<2x512xf32> to vector<2x128xf32>
    %28 = math.tanh %27 : vector<2x128xf32>
    %29 = vector.extract_strided_slice %14 {offsets = [0, 384], sizes = [2, 128], strides = [1, 1]} : vector<2x512xf32> to vector<2x128xf32>
    %30 = arith.negf %29 : vector<2x128xf32>
    %31 = math.exp %30 : vector<2x128xf32>
    %cst_14 = arith.constant 1.000000e+00 : f32
    %32 = vector.broadcast %cst_14 : f32 to vector<2x128xf32>
    %33 = arith.addf %32, %31 : vector<2x128xf32>
    %34 = arith.divf %32, %33 : vector<2x128xf32>
    %35 = arith.mulf %26, %4 : vector<2x128xf32>
    %36 = arith.mulf %20, %28 : vector<2x128xf32>
    %37 = arith.addf %35, %36 : vector<2x128xf32>
    %38 = math.tanh %37 : vector<2x128xf32>
    %39 = arith.mulf %34, %38 : vector<2x128xf32>
    %40 = arith.truncf %39 : vector<2x128xf32> to vector<2x128xbf16>
    %41 = arith.index_cast %c0_i32 : i32 to index
    %c0_15 = arith.constant 0 : index
    %c0_16 = arith.constant 0 : index
    %42 = vector.load %arg13[%41, %c0_15, %c0_16] : memref<8x2x128xbf16, #tpu.memory_space<vmem>>, vector<1x2x128xbf16>
    %43 = vector.shape_cast %42 : vector<1x2x128xbf16> to vector<2x128xbf16>
    %44 = vector.shape_cast %40 : vector<2x128xbf16> to vector<1x2x128xbf16>
    tpu.vector_store %arg13[%41, %c0_15, %c0_16], %44 {strides = array<i32>} : memref<8x2x128xbf16, #tpu.memory_space<vmem>>, vector<1x2x128xbf16>,
    %c1_i32 = arith.constant 1 : i32
    %45 = arith.truncf %39 : vector<2x128xf32> to vector<2x128xbf16>
    %c0_17 = arith.constant 0 : index
    %c0_18 = arith.constant 0 : index
    %46 = vector.load %arg14[%c0_17, %c0_18] : memref<2x256xbf16, #tpu.memory_space<vmem>>, vector<2x128xbf16>
    tpu.vector_store %arg14[%c0_17, %c0_18], %45 {strides = array<i32>} : memref<2x256xbf16, #tpu.memory_space<vmem>>, vector<2x128xbf16>,
    %47 = arith.index_cast %c1_i32 : i32 to index
    %c0_19 = arith.constant 0 : index
    %c0_20 = arith.constant 0 : index
    %48 = vector.load %arg0[%47, %c0_19, %c0_20] : memref<8x2x128xbf16, #tpu.memory_space<vmem>>, vector<1x2x128xbf16>
    %49 = vector.shape_cast %48 : vector<1x2x128xbf16> to vector<2x128xbf16>
    %c0_21 = arith.constant 0 : index
    %c128_22 = arith.constant 128 : index
    %50 = vector.load %arg14[%c0_21, %c128_22] : memref<2x256xbf16, #tpu.memory_space<vmem>>, vector<2x128xbf16>
    tpu.vector_store %arg14[%c0_21, %c128_22], %49 {strides = array<i32>} : memref<2x256xbf16, #tpu.memory_space<vmem>>, vector<2x128xbf16>,
    %c0_23 = arith.constant 0 : index
    %c0_24 = arith.constant 0 : index
    %51 = vector.load %arg14[%c0_23, %c0_24] : memref<2x256xbf16, #tpu.memory_space<vmem>>, vector<2x256xbf16>
    %c0_25 = arith.constant 0 : index
    %c0_26 = arith.constant 0 : index
    %52 = vector.load %arg2[%c0_25, %c0_26] : memref<256x512xbf16, #tpu.memory_space<vmem>>, vector<256x512xbf16>
    %cst_27 = arith.constant dense<0.000000e+00> : vector<2x512xf32>
    %53 = tpu.matmul %51, %52, %cst_27 {dimension_numbers = #tpu.dot_dimension_numbers<[1], [0], [0], [1], [0, 0, 1, 1], [], []>} : vector<2x256xbf16>, vector<256x512xbf16>, vector<2x512xf32> -> vector<2x512xf32>
    %54 = arith.addf %53, %2 : vector<2x512xf32>
    %55 = vector.extract_strided_slice %54 {offsets = [0, 0], sizes = [2, 128], strides = [1, 1]} : vector<2x512xf32> to vector<2x128xf32>
    %56 = arith.negf %55 : vector<2x128xf32>
    %57 = math.exp %56 : vector<2x128xf32>
    %cst_28 = arith.constant 1.000000e+00 : f32
    %58 = vector.broadcast %cst_28 : f32 to vector<2x128xf32>
    %59 = arith.addf %58, %57 : vector<2x128xf32>
    %60 = arith.divf %58, %59 : vector<2x128xf32>
    %61 = vector.extract_strided_slice %54 {offsets = [0, 128], sizes = [2, 128], strides = [1, 1]} : vector<2x512xf32> to vector<2x128xf32>
    %62 = arith.negf %61 : vector<2x128xf32>
    %63 = math.exp %62 : vector<2x128xf32>
    %cst_29 = arith.constant 1.000000e+00 : f32
    %64 = vector.broadcast %cst_29 : f32 to vector<2x128xf32>
    %65 = arith.addf %64, %63 : vector<2x128xf32>
    %66 = arith.divf %64, %65 : vector<2x128xf32>
    %67 = vector.extract_strided_slice %54 {offsets = [0, 256], sizes = [2, 128], strides = [1, 1]} : vector<2x512xf32> to vector<2x128xf32>
    %68 = math.tanh %67 : vector<2x128xf32>
    %69 = vector.extract_strided_slice %54 {offsets = [0, 384], sizes = [2, 128], strides = [1, 1]} : vector<2x512xf32> to vector<2x128xf32>
    %70 = arith.negf %69 : vector<2x128xf32>
    %71 = math.exp %70 : vector<2x128xf32>
    %cst_30 = arith.constant 1.000000e+00 : f32
    %72 = vector.broadcast %cst_30 : f32 to vector<2x128xf32>
    %73 = arith.addf %72, %71 : vector<2x128xf32>
    %74 = arith.divf %72, %73 : vector<2x128xf32>
    %75 = arith.mulf %66, %37 : vector<2x128xf32>
    %76 = arith.mulf %60, %68 : vector<2x128xf32>
    %77 = arith.addf %75, %76 : vector<2x128xf32>
    %78 = math.tanh %77 : vector<2x128xf32>
    %79 = arith.mulf %74, %78 : vector<2x128xf32>
    %80 = arith.truncf %79 : vector<2x128xf32> to vector<2x128xbf16>
    %81 = arith.index_cast %c1_i32 : i32 to index
    %c0_31 = arith.constant 0 : index
    %c0_32 = arith.constant 0 : index
    %82 = vector.load %arg13[%81, %c0_31, %c0_32] : memref<8x2x128xbf16, #tpu.memory_space<vmem>>, vector<1x2x128xbf16>
    %83 = vector.shape_cast %82 : vector<1x2x128xbf16> to vector<2x128xbf16>
    %84 = vector.shape_cast %80 : vector<2x128xbf16> to vector<1x2x128xbf16>
    tpu.vector_store %arg13[%81, %c0_31, %c0_32], %84 {strides = array<i32>} : memref<8x2x128xbf16, #tpu.memory_space<vmem>>, vector<1x2x128xbf16>,
    %c2_i32 = arith.constant 2 : i32
    %85 = arith.truncf %79 : vector<2x128xf32> to vector<2x128xbf16>
    %c0_33 = arith.constant 0 : index
    %c0_34 = arith.constant 0 : index
    %86 = vector.load %arg14[%c0_33, %c0_34] : memref<2x256xbf16, #tpu.memory_space<vmem>>, vector<2x128xbf16>
    tpu.vector_store %arg14[%c0_33, %c0_34], %85 {strides = array<i32>} : memref<2x256xbf16, #tpu.memory_space<vmem>>, vector<2x128xbf16>,
    %87 = arith.index_cast %c2_i32 : i32 to index
    %c0_35 = arith.constant 0 : index
    %c0_36 = arith.constant 0 : index
    %88 = vector.load %arg0[%87, %c0_35, %c0_36] : memref<8x2x128xbf16, #tpu.memory_space<vmem>>, vector<1x2x128xbf16>
    %89 = vector.shape_cast %88 : vector<1x2x128xbf16> to vector<2x128xbf16>
    %c0_37 = arith.constant 0 : index
    %c128_38 = arith.constant 128 : index
    %90 = vector.load %arg14[%c0_37, %c128_38] : memref<2x256xbf16, #tpu.memory_space<vmem>>, vector<2x128xbf16>
    tpu.vector_store %arg14[%c0_37, %c128_38], %89 {strides = array<i32>} : memref<2x256xbf16, #tpu.memory_space<vmem>>, vector<2x128xbf16>,
    %c0_39 = arith.constant 0 : index
    %c0_40 = arith.constant 0 : index
    %91 = vector.load %arg14[%c0_39, %c0_40] : memref<2x256xbf16, #tpu.memory_space<vmem>>, vector<2x256xbf16>
    %c0_41 = arith.constant 0 : index
    %c0_42 = arith.constant 0 : index
    %92 = vector.load %arg2[%c0_41, %c0_42] : memref<256x512xbf16, #tpu.memory_space<vmem>>, vector<256x512xbf16>
    %cst_43 = arith.constant dense<0.000000e+00> : vector<2x512xf32>
    %93 = tpu.matmul %91, %92, %cst_43 {dimension_numbers = #tpu.dot_dimension_numbers<[1], [0], [0], [1], [0, 0, 1, 1], [], []>} : vector<2x256xbf16>, vector<256x512xbf16>, vector<2x512xf32> -> vector<2x512xf32>
    %94 = arith.addf %93, %2 : vector<2x512xf32>
    %95 = vector.extract_strided_slice %94 {offsets = [0, 0], sizes = [2, 128], strides = [1, 1]} : vector<2x512xf32> to vector<2x128xf32>
    %96 = arith.negf %95 : vector<2x128xf32>
    %97 = math.exp %96 : vector<2x128xf32>
    %cst_44 = arith.constant 1.000000e+00 : f32
    %98 = vector.broadcast %cst_44 : f32 to vector<2x128xf32>
    %99 = arith.addf %98, %97 : vector<2x128xf32>
    %100 = arith.divf %98, %99 : vector<2x128xf32>
    %101 = vector.extract_strided_slice %94 {offsets = [0, 128], sizes = [2, 128], strides = [1, 1]} : vector<2x512xf32> to vector<2x128xf32>
    %102 = arith.negf %101 : vector<2x128xf32>
    %103 = math.exp %102 : vector<2x128xf32>
    %cst_45 = arith.constant 1.000000e+00 : f32
    %104 = vector.broadcast %cst_45 : f32 to vector<2x128xf32>
    %105 = arith.addf %104, %103 : vector<2x128xf32>
    %106 = arith.divf %104, %105 : vector<2x128xf32>
    %107 = vector.extract_strided_slice %94 {offsets = [0, 256], sizes = [2, 128], strides = [1, 1]} : vector<2x512xf32> to vector<2x128xf32>
    %108 = math.tanh %107 : vector<2x128xf32>
    %109 = vector.extract_strided_slice %94 {offsets = [0, 384], sizes = [2, 128], strides = [1, 1]} : vector<2x512xf32> to vector<2x128xf32>
    %110 = arith.negf %109 : vector<2x128xf32>
    %111 = math.exp %110 : vector<2x128xf32>
    %cst_46 = arith.constant 1.000000e+00 : f32
    %112 = vector.broadcast %cst_46 : f32 to vector<2x128xf32>
    %113 = arith.addf %112, %111 : vector<2x128xf32>
    %114 = arith.divf %112, %113 : vector<2x128xf32>
    %115 = arith.mulf %106, %77 : vector<2x128xf32>
    %116 = arith.mulf %100, %108 : vector<2x128xf32>
    %117 = arith.addf %115, %116 : vector<2x128xf32>
    %118 = math.tanh %117 : vector<2x128xf32>
    %119 = arith.mulf %114, %118 : vector<2x128xf32>
    %120 = arith.truncf %119 : vector<2x128xf32> to vector<2x128xbf16>
    %121 = arith.index_cast %c2_i32 : i32 to index
    %c0_47 = arith.constant 0 : index
    %c0_48 = arith.constant 0 : index
    %122 = vector.load %arg13[%121, %c0_47, %c0_48] : memref<8x2x128xbf16, #tpu.memory_space<vmem>>, vector<1x2x128xbf16>
    %123 = vector.shape_cast %122 : vector<1x2x128xbf16> to vector<2x128xbf16>
    %124 = vector.shape_cast %120 : vector<2x128xbf16> to vector<1x2x128xbf16>
    tpu.vector_store %arg13[%121, %c0_47, %c0_48], %124 {strides = array<i32>} : memref<8x2x128xbf16, #tpu.memory_space<vmem>>, vector<1x2x128xbf16>,
    %c3_i32 = arith.constant 3 : i32
    %125 = arith.truncf %119 : vector<2x128xf32> to vector<2x128xbf16>
    %c0_49 = arith.constant 0 : index
    %c0_50 = arith.constant 0 : index
    %126 = vector.load %arg14[%c0_49, %c0_50] : memref<2x256xbf16, #tpu.memory_space<vmem>>, vector<2x128xbf16>
    tpu.vector_store %arg14[%c0_49, %c0_50], %125 {strides = array<i32>} : memref<2x256xbf16, #tpu.memory_space<vmem>>, vector<2x128xbf16>,
    %127 = arith.index_cast %c3_i32 : i32 to index
    %c0_51 = arith.constant 0 : index
    %c0_52 = arith.constant 0 : index
    %128 = vector.load %arg0[%127, %c0_51, %c0_52] : memref<8x2x128xbf16, #tpu.memory_space<vmem>>, vector<1x2x128xbf16>
    %129 = vector.shape_cast %128 : vector<1x2x128xbf16> to vector<2x128xbf16>
    %c0_53 = arith.constant 0 : index
    %c128_54 = arith.constant 128 : index
    %130 = vector.load %arg14[%c0_53, %c128_54] : memref<2x256xbf16, #tpu.memory_space<vmem>>, vector<2x128xbf16>
    tpu.vector_store %arg14[%c0_53, %c128_54], %129 {strides = array<i32>} : memref<2x256xbf16, #tpu.memory_space<vmem>>, vector<2x128xbf16>,
    %c0_55 = arith.constant 0 : index
    %c0_56 = arith.constant 0 : index
    %131 = vector.load %arg14[%c0_55, %c0_56] : memref<2x256xbf16, #tpu.memory_space<vmem>>, vector<2x256xbf16>
    %c0_57 = arith.constant 0 : index
    %c0_58 = arith.constant 0 : index
    %132 = vector.load %arg2[%c0_57, %c0_58] : memref<256x512xbf16, #tpu.memory_space<vmem>>, vector<256x512xbf16>
    %cst_59 = arith.constant dense<0.000000e+00> : vector<2x512xf32>
    %133 = tpu.matmul %131, %132, %cst_59 {dimension_numbers = #tpu.dot_dimension_numbers<[1], [0], [0], [1], [0, 0, 1, 1], [], []>} : vector<2x256xbf16>, vector<256x512xbf16>, vector<2x512xf32> -> vector<2x512xf32>
    %134 = arith.addf %133, %2 : vector<2x512xf32>
    %135 = vector.extract_strided_slice %134 {offsets = [0, 0], sizes = [2, 128], strides = [1, 1]} : vector<2x512xf32> to vector<2x128xf32>
    %136 = arith.negf %135 : vector<2x128xf32>
    %137 = math.exp %136 : vector<2x128xf32>
    %cst_60 = arith.constant 1.000000e+00 : f32
    %138 = vector.broadcast %cst_60 : f32 to vector<2x128xf32>
    %139 = arith.addf %138, %137 : vector<2x128xf32>
    %140 = arith.divf %138, %139 : vector<2x128xf32>
    %141 = vector.extract_strided_slice %134 {offsets = [0, 128], sizes = [2, 128], strides = [1, 1]} : vector<2x512xf32> to vector<2x128xf32>
    %142 = arith.negf %141 : vector<2x128xf32>
    %143 = math.exp %142 : vector<2x128xf32>
    %cst_61 = arith.constant 1.000000e+00 : f32
    %144 = vector.broadcast %cst_61 : f32 to vector<2x128xf32>
    %145 = arith.addf %144, %143 : vector<2x128xf32>
    %146 = arith.divf %144, %145 : vector<2x128xf32>
    %147 = vector.extract_strided_slice %134 {offsets = [0, 256], sizes = [2, 128], strides = [1, 1]} : vector<2x512xf32> to vector<2x128xf32>
    %148 = math.tanh %147 : vector<2x128xf32>
    %149 = vector.extract_strided_slice %134 {offsets = [0, 384], sizes = [2, 128], strides = [1, 1]} : vector<2x512xf32> to vector<2x128xf32>
    %150 = arith.negf %149 : vector<2x128xf32>
    %151 = math.exp %150 : vector<2x128xf32>
    %cst_62 = arith.constant 1.000000e+00 : f32
    %152 = vector.broadcast %cst_62 : f32 to vector<2x128xf32>
    %153 = arith.addf %152, %151 : vector<2x128xf32>
    %154 = arith.divf %152, %153 : vector<2x128xf32>
    %155 = arith.mulf %146, %117 : vector<2x128xf32>
    %156 = arith.mulf %140, %148 : vector<2x128xf32>
    %157 = arith.addf %155, %156 : vector<2x128xf32>
    %158 = math.tanh %157 : vector<2x128xf32>
    %159 = arith.mulf %154, %158 : vector<2x128xf32>
    %160 = arith.truncf %159 : vector<2x128xf32> to vector<2x128xbf16>
    %161 = arith.index_cast %c3_i32 : i32 to index
    %c0_63 = arith.constant 0 : index
    %c0_64 = arith.constant 0 : index
    %162 = vector.load %arg13[%161, %c0_63, %c0_64] : memref<8x2x128xbf16, #tpu.memory_space<vmem>>, vector<1x2x128xbf16>
    %163 = vector.shape_cast %162 : vector<1x2x128xbf16> to vector<2x128xbf16>
    %164 = vector.shape_cast %160 : vector<2x128xbf16> to vector<1x2x128xbf16>
    tpu.vector_store %arg13[%161, %c0_63, %c0_64], %164 {strides = array<i32>} : memref<8x2x128xbf16, #tpu.memory_space<vmem>>, vector<1x2x128xbf16>,
    %c4_i32 = arith.constant 4 : i32
    %165 = arith.truncf %159 : vector<2x128xf32> to vector<2x128xbf16>
    %c0_65 = arith.constant 0 : index
    %c0_66 = arith.constant 0 : index
    %166 = vector.load %arg14[%c0_65, %c0_66] : memref<2x256xbf16, #tpu.memory_space<vmem>>, vector<2x128xbf16>
    tpu.vector_store %arg14[%c0_65, %c0_66], %165 {strides = array<i32>} : memref<2x256xbf16, #tpu.memory_space<vmem>>, vector<2x128xbf16>,
    %167 = arith.index_cast %c4_i32 : i32 to index
    %c0_67 = arith.constant 0 : index
    %c0_68 = arith.constant 0 : index
    %168 = vector.load %arg0[%167, %c0_67, %c0_68] : memref<8x2x128xbf16, #tpu.memory_space<vmem>>, vector<1x2x128xbf16>
    %169 = vector.shape_cast %168 : vector<1x2x128xbf16> to vector<2x128xbf16>
    %c0_69 = arith.constant 0 : index
    %c128_70 = arith.constant 128 : index
    %170 = vector.load %arg14[%c0_69, %c128_70] : memref<2x256xbf16, #tpu.memory_space<vmem>>, vector<2x128xbf16>
    tpu.vector_store %arg14[%c0_69, %c128_70], %169 {strides = array<i32>} : memref<2x256xbf16, #tpu.memory_space<vmem>>, vector<2x128xbf16>,
    %c0_71 = arith.constant 0 : index
    %c0_72 = arith.constant 0 : index
    %171 = vector.load %arg14[%c0_71, %c0_72] : memref<2x256xbf16, #tpu.memory_space<vmem>>, vector<2x256xbf16>
    %c0_73 = arith.constant 0 : index
    %c0_74 = arith.constant 0 : index
    %172 = vector.load %arg2[%c0_73, %c0_74] : memref<256x512xbf16, #tpu.memory_space<vmem>>, vector<256x512xbf16>
    %cst_75 = arith.constant dense<0.000000e+00> : vector<2x512xf32>
    %173 = tpu.matmul %171, %172, %cst_75 {dimension_numbers = #tpu.dot_dimension_numbers<[1], [0], [0], [1], [0, 0, 1, 1], [], []>} : vector<2x256xbf16>, vector<256x512xbf16>, vector<2x512xf32> -> vector<2x512xf32>
    %174 = arith.addf %173, %2 : vector<2x512xf32>
    %175 = vector.extract_strided_slice %174 {offsets = [0, 0], sizes = [2, 128], strides = [1, 1]} : vector<2x512xf32> to vector<2x128xf32>
    %176 = arith.negf %175 : vector<2x128xf32>
    %177 = math.exp %176 : vector<2x128xf32>
    %cst_76 = arith.constant 1.000000e+00 : f32
    %178 = vector.broadcast %cst_76 : f32 to vector<2x128xf32>
    %179 = arith.addf %178, %177 : vector<2x128xf32>
    %180 = arith.divf %178, %179 : vector<2x128xf32>
    %181 = vector.extract_strided_slice %174 {offsets = [0, 128], sizes = [2, 128], strides = [1, 1]} : vector<2x512xf32> to vector<2x128xf32>
    %182 = arith.negf %181 : vector<2x128xf32>
    %183 = math.exp %182 : vector<2x128xf32>
    %cst_77 = arith.constant 1.000000e+00 : f32
    %184 = vector.broadcast %cst_77 : f32 to vector<2x128xf32>
    %185 = arith.addf %184, %183 : vector<2x128xf32>
    %186 = arith.divf %184, %185 : vector<2x128xf32>
    %187 = vector.extract_strided_slice %174 {offsets = [0, 256], sizes = [2, 128], strides = [1, 1]} : vector<2x512xf32> to vector<2x128xf32>
    %188 = math.tanh %187 : vector<2x128xf32>
    %189 = vector.extract_strided_slice %174 {offsets = [0, 384], sizes = [2, 128], strides = [1, 1]} : vector<2x512xf32> to vector<2x128xf32>
    %190 = arith.negf %189 : vector<2x128xf32>
    %191 = math.exp %190 : vector<2x128xf32>
    %cst_78 = arith.constant 1.000000e+00 : f32
    %192 = vector.broadcast %cst_78 : f32 to vector<2x128xf32>
    %193 = arith.addf %192, %191 : vector<2x128xf32>
    %194 = arith.divf %192, %193 : vector<2x128xf32>
    %195 = arith.mulf %186, %157 : vector<2x128xf32>
    %196 = arith.mulf %180, %188 : vector<2x128xf32>
    %197 = arith.addf %195, %196 : vector<2x128xf32>
    %198 = math.tanh %197 : vector<2x128xf32>
    %199 = arith.mulf %194, %198 : vector<2x128xf32>
    %200 = arith.truncf %199 : vector<2x128xf32> to vector<2x128xbf16>
    %201 = arith.index_cast %c4_i32 : i32 to index
    %c0_79 = arith.constant 0 : index
    %c0_80 = arith.constant 0 : index
    %202 = vector.load %arg13[%201, %c0_79, %c0_80] : memref<8x2x128xbf16, #tpu.memory_space<vmem>>, vector<1x2x128xbf16>
    %203 = vector.shape_cast %202 : vector<1x2x128xbf16> to vector<2x128xbf16>
    %204 = vector.shape_cast %200 : vector<2x128xbf16> to vector<1x2x128xbf16>
    tpu.vector_store %arg13[%201, %c0_79, %c0_80], %204 {strides = array<i32>} : memref<8x2x128xbf16, #tpu.memory_space<vmem>>, vector<1x2x128xbf16>,
    %c5_i32 = arith.constant 5 : i32
    %205 = arith.truncf %199 : vector<2x128xf32> to vector<2x128xbf16>
    %c0_81 = arith.constant 0 : index
    %c0_82 = arith.constant 0 : index
    %206 = vector.load %arg14[%c0_81, %c0_82] : memref<2x256xbf16, #tpu.memory_space<vmem>>, vector<2x128xbf16>
    tpu.vector_store %arg14[%c0_81, %c0_82], %205 {strides = array<i32>} : memref<2x256xbf16, #tpu.memory_space<vmem>>, vector<2x128xbf16>,
    %207 = arith.index_cast %c5_i32 : i32 to index
    %c0_83 = arith.constant 0 : index
    %c0_84 = arith.constant 0 : index
    %208 = vector.load %arg0[%207, %c0_83, %c0_84] : memref<8x2x128xbf16, #tpu.memory_space<vmem>>, vector<1x2x128xbf16>
    %209 = vector.shape_cast %208 : vector<1x2x128xbf16> to vector<2x128xbf16>
    %c0_85 = arith.constant 0 : index
    %c128_86 = arith.constant 128 : index
    %210 = vector.load %arg14[%c0_85, %c128_86] : memref<2x256xbf16, #tpu.memory_space<vmem>>, vector<2x128xbf16>
    tpu.vector_store %arg14[%c0_85, %c128_86], %209 {strides = array<i32>} : memref<2x256xbf16, #tpu.memory_space<vmem>>, vector<2x128xbf16>,
    %c0_87 = arith.constant 0 : index
    %c0_88 = arith.constant 0 : index
    %211 = vector.load %arg14[%c0_87, %c0_88] : memref<2x256xbf16, #tpu.memory_space<vmem>>, vector<2x256xbf16>
    %c0_89 = arith.constant 0 : index
    %c0_90 = arith.constant 0 : index
    %212 = vector.load %arg2[%c0_89, %c0_90] : memref<256x512xbf16, #tpu.memory_space<vmem>>, vector<256x512xbf16>
    %cst_91 = arith.constant dense<0.000000e+00> : vector<2x512xf32>
    %213 = tpu.matmul %211, %212, %cst_91 {dimension_numbers = #tpu.dot_dimension_numbers<[1], [0], [0], [1], [0, 0, 1, 1], [], []>} : vector<2x256xbf16>, vector<256x512xbf16>, vector<2x512xf32> -> vector<2x512xf32>
    %214 = arith.addf %213, %2 : vector<2x512xf32>
    %215 = vector.extract_strided_slice %214 {offsets = [0, 0], sizes = [2, 128], strides = [1, 1]} : vector<2x512xf32> to vector<2x128xf32>
    %216 = arith.negf %215 : vector<2x128xf32>
    %217 = math.exp %216 : vector<2x128xf32>
    %cst_92 = arith.constant 1.000000e+00 : f32
    %218 = vector.broadcast %cst_92 : f32 to vector<2x128xf32>
    %219 = arith.addf %218, %217 : vector<2x128xf32>
    %220 = arith.divf %218, %219 : vector<2x128xf32>
    %221 = vector.extract_strided_slice %214 {offsets = [0, 128], sizes = [2, 128], strides = [1, 1]} : vector<2x512xf32> to vector<2x128xf32>
    %222 = arith.negf %221 : vector<2x128xf32>
    %223 = math.exp %222 : vector<2x128xf32>
    %cst_93 = arith.constant 1.000000e+00 : f32
    %224 = vector.broadcast %cst_93 : f32 to vector<2x128xf32>
    %225 = arith.addf %224, %223 : vector<2x128xf32>
    %226 = arith.divf %224, %225 : vector<2x128xf32>
    %227 = vector.extract_strided_slice %214 {offsets = [0, 256], sizes = [2, 128], strides = [1, 1]} : vector<2x512xf32> to vector<2x128xf32>
    %228 = math.tanh %227 : vector<2x128xf32>
    %229 = vector.extract_strided_slice %214 {offsets = [0, 384], sizes = [2, 128], strides = [1, 1]} : vector<2x512xf32> to vector<2x128xf32>
    %230 = arith.negf %229 : vector<2x128xf32>
    %231 = math.exp %230 : vector<2x128xf32>
    %cst_94 = arith.constant 1.000000e+00 : f32
    %232 = vector.broadcast %cst_94 : f32 to vector<2x128xf32>
    %233 = arith.addf %232, %231 : vector<2x128xf32>
    %234 = arith.divf %232, %233 : vector<2x128xf32>
    %235 = arith.mulf %226, %197 : vector<2x128xf32>
    %236 = arith.mulf %220, %228 : vector<2x128xf32>
    %237 = arith.addf %235, %236 : vector<2x128xf32>
    %238 = math.tanh %237 : vector<2x128xf32>
    %239 = arith.mulf %234, %238 : vector<2x128xf32>
    %240 = arith.truncf %239 : vector<2x128xf32> to vector<2x128xbf16>
    %241 = arith.index_cast %c5_i32 : i32 to index
    %c0_95 = arith.constant 0 : index
    %c0_96 = arith.constant 0 : index
    %242 = vector.load %arg13[%241, %c0_95, %c0_96] : memref<8x2x128xbf16, #tpu.memory_space<vmem>>, vector<1x2x128xbf16>
    %243 = vector.shape_cast %242 : vector<1x2x128xbf16> to vector<2x128xbf16>
    %244 = vector.shape_cast %240 : vector<2x128xbf16> to vector<1x2x128xbf16>
    tpu.vector_store %arg13[%241, %c0_95, %c0_96], %244 {strides = array<i32>} : memref<8x2x128xbf16, #tpu.memory_space<vmem>>, vector<1x2x128xbf16>,
    %c6_i32 = arith.constant 6 : i32
    %245 = arith.truncf %239 : vector<2x128xf32> to vector<2x128xbf16>
    %c0_97 = arith.constant 0 : index
    %c0_98 = arith.constant 0 : index
    %246 = vector.load %arg14[%c0_97, %c0_98] : memref<2x256xbf16, #tpu.memory_space<vmem>>, vector<2x128xbf16>
    tpu.vector_store %arg14[%c0_97, %c0_98], %245 {strides = array<i32>} : memref<2x256xbf16, #tpu.memory_space<vmem>>, vector<2x128xbf16>,
    %247 = arith.index_cast %c6_i32 : i32 to index
    %c0_99 = arith.constant 0 : index
    %c0_100 = arith.constant 0 : index
    %248 = vector.load %arg0[%247, %c0_99, %c0_100] : memref<8x2x128xbf16, #tpu.memory_space<vmem>>, vector<1x2x128xbf16>
    %249 = vector.shape_cast %248 : vector<1x2x128xbf16> to vector<2x128xbf16>
    %c0_101 = arith.constant 0 : index
    %c128_102 = arith.constant 128 : index
    %250 = vector.load %arg14[%c0_101, %c128_102] : memref<2x256xbf16, #tpu.memory_space<vmem>>, vector<2x128xbf16>
    tpu.vector_store %arg14[%c0_101, %c128_102], %249 {strides = array<i32>} : memref<2x256xbf16, #tpu.memory_space<vmem>>, vector<2x128xbf16>,
    %c0_103 = arith.constant 0 : index
    %c0_104 = arith.constant 0 : index
    %251 = vector.load %arg14[%c0_103, %c0_104] : memref<2x256xbf16, #tpu.memory_space<vmem>>, vector<2x256xbf16>
    %c0_105 = arith.constant 0 : index
    %c0_106 = arith.constant 0 : index
    %252 = vector.load %arg2[%c0_105, %c0_106] : memref<256x512xbf16, #tpu.memory_space<vmem>>, vector<256x512xbf16>
    %cst_107 = arith.constant dense<0.000000e+00> : vector<2x512xf32>
    %253 = tpu.matmul %251, %252, %cst_107 {dimension_numbers = #tpu.dot_dimension_numbers<[1], [0], [0], [1], [0, 0, 1, 1], [], []>} : vector<2x256xbf16>, vector<256x512xbf16>, vector<2x512xf32> -> vector<2x512xf32>
    %254 = arith.addf %253, %2 : vector<2x512xf32>
    %255 = vector.extract_strided_slice %254 {offsets = [0, 0], sizes = [2, 128], strides = [1, 1]} : vector<2x512xf32> to vector<2x128xf32>
    %256 = arith.negf %255 : vector<2x128xf32>
    %257 = math.exp %256 : vector<2x128xf32>
    %cst_108 = arith.constant 1.000000e+00 : f32
    %258 = vector.broadcast %cst_108 : f32 to vector<2x128xf32>
    %259 = arith.addf %258, %257 : vector<2x128xf32>
    %260 = arith.divf %258, %259 : vector<2x128xf32>
    %261 = vector.extract_strided_slice %254 {offsets = [0, 128], sizes = [2, 128], strides = [1, 1]} : vector<2x512xf32> to vector<2x128xf32>
    %262 = arith.negf %261 : vector<2x128xf32>
    %263 = math.exp %262 : vector<2x128xf32>
    %cst_109 = arith.constant 1.000000e+00 : f32
    %264 = vector.broadcast %cst_109 : f32 to vector<2x128xf32>
    %265 = arith.addf %264, %263 : vector<2x128xf32>
    %266 = arith.divf %264, %265 : vector<2x128xf32>
    %267 = vector.extract_strided_slice %254 {offsets = [0, 256], sizes = [2, 128], strides = [1, 1]} : vector<2x512xf32> to vector<2x128xf32>
    %268 = math.tanh %267 : vector<2x128xf32>
    %269 = vector.extract_strided_slice %254 {offsets = [0, 384], sizes = [2, 128], strides = [1, 1]} : vector<2x512xf32> to vector<2x128xf32>
    %270 = arith.negf %269 : vector<2x128xf32>
    %271 = math.exp %270 : vector<2x128xf32>
    %cst_110 = arith.constant 1.000000e+00 : f32
    %272 = vector.broadcast %cst_110 : f32 to vector<2x128xf32>
    %273 = arith.addf %272, %271 : vector<2x128xf32>
    %274 = arith.divf %272, %273 : vector<2x128xf32>
    %275 = arith.mulf %266, %237 : vector<2x128xf32>
    %276 = arith.mulf %260, %268 : vector<2x128xf32>
    %277 = arith.addf %275, %276 : vector<2x128xf32>
    %278 = math.tanh %277 : vector<2x128xf32>
    %279 = arith.mulf %274, %278 : vector<2x128xf32>
    %280 = arith.truncf %279 : vector<2x128xf32> to vector<2x128xbf16>
    %281 = arith.index_cast %c6_i32 : i32 to index
    %c0_111 = arith.constant 0 : index
    %c0_112 = arith.constant 0 : index
    %282 = vector.load %arg13[%281, %c0_111, %c0_112] : memref<8x2x128xbf16, #tpu.memory_space<vmem>>, vector<1x2x128xbf16>
    %283 = vector.shape_cast %282 : vector<1x2x128xbf16> to vector<2x128xbf16>
    %284 = vector.shape_cast %280 : vector<2x128xbf16> to vector<1x2x128xbf16>
    tpu.vector_store %arg13[%281, %c0_111, %c0_112], %284 {strides = array<i32>} : memref<8x2x128xbf16, #tpu.memory_space<vmem>>, vector<1x2x128xbf16>,
    %c7_i32 = arith.constant 7 : i32
    %285 = arith.truncf %279 : vector<2x128xf32> to vector<2x128xbf16>
    %c0_113 = arith.constant 0 : index
    %c0_114 = arith.constant 0 : index
    %286 = vector.load %arg14[%c0_113, %c0_114] : memref<2x256xbf16, #tpu.memory_space<vmem>>, vector<2x128xbf16>
    tpu.vector_store %arg14[%c0_113, %c0_114], %285 {strides = array<i32>} : memref<2x256xbf16, #tpu.memory_space<vmem>>, vector<2x128xbf16>,
    %287 = arith.index_cast %c7_i32 : i32 to index
    %c0_115 = arith.constant 0 : index
    %c0_116 = arith.constant 0 : index
    %288 = vector.load %arg0[%287, %c0_115, %c0_116] : memref<8x2x128xbf16, #tpu.memory_space<vmem>>, vector<1x2x128xbf16>
    %289 = vector.shape_cast %288 : vector<1x2x128xbf16> to vector<2x128xbf16>
    %c0_117 = arith.constant 0 : index
    %c128_118 = arith.constant 128 : index
    %290 = vector.load %arg14[%c0_117, %c128_118] : memref<2x256xbf16, #tpu.memory_space<vmem>>, vector<2x128xbf16>
    tpu.vector_store %arg14[%c0_117, %c128_118], %289 {strides = array<i32>} : memref<2x256xbf16, #tpu.memory_space<vmem>>, vector<2x128xbf16>,
    %c0_119 = arith.constant 0 : index
    %c0_120 = arith.constant 0 : index
    %291 = vector.load %arg14[%c0_119, %c0_120] : memref<2x256xbf16, #tpu.memory_space<vmem>>, vector<2x256xbf16>
    %c0_121 = arith.constant 0 : index
    %c0_122 = arith.constant 0 : index
    %292 = vector.load %arg2[%c0_121, %c0_122] : memref<256x512xbf16, #tpu.memory_space<vmem>>, vector<256x512xbf16>
    %cst_123 = arith.constant dense<0.000000e+00> : vector<2x512xf32>
    %293 = tpu.matmul %291, %292, %cst_123 {dimension_numbers = #tpu.dot_dimension_numbers<[1], [0], [0], [1], [0, 0, 1, 1], [], []>} : vector<2x256xbf16>, vector<256x512xbf16>, vector<2x512xf32> -> vector<2x512xf32>
    %294 = arith.addf %293, %2 : vector<2x512xf32>
    %295 = vector.extract_strided_slice %294 {offsets = [0, 0], sizes = [2, 128], strides = [1, 1]} : vector<2x512xf32> to vector<2x128xf32>
    %296 = arith.negf %295 : vector<2x128xf32>
    %297 = math.exp %296 : vector<2x128xf32>
    %cst_124 = arith.constant 1.000000e+00 : f32
    %298 = vector.broadcast %cst_124 : f32 to vector<2x128xf32>
    %299 = arith.addf %298, %297 : vector<2x128xf32>
    %300 = arith.divf %298, %299 : vector<2x128xf32>
    %301 = vector.extract_strided_slice %294 {offsets = [0, 128], sizes = [2, 128], strides = [1, 1]} : vector<2x512xf32> to vector<2x128xf32>
    %302 = arith.negf %301 : vector<2x128xf32>
    %303 = math.exp %302 : vector<2x128xf32>
    %cst_125 = arith.constant 1.000000e+00 : f32
    %304 = vector.broadcast %cst_125 : f32 to vector<2x128xf32>
    %305 = arith.addf %304, %303 : vector<2x128xf32>
    %306 = arith.divf %304, %305 : vector<2x128xf32>
    %307 = vector.extract_strided_slice %294 {offsets = [0, 256], sizes = [2, 128], strides = [1, 1]} : vector<2x512xf32> to vector<2x128xf32>
    %308 = math.tanh %307 : vector<2x128xf32>
    %309 = vector.extract_strided_slice %294 {offsets = [0, 384], sizes = [2, 128], strides = [1, 1]} : vector<2x512xf32> to vector<2x128xf32>
    %310 = arith.negf %309 : vector<2x128xf32>
    %311 = math.exp %310 : vector<2x128xf32>
    %cst_126 = arith.constant 1.000000e+00 : f32
    %312 = vector.broadcast %cst_126 : f32 to vector<2x128xf32>
    %313 = arith.addf %312, %311 : vector<2x128xf32>
    %314 = arith.divf %312, %313 : vector<2x128xf32>
    %315 = arith.mulf %306, %277 : vector<2x128xf32>
    %316 = arith.mulf %300, %308 : vector<2x128xf32>
    %317 = arith.addf %315, %316 : vector<2x128xf32>
    %318 = math.tanh %317 : vector<2x128xf32>
    %319 = arith.mulf %314, %318 : vector<2x128xf32>
    %320 = arith.truncf %319 : vector<2x128xf32> to vector<2x128xbf16>
    %321 = arith.index_cast %c7_i32 : i32 to index
    %c0_127 = arith.constant 0 : index
    %c0_128 = arith.constant 0 : index
    %322 = vector.load %arg13[%321, %c0_127, %c0_128] : memref<8x2x128xbf16, #tpu.memory_space<vmem>>, vector<1x2x128xbf16>
    %323 = vector.shape_cast %322 : vector<1x2x128xbf16> to vector<2x128xbf16>
    %324 = vector.shape_cast %320 : vector<2x128xbf16> to vector<1x2x128xbf16>
    tpu.vector_store %arg13[%321, %c0_127, %c0_128], %324 {strides = array<i32>} : memref<8x2x128xbf16, #tpu.memory_space<vmem>>, vector<1x2x128xbf16>,
    %c8_i32 = arith.constant 8 : i32
    %c0_129 = arith.constant 0 : index
    %c0_130 = arith.constant 0 : index
    %325 = vector.load %arg5[%c0_129, %c0_130] : memref<1x512xf32, #tpu.memory_space<vmem>>, vector<1x512xf32>
    %326 = vector.shape_cast %325 : vector<1x512xf32> to vector<1x512xf32>
    %327 = vector.broadcast %326 : vector<1x512xf32> to vector<2x512xf32>
    %cst_131 = arith.constant 0.000000e+00 : f32
    %328 = vector.broadcast %cst_131 : f32 to vector<2x128xf32>
    %cst_132 = arith.constant 0.000000e+00 : f32
    %329 = vector.broadcast %cst_132 : f32 to vector<2x128xf32>
    %c0_i32_133 = arith.constant 0 : i32
    %330 = arith.truncf %328 : vector<2x128xf32> to vector<2x128xbf16>
    %c0_134 = arith.constant 0 : index
    %c0_135 = arith.constant 0 : index
    %331 = vector.load %arg14[%c0_134, %c0_135] : memref<2x256xbf16, #tpu.memory_space<vmem>>, vector<2x128xbf16>
    tpu.vector_store %arg14[%c0_134, %c0_135], %330 {strides = array<i32>} : memref<2x256xbf16, #tpu.memory_space<vmem>>, vector<2x128xbf16>,
    %332 = arith.index_cast %c0_i32_133 : i32 to index
    %c0_136 = arith.constant 0 : index
    %c0_137 = arith.constant 0 : index
    %333 = vector.load %arg13[%332, %c0_136, %c0_137] : memref<8x2x128xbf16, #tpu.memory_space<vmem>>, vector<1x2x128xbf16>
    %334 = vector.shape_cast %333 : vector<1x2x128xbf16> to vector<2x128xbf16>
    %c0_138 = arith.constant 0 : index
    %c128_139 = arith.constant 128 : index
    %335 = vector.load %arg14[%c0_138, %c128_139] : memref<2x256xbf16, #tpu.memory_space<vmem>>, vector<2x128xbf16>
    tpu.vector_store %arg14[%c0_138, %c128_139], %334 {strides = array<i32>} : memref<2x256xbf16, #tpu.memory_space<vmem>>, vector<2x128xbf16>,
    %c0_140 = arith.constant 0 : index
    %c0_141 = arith.constant 0 : index
    %336 = vector.load %arg14[%c0_140, %c0_141] : memref<2x256xbf16, #tpu.memory_space<vmem>>, vector<2x256xbf16>
    %c0_142 = arith.constant 0 : index
    %c0_143 = arith.constant 0 : index
    %337 = vector.load %arg4[%c0_142, %c0_143] : memref<256x512xbf16, #tpu.memory_space<vmem>>, vector<256x512xbf16>
    %cst_144 = arith.constant dense<0.000000e+00> : vector<2x512xf32>
    %338 = tpu.matmul %336, %337, %cst_144 {dimension_numbers = #tpu.dot_dimension_numbers<[1], [0], [0], [1], [0, 0, 1, 1], [], []>} : vector<2x256xbf16>, vector<256x512xbf16>, vector<2x512xf32> -> vector<2x512xf32>
    %339 = arith.addf %338, %327 : vector<2x512xf32>
    %340 = vector.extract_strided_slice %339 {offsets = [0, 0], sizes = [2, 128], strides = [1, 1]} : vector<2x512xf32> to vector<2x128xf32>
    %341 = arith.negf %340 : vector<2x128xf32>
    %342 = math.exp %341 : vector<2x128xf32>
    %cst_145 = arith.constant 1.000000e+00 : f32
    %343 = vector.broadcast %cst_145 : f32 to vector<2x128xf32>
    %344 = arith.addf %343, %342 : vector<2x128xf32>
    %345 = arith.divf %343, %344 : vector<2x128xf32>
    %346 = vector.extract_strided_slice %339 {offsets = [0, 128], sizes = [2, 128], strides = [1, 1]} : vector<2x512xf32> to vector<2x128xf32>
    %347 = arith.negf %346 : vector<2x128xf32>
    %348 = math.exp %347 : vector<2x128xf32>
    %cst_146 = arith.constant 1.000000e+00 : f32
    %349 = vector.broadcast %cst_146 : f32 to vector<2x128xf32>
    %350 = arith.addf %349, %348 : vector<2x128xf32>
    %351 = arith.divf %349, %350 : vector<2x128xf32>
    %352 = vector.extract_strided_slice %339 {offsets = [0, 256], sizes = [2, 128], strides = [1, 1]} : vector<2x512xf32> to vector<2x128xf32>
    %353 = math.tanh %352 : vector<2x128xf32>
    %354 = vector.extract_strided_slice %339 {offsets = [0, 384], sizes = [2, 128], strides = [1, 1]} : vector<2x512xf32> to vector<2x128xf32>
    %355 = arith.negf %354 : vector<2x128xf32>
    %356 = math.exp %355 : vector<2x128xf32>
    %cst_147 = arith.constant 1.000000e+00 : f32
    %357 = vector.broadcast %cst_147 : f32 to vector<2x128xf32>
    %358 = arith.addf %357, %356 : vector<2x128xf32>
    %359 = arith.divf %357, %358 : vector<2x128xf32>
    %360 = arith.mulf %351, %329 : vector<2x128xf32>
    %361 = arith.mulf %345, %353 : vector<2x128xf32>
    %362 = arith.addf %360, %361 : vector<2x128xf32>
    %363 = math.tanh %362 : vector<2x128xf32>
    %364 = arith.mulf %359, %363 : vector<2x128xf32>
    %365 = arith.truncf %364 : vector<2x128xf32> to vector<2x128xbf16>
    %366 = arith.index_cast %c0_i32_133 : i32 to index
    %c0_148 = arith.constant 0 : index
    %c0_149 = arith.constant 0 : index
    %367 = vector.load %arg13[%366, %c0_148, %c0_149] : memref<8x2x128xbf16, #tpu.memory_space<vmem>>, vector<1x2x128xbf16>
    %368 = vector.shape_cast %367 : vector<1x2x128xbf16> to vector<2x128xbf16>
    %369 = vector.shape_cast %365 : vector<2x128xbf16> to vector<1x2x128xbf16>
    tpu.vector_store %arg13[%366, %c0_148, %c0_149], %369 {strides = array<i32>} : memref<8x2x128xbf16, #tpu.memory_space<vmem>>, vector<1x2x128xbf16>,
    %c1_i32_150 = arith.constant 1 : i32
    %370 = arith.truncf %364 : vector<2x128xf32> to vector<2x128xbf16>
    %c0_151 = arith.constant 0 : index
    %c0_152 = arith.constant 0 : index
    %371 = vector.load %arg14[%c0_151, %c0_152] : memref<2x256xbf16, #tpu.memory_space<vmem>>, vector<2x128xbf16>
    tpu.vector_store %arg14[%c0_151, %c0_152], %370 {strides = array<i32>} : memref<2x256xbf16, #tpu.memory_space<vmem>>, vector<2x128xbf16>,
    %372 = arith.index_cast %c1_i32_150 : i32 to index
    %c0_153 = arith.constant 0 : index
    %c0_154 = arith.constant 0 : index
    %373 = vector.load %arg13[%372, %c0_153, %c0_154] : memref<8x2x128xbf16, #tpu.memory_space<vmem>>, vector<1x2x128xbf16>
    %374 = vector.shape_cast %373 : vector<1x2x128xbf16> to vector<2x128xbf16>
    %c0_155 = arith.constant 0 : index
    %c128_156 = arith.constant 128 : index
    %375 = vector.load %arg14[%c0_155, %c128_156] : memref<2x256xbf16, #tpu.memory_space<vmem>>, vector<2x128xbf16>
    tpu.vector_store %arg14[%c0_155, %c128_156], %374 {strides = array<i32>} : memref<2x256xbf16, #tpu.memory_space<vmem>>, vector<2x128xbf16>,
    %c0_157 = arith.constant 0 : index
    %c0_158 = arith.constant 0 : index
    %376 = vector.load %arg14[%c0_157, %c0_158] : memref<2x256xbf16, #tpu.memory_space<vmem>>, vector<2x256xbf16>
    %c0_159 = arith.constant 0 : index
    %c0_160 = arith.constant 0 : index
    %377 = vector.load %arg4[%c0_159, %c0_160] : memref<256x512xbf16, #tpu.memory_space<vmem>>, vector<256x512xbf16>
    %cst_161 = arith.constant dense<0.000000e+00> : vector<2x512xf32>
    %378 = tpu.matmul %376, %377, %cst_161 {dimension_numbers = #tpu.dot_dimension_numbers<[1], [0], [0], [1], [0, 0, 1, 1], [], []>} : vector<2x256xbf16>, vector<256x512xbf16>, vector<2x512xf32> -> vector<2x512xf32>
    %379 = arith.addf %378, %327 : vector<2x512xf32>
    %380 = vector.extract_strided_slice %379 {offsets = [0, 0], sizes = [2, 128], strides = [1, 1]} : vector<2x512xf32> to vector<2x128xf32>
    %381 = arith.negf %380 : vector<2x128xf32>
    %382 = math.exp %381 : vector<2x128xf32>
    %cst_162 = arith.constant 1.000000e+00 : f32
    %383 = vector.broadcast %cst_162 : f32 to vector<2x128xf32>
    %384 = arith.addf %383, %382 : vector<2x128xf32>
    %385 = arith.divf %383, %384 : vector<2x128xf32>
    %386 = vector.extract_strided_slice %379 {offsets = [0, 128], sizes = [2, 128], strides = [1, 1]} : vector<2x512xf32> to vector<2x128xf32>
    %387 = arith.negf %386 : vector<2x128xf32>
    %388 = math.exp %387 : vector<2x128xf32>
    %cst_163 = arith.constant 1.000000e+00 : f32
    %389 = vector.broadcast %cst_163 : f32 to vector<2x128xf32>
    %390 = arith.addf %389, %388 : vector<2x128xf32>
    %391 = arith.divf %389, %390 : vector<2x128xf32>
    %392 = vector.extract_strided_slice %379 {offsets = [0, 256], sizes = [2, 128], strides = [1, 1]} : vector<2x512xf32> to vector<2x128xf32>
    %393 = math.tanh %392 : vector<2x128xf32>
    %394 = vector.extract_strided_slice %379 {offsets = [0, 384], sizes = [2, 128], strides = [1, 1]} : vector<2x512xf32> to vector<2x128xf32>
    %395 = arith.negf %394 : vector<2x128xf32>
    %396 = math.exp %395 : vector<2x128xf32>
    %cst_164 = arith.constant 1.000000e+00 : f32
    %397 = vector.broadcast %cst_164 : f32 to vector<2x128xf32>
    %398 = arith.addf %397, %396 : vector<2x128xf32>
    %399 = arith.divf %397, %398 : vector<2x128xf32>
    %400 = arith.mulf %391, %362 : vector<2x128xf32>
    %401 = arith.mulf %385, %393 : vector<2x128xf32>
    %402 = arith.addf %400, %401 : vector<2x128xf32>
    %403 = math.tanh %402 : vector<2x128xf32>
    %404 = arith.mulf %399, %403 : vector<2x128xf32>
    %405 = arith.truncf %404 : vector<2x128xf32> to vector<2x128xbf16>
    %406 = arith.index_cast %c1_i32_150 : i32 to index
    %c0_165 = arith.constant 0 : index
    %c0_166 = arith.constant 0 : index
    %407 = vector.load %arg13[%406, %c0_165, %c0_166] : memref<8x2x128xbf16, #tpu.memory_space<vmem>>, vector<1x2x128xbf16>
    %408 = vector.shape_cast %407 : vector<1x2x128xbf16> to vector<2x128xbf16>
    %409 = vector.shape_cast %405 : vector<2x128xbf16> to vector<1x2x128xbf16>
    tpu.vector_store %arg13[%406, %c0_165, %c0_166], %409 {strides = array<i32>} : memref<8x2x128xbf16, #tpu.memory_space<vmem>>, vector<1x2x128xbf16>,
    %c2_i32_167 = arith.constant 2 : i32
    %410 = arith.truncf %404 : vector<2x128xf32> to vector<2x128xbf16>
    %c0_168 = arith.constant 0 : index
    %c0_169 = arith.constant 0 : index
    %411 = vector.load %arg14[%c0_168, %c0_169] : memref<2x256xbf16, #tpu.memory_space<vmem>>, vector<2x128xbf16>
    tpu.vector_store %arg14[%c0_168, %c0_169], %410 {strides = array<i32>} : memref<2x256xbf16, #tpu.memory_space<vmem>>, vector<2x128xbf16>,
    %412 = arith.index_cast %c2_i32_167 : i32 to index
    %c0_170 = arith.constant 0 : index
    %c0_171 = arith.constant 0 : index
    %413 = vector.load %arg13[%412, %c0_170, %c0_171] : memref<8x2x128xbf16, #tpu.memory_space<vmem>>, vector<1x2x128xbf16>
    %414 = vector.shape_cast %413 : vector<1x2x128xbf16> to vector<2x128xbf16>
    %c0_172 = arith.constant 0 : index
    %c128_173 = arith.constant 128 : index
    %415 = vector.load %arg14[%c0_172, %c128_173] : memref<2x256xbf16, #tpu.memory_space<vmem>>, vector<2x128xbf16>
    tpu.vector_store %arg14[%c0_172, %c128_173], %414 {strides = array<i32>} : memref<2x256xbf16, #tpu.memory_space<vmem>>, vector<2x128xbf16>,
    %c0_174 = arith.constant 0 : index
    %c0_175 = arith.constant 0 : index
    %416 = vector.load %arg14[%c0_174, %c0_175] : memref<2x256xbf16, #tpu.memory_space<vmem>>, vector<2x256xbf16>
    %c0_176 = arith.constant 0 : index
    %c0_177 = arith.constant 0 : index
    %417 = vector.load %arg4[%c0_176, %c0_177] : memref<256x512xbf16, #tpu.memory_space<vmem>>, vector<256x512xbf16>
    %cst_178 = arith.constant dense<0.000000e+00> : vector<2x512xf32>
    %418 = tpu.matmul %416, %417, %cst_178 {dimension_numbers = #tpu.dot_dimension_numbers<[1], [0], [0], [1], [0, 0, 1, 1], [], []>} : vector<2x256xbf16>, vector<256x512xbf16>, vector<2x512xf32> -> vector<2x512xf32>
    %419 = arith.addf %418, %327 : vector<2x512xf32>
    %420 = vector.extract_strided_slice %419 {offsets = [0, 0], sizes = [2, 128], strides = [1, 1]} : vector<2x512xf32> to vector<2x128xf32>
    %421 = arith.negf %420 : vector<2x128xf32>
    %422 = math.exp %421 : vector<2x128xf32>
    %cst_179 = arith.constant 1.000000e+00 : f32
    %423 = vector.broadcast %cst_179 : f32 to vector<2x128xf32>
    %424 = arith.addf %423, %422 : vector<2x128xf32>
    %425 = arith.divf %423, %424 : vector<2x128xf32>
    %426 = vector.extract_strided_slice %419 {offsets = [0, 128], sizes = [2, 128], strides = [1, 1]} : vector<2x512xf32> to vector<2x128xf32>
    %427 = arith.negf %426 : vector<2x128xf32>
    %428 = math.exp %427 : vector<2x128xf32>
    %cst_180 = arith.constant 1.000000e+00 : f32
    %429 = vector.broadcast %cst_180 : f32 to vector<2x128xf32>
    %430 = arith.addf %429, %428 : vector<2x128xf32>
    %431 = arith.divf %429, %430 : vector<2x128xf32>
    %432 = vector.extract_strided_slice %419 {offsets = [0, 256], sizes = [2, 128], strides = [1, 1]} : vector<2x512xf32> to vector<2x128xf32>
    %433 = math.tanh %432 : vector<2x128xf32>
    %434 = vector.extract_strided_slice %419 {offsets = [0, 384], sizes = [2, 128], strides = [1, 1]} : vector<2x512xf32> to vector<2x128xf32>
    %435 = arith.negf %434 : vector<2x128xf32>
    %436 = math.exp %435 : vector<2x128xf32>
    %cst_181 = arith.constant 1.000000e+00 : f32
    %437 = vector.broadcast %cst_181 : f32 to vector<2x128xf32>
    %438 = arith.addf %437, %436 : vector<2x128xf32>
    %439 = arith.divf %437, %438 : vector<2x128xf32>
    %440 = arith.mulf %431, %402 : vector<2x128xf32>
    %441 = arith.mulf %425, %433 : vector<2x128xf32>
    %442 = arith.addf %440, %441 : vector<2x128xf32>
    %443 = math.tanh %442 : vector<2x128xf32>
    %444 = arith.mulf %439, %443 : vector<2x128xf32>
    %445 = arith.truncf %444 : vector<2x128xf32> to vector<2x128xbf16>
    %446 = arith.index_cast %c2_i32_167 : i32 to index
    %c0_182 = arith.constant 0 : index
    %c0_183 = arith.constant 0 : index
    %447 = vector.load %arg13[%446, %c0_182, %c0_183] : memref<8x2x128xbf16, #tpu.memory_space<vmem>>, vector<1x2x128xbf16>
    %448 = vector.shape_cast %447 : vector<1x2x128xbf16> to vector<2x128xbf16>
    %449 = vector.shape_cast %445 : vector<2x128xbf16> to vector<1x2x128xbf16>
    tpu.vector_store %arg13[%446, %c0_182, %c0_183], %449 {strides = array<i32>} : memref<8x2x128xbf16, #tpu.memory_space<vmem>>, vector<1x2x128xbf16>,
    %c3_i32_184 = arith.constant 3 : i32
    %450 = arith.truncf %444 : vector<2x128xf32> to vector<2x128xbf16>
    %c0_185 = arith.constant 0 : index
    %c0_186 = arith.constant 0 : index
    %451 = vector.load %arg14[%c0_185, %c0_186] : memref<2x256xbf16, #tpu.memory_space<vmem>>, vector<2x128xbf16>
    tpu.vector_store %arg14[%c0_185, %c0_186], %450 {strides = array<i32>} : memref<2x256xbf16, #tpu.memory_space<vmem>>, vector<2x128xbf16>,
    %452 = arith.index_cast %c3_i32_184 : i32 to index
    %c0_187 = arith.constant 0 : index
    %c0_188 = arith.constant 0 : index
    %453 = vector.load %arg13[%452, %c0_187, %c0_188] : memref<8x2x128xbf16, #tpu.memory_space<vmem>>, vector<1x2x128xbf16>
    %454 = vector.shape_cast %453 : vector<1x2x128xbf16> to vector<2x128xbf16>
    %c0_189 = arith.constant 0 : index
    %c128_190 = arith.constant 128 : index
    %455 = vector.load %arg14[%c0_189, %c128_190] : memref<2x256xbf16, #tpu.memory_space<vmem>>, vector<2x128xbf16>
    tpu.vector_store %arg14[%c0_189, %c128_190], %454 {strides = array<i32>} : memref<2x256xbf16, #tpu.memory_space<vmem>>, vector<2x128xbf16>,
    %c0_191 = arith.constant 0 : index
    %c0_192 = arith.constant 0 : index
    %456 = vector.load %arg14[%c0_191, %c0_192] : memref<2x256xbf16, #tpu.memory_space<vmem>>, vector<2x256xbf16>
    %c0_193 = arith.constant 0 : index
    %c0_194 = arith.constant 0 : index
    %457 = vector.load %arg4[%c0_193, %c0_194] : memref<256x512xbf16, #tpu.memory_space<vmem>>, vector<256x512xbf16>
    %cst_195 = arith.constant dense<0.000000e+00> : vector<2x512xf32>
    %458 = tpu.matmul %456, %457, %cst_195 {dimension_numbers = #tpu.dot_dimension_numbers<[1], [0], [0], [1], [0, 0, 1, 1], [], []>} : vector<2x256xbf16>, vector<256x512xbf16>, vector<2x512xf32> -> vector<2x512xf32>
    %459 = arith.addf %458, %327 : vector<2x512xf32>
    %460 = vector.extract_strided_slice %459 {offsets = [0, 0], sizes = [2, 128], strides = [1, 1]} : vector<2x512xf32> to vector<2x128xf32>
    %461 = arith.negf %460 : vector<2x128xf32>
    %462 = math.exp %461 : vector<2x128xf32>
    %cst_196 = arith.constant 1.000000e+00 : f32
    %463 = vector.broadcast %cst_196 : f32 to vector<2x128xf32>
    %464 = arith.addf %463, %462 : vector<2x128xf32>
    %465 = arith.divf %463, %464 : vector<2x128xf32>
    %466 = vector.extract_strided_slice %459 {offsets = [0, 128], sizes = [2, 128], strides = [1, 1]} : vector<2x512xf32> to vector<2x128xf32>
    %467 = arith.negf %466 : vector<2x128xf32>
    %468 = math.exp %467 : vector<2x128xf32>
    %cst_197 = arith.constant 1.000000e+00 : f32
    %469 = vector.broadcast %cst_197 : f32 to vector<2x128xf32>
    %470 = arith.addf %469, %468 : vector<2x128xf32>
    %471 = arith.divf %469, %470 : vector<2x128xf32>
    %472 = vector.extract_strided_slice %459 {offsets = [0, 256], sizes = [2, 128], strides = [1, 1]} : vector<2x512xf32> to vector<2x128xf32>
    %473 = math.tanh %472 : vector<2x128xf32>
    %474 = vector.extract_strided_slice %459 {offsets = [0, 384], sizes = [2, 128], strides = [1, 1]} : vector<2x512xf32> to vector<2x128xf32>
    %475 = arith.negf %474 : vector<2x128xf32>
    %476 = math.exp %475 : vector<2x128xf32>
    %cst_198 = arith.constant 1.000000e+00 : f32
    %477 = vector.broadcast %cst_198 : f32 to vector<2x128xf32>
    %478 = arith.addf %477, %476 : vector<2x128xf32>
    %479 = arith.divf %477, %478 : vector<2x128xf32>
    %480 = arith.mulf %471, %442 : vector<2x128xf32>
    %481 = arith.mulf %465, %473 : vector<2x128xf32>
    %482 = arith.addf %480, %481 : vector<2x128xf32>
    %483 = math.tanh %482 : vector<2x128xf32>
    %484 = arith.mulf %479, %483 : vector<2x128xf32>
    %485 = arith.truncf %484 : vector<2x128xf32> to vector<2x128xbf16>
    %486 = arith.index_cast %c3_i32_184 : i32 to index
    %c0_199 = arith.constant 0 : index
    %c0_200 = arith.constant 0 : index
    %487 = vector.load %arg13[%486, %c0_199, %c0_200] : memref<8x2x128xbf16, #tpu.memory_space<vmem>>, vector<1x2x128xbf16>
    %488 = vector.shape_cast %487 : vector<1x2x128xbf16> to vector<2x128xbf16>
    %489 = vector.shape_cast %485 : vector<2x128xbf16> to vector<1x2x128xbf16>
    tpu.vector_store %arg13[%486, %c0_199, %c0_200], %489 {strides = array<i32>} : memref<8x2x128xbf16, #tpu.memory_space<vmem>>, vector<1x2x128xbf16>,
    %c4_i32_201 = arith.constant 4 : i32
    %490 = arith.truncf %484 : vector<2x128xf32> to vector<2x128xbf16>
    %c0_202 = arith.constant 0 : index
    %c0_203 = arith.constant 0 : index
    %491 = vector.load %arg14[%c0_202, %c0_203] : memref<2x256xbf16, #tpu.memory_space<vmem>>, vector<2x128xbf16>
    tpu.vector_store %arg14[%c0_202, %c0_203], %490 {strides = array<i32>} : memref<2x256xbf16, #tpu.memory_space<vmem>>, vector<2x128xbf16>,
    %492 = arith.index_cast %c4_i32_201 : i32 to index
    %c0_204 = arith.constant 0 : index
    %c0_205 = arith.constant 0 : index
    %493 = vector.load %arg13[%492, %c0_204, %c0_205] : memref<8x2x128xbf16, #tpu.memory_space<vmem>>, vector<1x2x128xbf16>
    %494 = vector.shape_cast %493 : vector<1x2x128xbf16> to vector<2x128xbf16>
    %c0_206 = arith.constant 0 : index
    %c128_207 = arith.constant 128 : index
    %495 = vector.load %arg14[%c0_206, %c128_207] : memref<2x256xbf16, #tpu.memory_space<vmem>>, vector<2x128xbf16>
    tpu.vector_store %arg14[%c0_206, %c128_207], %494 {strides = array<i32>} : memref<2x256xbf16, #tpu.memory_space<vmem>>, vector<2x128xbf16>,
    %c0_208 = arith.constant 0 : index
    %c0_209 = arith.constant 0 : index
    %496 = vector.load %arg14[%c0_208, %c0_209] : memref<2x256xbf16, #tpu.memory_space<vmem>>, vector<2x256xbf16>
    %c0_210 = arith.constant 0 : index
    %c0_211 = arith.constant 0 : index
    %497 = vector.load %arg4[%c0_210, %c0_211] : memref<256x512xbf16, #tpu.memory_space<vmem>>, vector<256x512xbf16>
    %cst_212 = arith.constant dense<0.000000e+00> : vector<2x512xf32>
    %498 = tpu.matmul %496, %497, %cst_212 {dimension_numbers = #tpu.dot_dimension_numbers<[1], [0], [0], [1], [0, 0, 1, 1], [], []>} : vector<2x256xbf16>, vector<256x512xbf16>, vector<2x512xf32> -> vector<2x512xf32>
    %499 = arith.addf %498, %327 : vector<2x512xf32>
    %500 = vector.extract_strided_slice %499 {offsets = [0, 0], sizes = [2, 128], strides = [1, 1]} : vector<2x512xf32> to vector<2x128xf32>
    %501 = arith.negf %500 : vector<2x128xf32>
    %502 = math.exp %501 : vector<2x128xf32>
    %cst_213 = arith.constant 1.000000e+00 : f32
    %503 = vector.broadcast %cst_213 : f32 to vector<2x128xf32>
    %504 = arith.addf %503, %502 : vector<2x128xf32>
    %505 = arith.divf %503, %504 : vector<2x128xf32>
    %506 = vector.extract_strided_slice %499 {offsets = [0, 128], sizes = [2, 128], strides = [1, 1]} : vector<2x512xf32> to vector<2x128xf32>
    %507 = arith.negf %506 : vector<2x128xf32>
    %508 = math.exp %507 : vector<2x128xf32>
    %cst_214 = arith.constant 1.000000e+00 : f32
    %509 = vector.broadcast %cst_214 : f32 to vector<2x128xf32>
    %510 = arith.addf %509, %508 : vector<2x128xf32>
    %511 = arith.divf %509, %510 : vector<2x128xf32>
    %512 = vector.extract_strided_slice %499 {offsets = [0, 256], sizes = [2, 128], strides = [1, 1]} : vector<2x512xf32> to vector<2x128xf32>
    %513 = math.tanh %512 : vector<2x128xf32>
    %514 = vector.extract_strided_slice %499 {offsets = [0, 384], sizes = [2, 128], strides = [1, 1]} : vector<2x512xf32> to vector<2x128xf32>
    %515 = arith.negf %514 : vector<2x128xf32>
    %516 = math.exp %515 : vector<2x128xf32>
    %cst_215 = arith.constant 1.000000e+00 : f32
    %517 = vector.broadcast %cst_215 : f32 to vector<2x128xf32>
    %518 = arith.addf %517, %516 : vector<2x128xf32>
    %519 = arith.divf %517, %518 : vector<2x128xf32>
    %520 = arith.mulf %511, %482 : vector<2x128xf32>
    %521 = arith.mulf %505, %513 : vector<2x128xf32>
    %522 = arith.addf %520, %521 : vector<2x128xf32>
    %523 = math.tanh %522 : vector<2x128xf32>
    %524 = arith.mulf %519, %523 : vector<2x128xf32>
    %525 = arith.truncf %524 : vector<2x128xf32> to vector<2x128xbf16>
    %526 = arith.index_cast %c4_i32_201 : i32 to index
    %c0_216 = arith.constant 0 : index
    %c0_217 = arith.constant 0 : index
    %527 = vector.load %arg13[%526, %c0_216, %c0_217] : memref<8x2x128xbf16, #tpu.memory_space<vmem>>, vector<1x2x128xbf16>
    %528 = vector.shape_cast %527 : vector<1x2x128xbf16> to vector<2x128xbf16>
    %529 = vector.shape_cast %525 : vector<2x128xbf16> to vector<1x2x128xbf16>
    tpu.vector_store %arg13[%526, %c0_216, %c0_217], %529 {strides = array<i32>} : memref<8x2x128xbf16, #tpu.memory_space<vmem>>, vector<1x2x128xbf16>,
    %c5_i32_218 = arith.constant 5 : i32
    %530 = arith.truncf %524 : vector<2x128xf32> to vector<2x128xbf16>
    %c0_219 = arith.constant 0 : index
    %c0_220 = arith.constant 0 : index
    %531 = vector.load %arg14[%c0_219, %c0_220] : memref<2x256xbf16, #tpu.memory_space<vmem>>, vector<2x128xbf16>
    tpu.vector_store %arg14[%c0_219, %c0_220], %530 {strides = array<i32>} : memref<2x256xbf16, #tpu.memory_space<vmem>>, vector<2x128xbf16>,
    %532 = arith.index_cast %c5_i32_218 : i32 to index
    %c0_221 = arith.constant 0 : index
    %c0_222 = arith.constant 0 : index
    %533 = vector.load %arg13[%532, %c0_221, %c0_222] : memref<8x2x128xbf16, #tpu.memory_space<vmem>>, vector<1x2x128xbf16>
    %534 = vector.shape_cast %533 : vector<1x2x128xbf16> to vector<2x128xbf16>
    %c0_223 = arith.constant 0 : index
    %c128_224 = arith.constant 128 : index
    %535 = vector.load %arg14[%c0_223, %c128_224] : memref<2x256xbf16, #tpu.memory_space<vmem>>, vector<2x128xbf16>
    tpu.vector_store %arg14[%c0_223, %c128_224], %534 {strides = array<i32>} : memref<2x256xbf16, #tpu.memory_space<vmem>>, vector<2x128xbf16>,
    %c0_225 = arith.constant 0 : index
    %c0_226 = arith.constant 0 : index
    %536 = vector.load %arg14[%c0_225, %c0_226] : memref<2x256xbf16, #tpu.memory_space<vmem>>, vector<2x256xbf16>
    %c0_227 = arith.constant 0 : index
    %c0_228 = arith.constant 0 : index
    %537 = vector.load %arg4[%c0_227, %c0_228] : memref<256x512xbf16, #tpu.memory_space<vmem>>, vector<256x512xbf16>
    %cst_229 = arith.constant dense<0.000000e+00> : vector<2x512xf32>
    %538 = tpu.matmul %536, %537, %cst_229 {dimension_numbers = #tpu.dot_dimension_numbers<[1], [0], [0], [1], [0, 0, 1, 1], [], []>} : vector<2x256xbf16>, vector<256x512xbf16>, vector<2x512xf32> -> vector<2x512xf32>
    %539 = arith.addf %538, %327 : vector<2x512xf32>
    %540 = vector.extract_strided_slice %539 {offsets = [0, 0], sizes = [2, 128], strides = [1, 1]} : vector<2x512xf32> to vector<2x128xf32>
    %541 = arith.negf %540 : vector<2x128xf32>
    %542 = math.exp %541 : vector<2x128xf32>
    %cst_230 = arith.constant 1.000000e+00 : f32
    %543 = vector.broadcast %cst_230 : f32 to vector<2x128xf32>
    %544 = arith.addf %543, %542 : vector<2x128xf32>
    %545 = arith.divf %543, %544 : vector<2x128xf32>
    %546 = vector.extract_strided_slice %539 {offsets = [0, 128], sizes = [2, 128], strides = [1, 1]} : vector<2x512xf32> to vector<2x128xf32>
    %547 = arith.negf %546 : vector<2x128xf32>
    %548 = math.exp %547 : vector<2x128xf32>
    %cst_231 = arith.constant 1.000000e+00 : f32
    %549 = vector.broadcast %cst_231 : f32 to vector<2x128xf32>
    %550 = arith.addf %549, %548 : vector<2x128xf32>
    %551 = arith.divf %549, %550 : vector<2x128xf32>
    %552 = vector.extract_strided_slice %539 {offsets = [0, 256], sizes = [2, 128], strides = [1, 1]} : vector<2x512xf32> to vector<2x128xf32>
    %553 = math.tanh %552 : vector<2x128xf32>
    %554 = vector.extract_strided_slice %539 {offsets = [0, 384], sizes = [2, 128], strides = [1, 1]} : vector<2x512xf32> to vector<2x128xf32>
    %555 = arith.negf %554 : vector<2x128xf32>
    %556 = math.exp %555 : vector<2x128xf32>
    %cst_232 = arith.constant 1.000000e+00 : f32
    %557 = vector.broadcast %cst_232 : f32 to vector<2x128xf32>
    %558 = arith.addf %557, %556 : vector<2x128xf32>
    %559 = arith.divf %557, %558 : vector<2x128xf32>
    %560 = arith.mulf %551, %522 : vector<2x128xf32>
    %561 = arith.mulf %545, %553 : vector<2x128xf32>
    %562 = arith.addf %560, %561 : vector<2x128xf32>
    %563 = math.tanh %562 : vector<2x128xf32>
    %564 = arith.mulf %559, %563 : vector<2x128xf32>
    %565 = arith.truncf %564 : vector<2x128xf32> to vector<2x128xbf16>
    %566 = arith.index_cast %c5_i32_218 : i32 to index
    %c0_233 = arith.constant 0 : index
    %c0_234 = arith.constant 0 : index
    %567 = vector.load %arg13[%566, %c0_233, %c0_234] : memref<8x2x128xbf16, #tpu.memory_space<vmem>>, vector<1x2x128xbf16>
    %568 = vector.shape_cast %567 : vector<1x2x128xbf16> to vector<2x128xbf16>
    %569 = vector.shape_cast %565 : vector<2x128xbf16> to vector<1x2x128xbf16>
    tpu.vector_store %arg13[%566, %c0_233, %c0_234], %569 {strides = array<i32>} : memref<8x2x128xbf16, #tpu.memory_space<vmem>>, vector<1x2x128xbf16>,
    %c6_i32_235 = arith.constant 6 : i32
    %570 = arith.truncf %564 : vector<2x128xf32> to vector<2x128xbf16>
    %c0_236 = arith.constant 0 : index
    %c0_237 = arith.constant 0 : index
    %571 = vector.load %arg14[%c0_236, %c0_237] : memref<2x256xbf16, #tpu.memory_space<vmem>>, vector<2x128xbf16>
    tpu.vector_store %arg14[%c0_236, %c0_237], %570 {strides = array<i32>} : memref<2x256xbf16, #tpu.memory_space<vmem>>, vector<2x128xbf16>,
    %572 = arith.index_cast %c6_i32_235 : i32 to index
    %c0_238 = arith.constant 0 : index
    %c0_239 = arith.constant 0 : index
    %573 = vector.load %arg13[%572, %c0_238, %c0_239] : memref<8x2x128xbf16, #tpu.memory_space<vmem>>, vector<1x2x128xbf16>
    %574 = vector.shape_cast %573 : vector<1x2x128xbf16> to vector<2x128xbf16>
    %c0_240 = arith.constant 0 : index
    %c128_241 = arith.constant 128 : index
    %575 = vector.load %arg14[%c0_240, %c128_241] : memref<2x256xbf16, #tpu.memory_space<vmem>>, vector<2x128xbf16>
    tpu.vector_store %arg14[%c0_240, %c128_241], %574 {strides = array<i32>} : memref<2x256xbf16, #tpu.memory_space<vmem>>, vector<2x128xbf16>,
    %c0_242 = arith.constant 0 : index
    %c0_243 = arith.constant 0 : index
    %576 = vector.load %arg14[%c0_242, %c0_243] : memref<2x256xbf16, #tpu.memory_space<vmem>>, vector<2x256xbf16>
    %c0_244 = arith.constant 0 : index
    %c0_245 = arith.constant 0 : index
    %577 = vector.load %arg4[%c0_244, %c0_245] : memref<256x512xbf16, #tpu.memory_space<vmem>>, vector<256x512xbf16>
    %cst_246 = arith.constant dense<0.000000e+00> : vector<2x512xf32>
    %578 = tpu.matmul %576, %577, %cst_246 {dimension_numbers = #tpu.dot_dimension_numbers<[1], [0], [0], [1], [0, 0, 1, 1], [], []>} : vector<2x256xbf16>, vector<256x512xbf16>, vector<2x512xf32> -> vector<2x512xf32>
    %579 = arith.addf %578, %327 : vector<2x512xf32>
    %580 = vector.extract_strided_slice %579 {offsets = [0, 0], sizes = [2, 128], strides = [1, 1]} : vector<2x512xf32> to vector<2x128xf32>
    %581 = arith.negf %580 : vector<2x128xf32>
    %582 = math.exp %581 : vector<2x128xf32>
    %cst_247 = arith.constant 1.000000e+00 : f32
    %583 = vector.broadcast %cst_247 : f32 to vector<2x128xf32>
    %584 = arith.addf %583, %582 : vector<2x128xf32>
    %585 = arith.divf %583, %584 : vector<2x128xf32>
    %586 = vector.extract_strided_slice %579 {offsets = [0, 128], sizes = [2, 128], strides = [1, 1]} : vector<2x512xf32> to vector<2x128xf32>
    %587 = arith.negf %586 : vector<2x128xf32>
    %588 = math.exp %587 : vector<2x128xf32>
    %cst_248 = arith.constant 1.000000e+00 : f32
    %589 = vector.broadcast %cst_248 : f32 to vector<2x128xf32>
    %590 = arith.addf %589, %588 : vector<2x128xf32>
    %591 = arith.divf %589, %590 : vector<2x128xf32>
    %592 = vector.extract_strided_slice %579 {offsets = [0, 256], sizes = [2, 128], strides = [1, 1]} : vector<2x512xf32> to vector<2x128xf32>
    %593 = math.tanh %592 : vector<2x128xf32>
    %594 = vector.extract_strided_slice %579 {offsets = [0, 384], sizes = [2, 128], strides = [1, 1]} : vector<2x512xf32> to vector<2x128xf32>
    %595 = arith.negf %594 : vector<2x128xf32>
    %596 = math.exp %595 : vector<2x128xf32>
    %cst_249 = arith.constant 1.000000e+00 : f32
    %597 = vector.broadcast %cst_249 : f32 to vector<2x128xf32>
    %598 = arith.addf %597, %596 : vector<2x128xf32>
    %599 = arith.divf %597, %598 : vector<2x128xf32>
    %600 = arith.mulf %591, %562 : vector<2x128xf32>
    %601 = arith.mulf %585, %593 : vector<2x128xf32>
    %602 = arith.addf %600, %601 : vector<2x128xf32>
    %603 = math.tanh %602 : vector<2x128xf32>
    %604 = arith.mulf %599, %603 : vector<2x128xf32>
    %605 = arith.truncf %604 : vector<2x128xf32> to vector<2x128xbf16>
    %606 = arith.index_cast %c6_i32_235 : i32 to index
    %c0_250 = arith.constant 0 : index
    %c0_251 = arith.constant 0 : index
    %607 = vector.load %arg13[%606, %c0_250, %c0_251] : memref<8x2x128xbf16, #tpu.memory_space<vmem>>, vector<1x2x128xbf16>
    %608 = vector.shape_cast %607 : vector<1x2x128xbf16> to vector<2x128xbf16>
    %609 = vector.shape_cast %605 : vector<2x128xbf16> to vector<1x2x128xbf16>
    tpu.vector_store %arg13[%606, %c0_250, %c0_251], %609 {strides = array<i32>} : memref<8x2x128xbf16, #tpu.memory_space<vmem>>, vector<1x2x128xbf16>,
    %c7_i32_252 = arith.constant 7 : i32
    %610 = arith.truncf %604 : vector<2x128xf32> to vector<2x128xbf16>
    %c0_253 = arith.constant 0 : index
    %c0_254 = arith.constant 0 : index
    %611 = vector.load %arg14[%c0_253, %c0_254] : memref<2x256xbf16, #tpu.memory_space<vmem>>, vector<2x128xbf16>
    tpu.vector_store %arg14[%c0_253, %c0_254], %610 {strides = array<i32>} : memref<2x256xbf16, #tpu.memory_space<vmem>>, vector<2x128xbf16>,
    %612 = arith.index_cast %c7_i32_252 : i32 to index
    %c0_255 = arith.constant 0 : index
    %c0_256 = arith.constant 0 : index
    %613 = vector.load %arg13[%612, %c0_255, %c0_256] : memref<8x2x128xbf16, #tpu.memory_space<vmem>>, vector<1x2x128xbf16>
    %614 = vector.shape_cast %613 : vector<1x2x128xbf16> to vector<2x128xbf16>
    %c0_257 = arith.constant 0 : index
    %c128_258 = arith.constant 128 : index
    %615 = vector.load %arg14[%c0_257, %c128_258] : memref<2x256xbf16, #tpu.memory_space<vmem>>, vector<2x128xbf16>
    tpu.vector_store %arg14[%c0_257, %c128_258], %614 {strides = array<i32>} : memref<2x256xbf16, #tpu.memory_space<vmem>>, vector<2x128xbf16>,
    %c0_259 = arith.constant 0 : index
    %c0_260 = arith.constant 0 : index
    %616 = vector.load %arg14[%c0_259, %c0_260] : memref<2x256xbf16, #tpu.memory_space<vmem>>, vector<2x256xbf16>
    %c0_261 = arith.constant 0 : index
    %c0_262 = arith.constant 0 : index
    %617 = vector.load %arg4[%c0_261, %c0_262] : memref<256x512xbf16, #tpu.memory_space<vmem>>, vector<256x512xbf16>
    %cst_263 = arith.constant dense<0.000000e+00> : vector<2x512xf32>
    %618 = tpu.matmul %616, %617, %cst_263 {dimension_numbers = #tpu.dot_dimension_numbers<[1], [0], [0], [1], [0, 0, 1, 1], [], []>} : vector<2x256xbf16>, vector<256x512xbf16>, vector<2x512xf32> -> vector<2x512xf32>
    %619 = arith.addf %618, %327 : vector<2x512xf32>
    %620 = vector.extract_strided_slice %619 {offsets = [0, 0], sizes = [2, 128], strides = [1, 1]} : vector<2x512xf32> to vector<2x128xf32>
    %621 = arith.negf %620 : vector<2x128xf32>
    %622 = math.exp %621 : vector<2x128xf32>
    %cst_264 = arith.constant 1.000000e+00 : f32
    %623 = vector.broadcast %cst_264 : f32 to vector<2x128xf32>
    %624 = arith.addf %623, %622 : vector<2x128xf32>
    %625 = arith.divf %623, %624 : vector<2x128xf32>
    %626 = vector.extract_strided_slice %619 {offsets = [0, 128], sizes = [2, 128], strides = [1, 1]} : vector<2x512xf32> to vector<2x128xf32>
    %627 = arith.negf %626 : vector<2x128xf32>
    %628 = math.exp %627 : vector<2x128xf32>
    %cst_265 = arith.constant 1.000000e+00 : f32
    %629 = vector.broadcast %cst_265 : f32 to vector<2x128xf32>
    %630 = arith.addf %629, %628 : vector<2x128xf32>
    %631 = arith.divf %629, %630 : vector<2x128xf32>
    %632 = vector.extract_strided_slice %619 {offsets = [0, 256], sizes = [2, 128], strides = [1, 1]} : vector<2x512xf32> to vector<2x128xf32>
    %633 = math.tanh %632 : vector<2x128xf32>
    %634 = vector.extract_strided_slice %619 {offsets = [0, 384], sizes = [2, 128], strides = [1, 1]} : vector<2x512xf32> to vector<2x128xf32>
    %635 = arith.negf %634 : vector<2x128xf32>
    %636 = math.exp %635 : vector<2x128xf32>
    %cst_266 = arith.constant 1.000000e+00 : f32
    %637 = vector.broadcast %cst_266 : f32 to vector<2x128xf32>
    %638 = arith.addf %637, %636 : vector<2x128xf32>
    %639 = arith.divf %637, %638 : vector<2x128xf32>
    %640 = arith.mulf %631, %602 : vector<2x128xf32>
    %641 = arith.mulf %625, %633 : vector<2x128xf32>
    %642 = arith.addf %640, %641 : vector<2x128xf32>
    %643 = math.tanh %642 : vector<2x128xf32>
    %644 = arith.mulf %639, %643 : vector<2x128xf32>
    %645 = arith.truncf %644 : vector<2x128xf32> to vector<2x128xbf16>
    %646 = arith.index_cast %c7_i32_252 : i32 to index
    %c0_267 = arith.constant 0 : index
    %c0_268 = arith.constant 0 : index
    %647 = vector.load %arg13[%646, %c0_267, %c0_268] : memref<8x2x128xbf16, #tpu.memory_space<vmem>>, vector<1x2x128xbf16>
    %648 = vector.shape_cast %647 : vector<1x2x128xbf16> to vector<2x128xbf16>
    %649 = vector.shape_cast %645 : vector<2x128xbf16> to vector<1x2x128xbf16>
    tpu.vector_store %arg13[%646, %c0_267, %c0_268], %649 {strides = array<i32>} : memref<8x2x128xbf16, #tpu.memory_space<vmem>>, vector<1x2x128xbf16>,
    %c8_i32_269 = arith.constant 8 : i32
    %c0_270 = arith.constant 0 : index
    %c0_271 = arith.constant 0 : index
    %650 = vector.load %arg1[%c0_270, %c0_271] : memref<2x4xbf16, #tpu.memory_space<vmem>>, vector<2x4xbf16>
    %c0_272 = arith.constant 0 : index
    %c0_273 = arith.constant 0 : index
    %651 = vector.load %arg8[%c0_272, %c0_273] : memref<4x32xbf16, #tpu.memory_space<vmem>>, vector<4x32xbf16>
    %cst_274 = arith.constant dense<0.000000e+00> : vector<2x32xf32>
    %652 = tpu.matmul %650, %651, %cst_274 {dimension_numbers = #tpu.dot_dimension_numbers<[1], [0], [0], [1], [0, 0, 1, 1], [], []>} : vector<2x4xbf16>, vector<4x32xbf16>, vector<2x32xf32> -> vector<2x32xf32>
    %653 = arith.truncf %319 : vector<2x128xf32> to vector<2x128xbf16>
    %c0_275 = arith.constant 0 : index
    %c0_276 = arith.constant 0 : index
    %654 = vector.load %arg6[%c0_275, %c0_276] : memref<128x32xbf16, #tpu.memory_space<vmem>>, vector<128x32xbf16>
    %cst_277 = arith.constant dense<0.000000e+00> : vector<2x32xf32>
    %655 = tpu.matmul %653, %654, %cst_277 {dimension_numbers = #tpu.dot_dimension_numbers<[1], [0], [0], [1], [0, 0, 1, 1], [], []>} : vector<2x128xbf16>, vector<128x32xbf16>, vector<2x32xf32> -> vector<2x32xf32>
    %656 = arith.addf %652, %655 : vector<2x32xf32>
    %657 = arith.truncf %644 : vector<2x128xf32> to vector<2x128xbf16>
    %c0_278 = arith.constant 0 : index
    %c0_279 = arith.constant 0 : index
    %658 = vector.load %arg7[%c0_278, %c0_279] : memref<128x32xbf16, #tpu.memory_space<vmem>>, vector<128x32xbf16>
    %cst_280 = arith.constant dense<0.000000e+00> : vector<2x32xf32>
    %659 = tpu.matmul %657, %658, %cst_280 {dimension_numbers = #tpu.dot_dimension_numbers<[1], [0], [0], [1], [0, 0, 1, 1], [], []>} : vector<2x128xbf16>, vector<128x32xbf16>, vector<2x32xf32> -> vector<2x32xf32>
    %660 = arith.addf %656, %659 : vector<2x32xf32>
    %c0_281 = arith.constant 0 : index
    %c0_282 = arith.constant 0 : index
    %661 = vector.load %arg9[%c0_281, %c0_282] : memref<1x32xf32, #tpu.memory_space<vmem>>, vector<1x32xf32>
    %662 = vector.broadcast %661 : vector<1x32xf32> to vector<2x32xf32>
    %663 = arith.addf %660, %662 : vector<2x32xf32>
    %cst_283 = arith.constant 0.000000e+00 : f32
    %664 = vector.broadcast %cst_283 : f32 to vector<2x32xf32>
    %665 = arith.maximumf %663, %664 : vector<2x32xf32>
    %666 = arith.truncf %665 : vector<2x32xf32> to vector<2x32xbf16>
    %c0_284 = arith.constant 0 : index
    %c0_285 = arith.constant 0 : index
    %667 = vector.load %arg10[%c0_284, %c0_285] : memref<32x8xbf16, #tpu.memory_space<vmem>>, vector<32x8xbf16>
    %cst_286 = arith.constant dense<0.000000e+00> : vector<2x8xf32>
    %668 = tpu.matmul %666, %667, %cst_286 {dimension_numbers = #tpu.dot_dimension_numbers<[1], [0], [0], [1], [0, 0, 1, 1], [], []>} : vector<2x32xbf16>, vector<32x8xbf16>, vector<2x8xf32> -> vector<2x8xf32>
    %c0_287 = arith.constant 0 : index
    %c0_288 = arith.constant 0 : index
    %669 = vector.load %arg11[%c0_287, %c0_288] : memref<1x8xf32, #tpu.memory_space<vmem>>, vector<1x8xf32>
    %670 = vector.broadcast %669 : vector<1x8xf32> to vector<2x8xf32>
    %671 = arith.addf %668, %670 : vector<2x8xf32>
    %cst_289 = arith.constant dense<0xFF800000> : vector<2xf32>
    %672 = vector.multi_reduction <maximumf>, %671, %cst_289 [1] : vector<2x8xf32> to vector<2xf32>
    %673 = vector.shape_cast %672 : vector<2xf32> to vector<2x1xf32>
    %674 = vector.broadcast %673 : vector<2x1xf32> to vector<2x8xf32>
    %675 = arith.subf %671, %674 : vector<2x8xf32>
    %676 = math.exp %675 : vector<2x8xf32>
    %cst_290 = arith.constant dense<0.000000e+00> : vector<2xf32>
    %677 = vector.multi_reduction <add>, %676, %cst_290 [1] : vector<2x8xf32> to vector<2xf32>
    %678 = vector.shape_cast %677 : vector<2xf32> to vector<2x1xf32>
    %679 = vector.broadcast %678 : vector<2x1xf32> to vector<2x8xf32>
    %680 = arith.divf %676, %679 : vector<2x8xf32>
    %c0_291 = arith.constant 0 : index
    %c0_292 = arith.constant 0 : index
    %681 = vector.load %arg12[%c0_291, %c0_292] : memref<2x8xf32, #tpu.memory_space<vmem>>, vector<2x8xf32>
    tpu.vector_store %arg12[%c0_291, %c0_292], %680 {strides = array<i32>} : memref<2x8xf32, #tpu.memory_space<vmem>>, vector<2x8xf32>,
    return
  }
}

</mosaic_0001>

<bundles_post_ra>
// kernel: tpu_custom_call.1
= control target key start
LH: loop header
LB: loop body
LE: loop exit
PB: predicated region body
PF: predicated region fallthrough
CT: control target
= control target key end

     0   :  { %17 = vsyncpa [#allocation5], 0  ;;  %s13191_s0 = inlined_call_operand.vmem [shape: bf16[8,2,128], index: 0, kind: input, shape index: {}]   ;;  %s13192_s1 = inlined_call_operand.vmem [shape: bf16[2,4], index: 1, kind: input, shape index: {}]   ;;  %s13193_s2 = inlined_call_operand.hbm [shape: bf16[256,512], index: 2, kind: input, shape index: {}]   ;;  %s13194_s3 = inlined_call_operand.vmem [shape: f32[1,512], index: 3, kind: input, shape index: {}]   ;;  %s13195_s4 = inlined_call_operand.hbm [shape: bf16[256,512], index: 4, kind: input, shape index: {}]   ;;  %s13196_s5 = inlined_call_operand.vmem [shape: f32[1,512], index: 5, kind: input, shape index: {}]   ;;  %s13197_s6 = inlined_call_operand.vmem [shape: bf16[128,32], index: 6, kind: input, shape index: {}]   ;;  %s13198_s7 = inlined_call_operand.vmem [shape: bf16[128,32], index: 7, kind: input, shape index: {}]   ;;  %s13199_s8 = inlined_call_operand.vmem [shape: bf16[4,32], index: 8, kind: input, shape index: {}]   ;;  %s13200_s9 = inlined_call_operand.vmem [shape: f32[1,32], index: 9, kind: input, shape index: {}]   ;;  %s13201_s10 = inlined_call_operand.vmem [shape: bf16[32,8], index: 10, kind: input, shape index: {}]   ;;  %s13202_s11 = inlined_call_operand.vmem [shape: f32[1,8], index: 11, kind: input, shape index: {}]   ;;  %s13203_s12 = inlined_call_operand.hbm [shape: f32[2,8], index: 12, kind: output, shape index: {}]  }
   0x1   :  { %18 = vsyncpa [#allocation8], 0 }
   0x2   :  { %19 = vsyncpa [#allocation6], 0  ;;  %s11020_s21 = smov [#allocation4]   ;;  %s10948_s25 = scalar_lea.hbm %s13193_s2, 8192 }
   0x3   :  { %s29_s22 = sshll.u32 %s11020_s21, 4  ;;  %p10949_p0 = scmp.ne.s32.totalorder %s13193_s2, %s10948_s25  ;;  %s30_s22 = int_to_ptr.vmem [resolvable:$true] %s29_s22 }
   0x4   :  { %p10952_p1 = scmp.lt.u32.totalorder %s10948_s25, %s13193_s2 }
   0x6   :  { %p10954_p2 = pnand %p10952_p1, %p10949_p0 }
   0x8   :  { %10957 = shalt.err (!%p10954_p2)
}
   0x9   :  { %s10958_s30 = scalar_lea.vmem %s30_s22, 8192  ;;  %p10963_p4 = scmp.lt.s32.totalorder %s30_s22, %s30_s22 }
   0xa   :  { %p10959_p3 = scmp.ne.s32.totalorder %s30_s22, %s10958_s30  ;;  %p10964_p5 = scmp.lt.s32.totalorder %s10958_s30, %s10958_s30 }
   0xc   :  { %p10965_p6 = por %p10964_p5, %p10963_p4 }
   0xe   :  { %p10966_p7 = pnand %p10965_p6, %p10959_p3 }
  0x10   :  { %10969 = shalt.err (!%p10966_p7)
}
  0x11   :  { %s11021_s13 = smov 256   ;;  %s11022_s14 = smov 16  }
  0x12   :  { %35 = dma.hbm_to_vmem [thread:$0]  %s13193_s2, 8192, %s30_s22, [#allocation5], %s11021_s13, %s11021_s13, %s11022_s14  }
  0x13   :  { %s11023_s17 = smov [#allocation7]   ;;  %s10970_s21 = scalar_lea.hbm %s13195_s4, 8192 }
  0x14   :  { %s43_s18 = sshll.u32 %s11023_s17, 4  ;;  %p10971_p8 = scmp.ne.s32.totalorder %s13195_s4, %s10970_s21  ;;  %s44_s18 = int_to_ptr.vmem [resolvable:$true] %s43_s18 }
  0x15   :  { %p10974_p9 = scmp.lt.u32.totalorder %s10970_s21, %s13195_s4 }
  0x17   :  { %p10976_p10 = pnand %p10974_p9, %p10971_p8 }
  0x19   :  { %10979 = shalt.err (!%p10976_p10)
}
  0x1a   :  { %s10980_s27 = scalar_lea.vmem %s44_s18, 8192  ;;  %p10985_p12 = scmp.lt.s32.totalorder %s44_s18, %s44_s18 }
  0x1b   :  { %p10981_p11 = scmp.ne.s32.totalorder %s44_s18, %s10980_s27  ;;  %p10986_p13 = scmp.lt.s32.totalorder %s10980_s27, %s10980_s27 }
  0x1d   :  { %p10987_p0 = por %p10986_p13, %p10985_p12 }
  0x1f   :  { %p10988_p1 = pnand %p10987_p0, %p10981_p11 }
  0x21   :  { %10991 = shalt.err (!%p10988_p1)
}
  0x22   :  { %49 = dma.hbm_to_vmem [thread:$0]  %s13195_s4, 8192, %s44_s18, [#allocation8], %s11021_s13, %s11021_s13, %s11022_s14  }
  0x23   :  { %11014 = dma.done.wait [#allocation5], 8192  }
  0x24   :  { %11015 = vsyncadd [#allocation5], 4294959104 }
  0x25   :  { %11016 = dma.done.wait [#allocation8], 8192  }
  0x26   :  { %11017 = vsyncadd [#allocation8], 4294959104  ;;  %v13204_v0 = vmov 0   ;;  %v11119_v1 = vld [vmem:[#allocation4 + $0x4] ss:$16 sps:$4 sm:$0xff]   ;;  %v73_v41 = vlaneseq  ;;  %vm8575_vm0 = vcmask 1041408  }
  0x27   :  { %93 = vst [vmem:[#allocation3] sm:$0x1] %v13204_v0  ;;  %v11121_v2 = vld [vmem:[#allocation4] ss:$16 sps:$4 sm:$0xff]   ;;  %506 = vmatprep.subr.bf16.mxu0 %v11119_v1  ;;  %v11124_v3 = vld [vmem:[#allocation4 + $0x24] ss:$16 sps:$4 sm:$0xff]  }
  0x28   :  { %507 = vmatpush1.bf16.msra.mxu0 %v11121_v2  ;;  %v11127_v4 = vld [vmem:[#allocation4 + $0x20] ss:$16 sps:$4 sm:$0xff]   ;;  %v11130_v5 = vld [vmem:[#allocation4 + $0x44] ss:$16 sps:$4 sm:$0xff]   ;;  %v11132_v6 = vld [vmem:[#allocation4 + $0xc] ss:$16 sps:$4 sm:$0xff]  }
  0x29   :  { %508 = vmatprep.subr.bf16.mxu0 %v11124_v3  ;;  %v11134_v7 = vld [vmem:[#allocation4 + $0x8] ss:$16 sps:$4 sm:$0xff]   ;;  %v11137_v8 = vld [vmem:[#allocation4 + $0x40] ss:$16 sps:$4 sm:$0xff]   ;;  %547 = vmatprep.subr.bf16.mxu1 %v11132_v6  ;;  %v11141_v9 = vld [vmem:[#allocation4 + $0x64] ss:$16 sps:$4 sm:$0xff]  }
  0x2a   :  { %548 = vmatpush1.bf16.msra.mxu1 %v11134_v7  ;;  %v11144_v10 = vld [vmem:[#allocation4 + $0x2c] ss:$16 sps:$4 sm:$0xff]   ;;  %v11146_v11 = vld [vmem:[#allocation4 + $0x28] ss:$16 sps:$4 sm:$0xff]   ;;  %v11150_v12 = vld [vmem:[#allocation4 + $0x60] ss:$16 sps:$4 sm:$0xff]  }
  0x2b   :  { %549 = vmatprep.subr.bf16.mxu1 %v11144_v10  ;;  %v11152_v13 = vld [vmem:[#allocation4 + $0x84] ss:$16 sps:$4 sm:$0xff]   ;;  %v11154_v14 = vld [vmem:[#allocation4 + $0x4c] ss:$16 sps:$4 sm:$0xff]   ;;  %v11158_v15 = vld [vmem:[#allocation4 + $0x48] ss:$16 sps:$4 sm:$0xff]  }
  0x2c   :  { %509 = vmatpush1.bf16.msra.mxu0 %v11127_v4  ;;  %v11161_v16 = vld [vmem:[#allocation4 + $0x6c] ss:$16 sps:$4 sm:$0xff]   ;;  %v11164_v17 = vld [vmem:[#allocation4 + $0x80] ss:$16 sps:$4 sm:$0xff]   ;;  %v11167_v18 = vld [vmem:[#allocation4 + $0xa4] ss:$16 sps:$4 sm:$0xff]  }
  0x2d   :  { %510 = vmatprep.subr.bf16.mxu0 %v11130_v5  ;;  %v11170_v19 = vld [vmem:[#allocation4 + $0x68] ss:$16 sps:$4 sm:$0xff]   ;;  %v11173_v20 = vld [vmem:[#allocation4 + $0x8c] ss:$16 sps:$4 sm:$0xff]   ;;  %v11176_v21 = vld [vmem:[#allocation4 + $0xa0] ss:$16 sps:$4 sm:$0xff]  }
  0x2e   :  { %550 = vmatpush1.bf16.msra.mxu1 %v11146_v11  ;;  %v11178_v22 = vld [vmem:[#allocation4 + $0xc4] ss:$16 sps:$4 sm:$0xff]   ;;  %v11182_v23 = vld [vmem:[#allocation4 + $0x88] ss:$16 sps:$4 sm:$0xff]   ;;  %v11185_v24 = vld [vmem:[#allocation4 + $0xac] ss:$16 sps:$4 sm:$0xff]  }
  0x2f   :  { %551 = vmatprep.subr.bf16.mxu1 %v11154_v14  ;;  %v11188_v25 = vld [vmem:[#allocation4 + $0xc0] ss:$16 sps:$4 sm:$0xff]   ;;  %v11191_v26 = vld [vmem:[#allocation4 + $0xe4] ss:$16 sps:$4 sm:$0xff]   ;;  %v11194_v27 = vld [vmem:[#allocation4 + $0xa8] ss:$16 sps:$4 sm:$0xff]  }
  0x30   :  { %511 = vmatpush1.bf16.msra.mxu0 %v11137_v8  ;;  %v11197_v28 = vld [vmem:[#allocation4 + $0xcc] ss:$16 sps:$4 sm:$0xff]   ;;  %v11200_v29 = vld [vmem:[#allocation4 + $0xe0] ss:$16 sps:$4 sm:$0xff]   ;;  %v11202_v30 = vld [vmem:[#allocation4 + $0x104] ss:$16 sps:$4 sm:$0xff]  }
  0x31   :  { %512 = vmatprep.subr.bf16.mxu0 %v11141_v9  ;;  %v11206_v31 = vld [vmem:[#allocation4 + $0xc8] ss:$16 sps:$4 sm:$0xff]   ;;  %v11209_v32 = vld [vmem:[#allocation4 + $0xec] ss:$16 sps:$4 sm:$0xff]   ;;  %v11212_v33 = vld [vmem:[#allocation4 + $0x100] ss:$16 sps:$4 sm:$0xff]  }
  0x32   :  { %552 = vmatpush1.bf16.msra.mxu1 %v11158_v15  ;;  %v11215_v34 = vld [vmem:[#allocation4 + $0x124] ss:$16 sps:$4 sm:$0xff]   ;;  %v11218_v35 = vld [vmem:[#allocation4 + $0xe8] ss:$16 sps:$4 sm:$0xff]   ;;  %v11221_v36 = vld [vmem:[#allocation4 + $0x10c] ss:$16 sps:$4 sm:$0xff]  }
  0x33   :  { %553 = vmatprep.subr.bf16.mxu1 %v11161_v16  ;;  %v11224_v37 = vld [vmem:[#allocation4 + $0x120] ss:$16 sps:$4 sm:$0xff]   ;;  %v11226_v38 = vld [vmem:[#allocation4 + $0x144] ss:$16 sps:$4 sm:$0xff]   ;;  %v11230_v39 = vld [vmem:[#allocation4 + $0x108] ss:$16 sps:$4 sm:$0xff]  }
  0x34   :  { %513 = vmatpush1.bf16.msra.mxu0 %v11150_v12  ;;  %v11233_v40 = vld [vmem:[#allocation4 + $0x12c] ss:$16 sps:$4 sm:$0xff]   ;;  %v11025_v42 = vmov 1966171168   ;;  %v11235_v44 = vld [vmem:[#allocation4 + $0x140] ss:$16 sps:$4 sm:$0xff]  }
  0x35   :  { %514 = vmatprep.subr.bf16.mxu0 %v11152_v13  ;;  %v171_v43 = vunpack.c.l.s4 %v11025_v42  ;;  %v94_v45 = vld [vmem:[%s13191_s0] sm:$0x1]  ;;  %v11245_v47 = vld [vmem:[#allocation4 + $0x128] ss:$16 sps:$4 sm:$0xff]   ;;  %v11247_v48 = vld [vmem:[#allocation4 + $0x160] ss:$16 sps:$4 sm:$0xff]  }
  0x36   :  { %554 = vmatpush1.bf16.msra.mxu1 %v11170_v19  ;;  %v11241_v46 = vld [vmem:[#allocation4 + $0x164] ss:$16 sps:$4 sm:$0xff]   ;;  %95 = vst [vmem:[#allocation3 + $0x1] sm:$0x1] %v94_v45  ;;  %v11250_v49 = vld [vmem:[#allocation4 + $0x14c] ss:$16 sps:$4 sm:$0xff]  }
  0x37   :  { %555 = vmatprep.subr.bf16.mxu1 %v11173_v20  ;;  %v11252_v50 = vshrl.u32 %v73_v41, 7  ;;  %v172_v51 = vunpack.c.0.s8 %v171_v43  ;;  %v11254_v52 = vld [vmem:[#allocation4 + $0x184] ss:$16 sps:$4 sm:$0xff]   ;;  %v11256_v53 = vld [vmem:[#allocation4 + $0x148] ss:$16 sps:$4 sm:$0xff]   ;;  %vm11027_vm1 = vmmov 0  }
  0x38   :  { %515 = vmatpush1.bf16.msra.mxu0 %v11164_v17  ;;  %v11259_v54 = vld [vmem:[#allocation4 + $0x16c] ss:$16 sps:$4 sm:$0xff]   ;;  %v11263_v55 = vld [vmem:[#allocation4 + $0x180] ss:$16 sps:$4 sm:$0xff]   ;;  %v11269_v57 = vld [vmem:[#allocation4 + $0x1a4] ss:$16 sps:$4 sm:$0xff]  }
  0x39   :  { %516 = vmatprep.subr.bf16.mxu0 %v11167_v18  ;;  %13379 = vst [vmem:[#allocation13_spill] sm:$0xff] %v11252_v50  ;;  %v11267_v56 = vsub.s32 %v172_v51, %v11252_v50  ;;  %13380 = vst [vmem:[#allocation14_spill] sm:$0xff] %v11269_v57  ;;  %v11271_v58 = vld [vmem:[#allocation4 + $0x168] ss:$16 sps:$4 sm:$0xff]   ;;  %v11274_v60 = vld [vmem:[#allocation4 + $0x18c] ss:$16 sps:$4 sm:$0xff]  }
  0x3a   :  { %556 = vmatpush1.bf16.msra.mxu1 %v11182_v23  ;;  %v11278_v62 = vld [vmem:[#allocation4 + $0x1a0] ss:$16 sps:$4 sm:$0xff]   ;;  %v11282_v41 = vld [vmem:[#allocation4 + $0x1c4] ss:$16 sps:$4 sm:$0xff]   ;;  %v11284_v42 = vld [vmem:[#allocation4 + $0x188] ss:$16 sps:$4 sm:$0xff]  }
  0x3b   :  { %557 = vmatprep.subr.bf16.mxu1 %v11185_v24  ;;  %13381 = vst [vmem:[#allocation15_spill] sm:$0xff] %v11278_v62  ;;  %13382 = vst [vmem:[#allocation16_spill] sm:$0xff] %v11282_v41  ;;  %v11287_v43 = vld [vmem:[#allocation4 + $0x1ac] ss:$16 sps:$4 sm:$0xff]   ;;  %v11291_v45 = vld [vmem:[#allocation4 + $0x1c0] ss:$16 sps:$4 sm:$0xff]  }
  0x3c   :  { %517 = vmatpush1.bf16.msra.mxu0 %v11176_v21  ;;  %v11294_v51 = vld [vmem:[#allocation4 + $0x1e4] ss:$16 sps:$4 sm:$0xff]   ;;  %v11299_v0 = vld [vmem:[#allocation4 + $0x1cc] ss:$16 sps:$4 sm:$0xff]   ;;  %v11303_v50 = vld [vmem:[#allocation4 + $0x1e0] ss:$16 sps:$4 sm:$0xff]  }
  0x3d   :  { %518 = vmatprep.subr.bf16.mxu0 %v11178_v22  ;;  %v8830_v59 = vld.sshfl [vmem:[#allocation3] sm:$0x11 pattern:$0x75316420]  ;;  %vm8571_vm2 = vcmask 31744   ;;  %vm8757_vm3 = vcmask 261120  }
  0x3e   :  { %558 = vmatpush1.bf16.msra.mxu1 %v11194_v27  ;;  %v169_v61 = vcombine.high %v8830_v59, %v8830_v59  ;;  %vm8801_vm4 = vcmask 58368  }
  0x3f   :  { %559 = vmatprep.subr.bf16.mxu1 %v11197_v28 }
  0x40   :  { %519 = vmatpush1.bf16.msra.mxu0 %v11188_v25  ;;  %v183_v63 = vrot.slane %v169_v61, %v11267_v56  ;;  %v11296_v61 = vld [vmem:[#allocation4 + $0x1a8] ss:$16 sps:$4 sm:$0xff]  }
  0x41   :  { %520 = vmatprep.subr.bf16.mxu0 %v11191_v26 }
  0x42   :  { %560 = vmatpush1.bf16.msra.mxu1 %v11206_v31  ;;  %538 = vmatprep.mubr.bf16.mxu0 %v183_v63 }
  0x43   :  { %561 = vmatprep.subr.bf16.mxu1 %v11209_v32  ;;  %579 = vmatprep.mubr.bf16.mxu1 %v183_v63  ;;  %v11309_v63 = vld [vmem:[#allocation4 + $0x1ec] ss:$16 sps:$4 sm:$0xff]  }
  0x44   :  { %521 = vmatpush1.bf16.msra.mxu0 %v11200_v29 }
  0x45   :  { %522 = vmatprep.subr.bf16.mxu0 %v11202_v30 }
  0x46   :  { %562 = vmatpush1.bf16.msra.mxu1 %v11218_v35 }
  0x47   :  { %563 = vmatprep.subr.bf16.mxu1 %v11221_v36 }
  0x48   :  { %523 = vmatpush1.bf16.msra.mxu0 %v11212_v33 }
  0x49   :  { %524 = vmatprep.subr.bf16.mxu0 %v11215_v34 }
  0x4a   :  { %564 = vmatpush1.bf16.msra.mxu1 %v11230_v39 }
  0x4b   :  { %565 = vmatprep.subr.bf16.mxu1 %v11233_v40 }
  0x4c   :  { %525 = vmatpush1.bf16.msra.mxu0 %v11224_v37 }
  0x4d   :  { %526 = vmatprep.subr.bf16.mxu0 %v11226_v38 }
  0x4e   :  { %566 = vmatpush1.bf16.msra.mxu1 %v11245_v47 }
  0x4f   :  { %567 = vmatprep.subr.bf16.mxu1 %v11250_v49 }
  0x50   :  { %527 = vmatpush1.bf16.msra.mxu0 %v11235_v44 }
  0x51   :  { %528 = vmatprep.subr.bf16.mxu0 %v11241_v46 }
  0x52   :  { %568 = vmatpush1.bf16.msra.mxu1 %v11256_v53 }
  0x53   :  { %569 = vmatprep.subr.bf16.mxu1 %v11259_v54 }
  0x54   :  { %529 = vmatpush1.bf16.msra.mxu0 %v11247_v48 }
  0x55   :  { %530 = vmatprep.subr.bf16.mxu0 %v11254_v52 }
  0x56   :  { %570 = vmatpush1.bf16.msra.mxu1 %v11271_v58 }
  0x57   :  { %571 = vmatprep.subr.bf16.mxu1 %v11274_v60 }
  0x58   :  { %531 = vmatpush1.bf16.msra.mxu0 %v11263_v55 }
  0x59   :  { %532 = vmatprep.subr.bf16.mxu0 %v11269_v57  ;;  %v11306_v57 = vld [vmem:[#allocation4 + $0x1c8] ss:$16 sps:$4 sm:$0xff]  }
  0x5a   :  { %572 = vmatpush1.bf16.msra.mxu1 %v11284_v42 }
  0x5b   :  { %573 = vmatprep.subr.bf16.mxu1 %v11287_v43 }
  0x5c   :  { %533 = vmatpush1.bf16.msra.mxu0 %v11278_v62  ;;  %v11315_v62 = vld [vmem:[#allocation4 + $0x1e8] ss:$16 sps:$4 sm:$0xff]  }
  0x5d   :  { %534 = vmatprep.subr.bf16.mxu0 %v11282_v41  ;;  %v176_v41 = vrot.slane %v8830_v59, %v11267_v56  ;;  %v10890_v59 = vld [vmem:[#allocation4 + $0x8] ss:$16 sps:$4 sm:$0xff]  }
  0x5e   :  { %574 = vmatpush1.bf16.msra.mxu1 %v11296_v61 }
  0x5f   :  { %575 = vmatprep.subr.bf16.mxu1 %v11299_v0 }
  0x60   :  { %535 = vmatpush1.bf16.msra.mxu0 %v11291_v45 }
  0x61   :  { %536 = vmatprep.subr.bf16.mxu0 %v11294_v51 }
  0x62   :  { %576 = vmatpush1.bf16.msra.mxu1 %v11306_v57 }
  0x63   :  { %577 = vmatprep.subr.bf16.mxu1 %v11309_v63 }
  0x64   :  { %537 = vmatpush1.bf16.msra.mxu0 %v11303_v50 }
  0x65   :  { %1028 = vmatprep.subr.bf16.mxu0 %v11119_v1  ;;  %v13383_v1 = vld [vmem:[#allocation14_spill] sm:$0xff] }
  0x66   :  { %578 = vmatpush1.bf16.msra.mxu1 %v11315_v62 }
  0x67   :  { %539 = vmatmul.mubr.bf16.vlgmr.msra.gmra.mrb[0].mxu0 %v176_v41  ;;  %1069 = vmatprep.subr.bf16.mxu1 %v11132_v6  ;;  %v8898_v6 = vld [vmem:[%s13191_s0 + $0x1] sm:$0x1] }
  0x68   :  { %1029 = vmatpush1.bf16.msra.mxu0 %v11121_v2  ;;  %v13384_v2 = vld [vmem:[#allocation15_spill] sm:$0xff]  ;;  %617 = vst [vmem:[#allocation3 + $0x1] sm:$0x1] %v8898_v6 }
  0x69   :  { %1030 = vmatprep.subr.bf16.mxu0 %v11124_v3  ;;  %580 = vmatmul.mubr.bf16.vlgmr.msra.gmra.mrb[0].mxu1 %v176_v41  ;;  %v13385_v3 = vld [vmem:[#allocation16_spill] sm:$0xff]  ;;  %v10903_v6 = vld [vmem:[#allocation4 + $0x84] ss:$16 sps:$4 sm:$0xff]  }
  0x6a   :  { %1070 = vmatpush1.bf16.msra.mxu1 %v11134_v7  ;;  %v13386_v7 = vld [vmem:[#allocation13_spill] sm:$0xff]  ;;  %v10892_v41 = vld [vmem:[#allocation4 + $0x2c] ss:$16 sps:$4 sm:$0xff]  }
  0x6b   :  { %1071 = vmatprep.subr.bf16.mxu1 %v11144_v10 }
  0x6c   :  { %1031 = vmatpush1.bf16.msra.mxu0 %v11127_v4  ;;  %v10887_v4 = vld [vmem:[#allocation4 + $0x4] ss:$16 sps:$4 sm:$0xff]  }
  0x6d   :  { %1032 = vmatprep.subr.bf16.mxu0 %v11130_v5  ;;  %v10888_v5 = vld [vmem:[#allocation4 + $0xc] ss:$16 sps:$4 sm:$0xff]  }
  0x6e   :  { %1072 = vmatpush1.bf16.msra.mxu1 %v11146_v11 }
  0x6f   :  { %1073 = vmatprep.subr.bf16.mxu1 %v11154_v14 }
  0x70   :  { %1033 = vmatpush1.bf16.msra.mxu0 %v11137_v8  ;;  %v13213_v8 = vsub.s32 0, %v13386_v7 }
  0x71   :  { %1034 = vmatprep.subr.bf16.mxu0 %v11141_v9  ;;  %v13212_v9 = vsub.s32 1, %v13386_v7 }
  0x72   :  { %1074 = vmatpush1.bf16.msra.mxu1 %v11158_v15 }
  0x73   :  { %1075 = vmatprep.subr.bf16.mxu1 %v11161_v16 }
  0x74   :  { %1035 = vmatpush1.bf16.msra.mxu0 %v11150_v12  ;;  %v13211_v12 = vsub.s32 3, %v13386_v7 }
  0x75   :  { %1036 = vmatprep.subr.bf16.mxu0 %v11152_v13 }
  0x76   :  { %1076 = vmatpush1.bf16.msra.mxu1 %v11170_v19 }
  0x77   :  { %1077 = vmatprep.subr.bf16.mxu1 %v11173_v20 }
  0x78   :  { %1037 = vmatpush1.bf16.msra.mxu0 %v11164_v17 }
  0x79   :  { %1038 = vmatprep.subr.bf16.mxu0 %v11167_v18 }
  0x7a   :  { %1078 = vmatpush1.bf16.msra.mxu1 %v11182_v23 }
  0x7b   :  { %1079 = vmatprep.subr.bf16.mxu1 %v11185_v24 }
  0x7c   :  { %1039 = vmatpush1.bf16.msra.mxu0 %v11176_v21 }
  0x7d   :  { %1040 = vmatprep.subr.bf16.mxu0 %v11178_v22  ;;  %v13210_v22 = vsub.s32 2, %v13386_v7  ;;  %v11607_v7 = vld [vmem:[#allocation4 + $0x1c4] ss:$16 sps:$4 sm:$0xff]  }
  0x7e   :  { %1080 = vmatpush1.bf16.msra.mxu1 %v11194_v27  ;;  %13406 = vst [vmem:[#allocation33_spill] sm:$0xff] %v11607_v7 }
  0x7f   :  { %1081 = vmatprep.subr.bf16.mxu1 %v11197_v28 }
  0x80   :  { %1041 = vmatpush1.bf16.msra.mxu0 %v11188_v25 }
  0x81   :  { %1042 = vmatprep.subr.bf16.mxu0 %v11191_v26 }
  0x82   :  { %1082 = vmatpush1.bf16.msra.mxu1 %v11206_v31 }
  0x83   :  { %1083 = vmatprep.subr.bf16.mxu1 %v11209_v32 }
  0x84   :  { %1043 = vmatpush1.bf16.msra.mxu0 %v11200_v29 }
  0x85   :  { %1044 = vmatprep.subr.bf16.mxu0 %v11202_v30 }
  0x86   :  { %1084 = vmatpush1.bf16.msra.mxu1 %v11218_v35 }
  0x87   :  { %1085 = vmatprep.subr.bf16.mxu1 %v11221_v36 }
  0x88   :  { %1045 = vmatpush1.bf16.msra.mxu0 %v11212_v33 }
  0x89   :  { %1046 = vmatprep.subr.bf16.mxu0 %v11215_v34 }
  0x8a   :  { %1086 = vmatpush1.bf16.msra.mxu1 %v11230_v39 }
  0x8b   :  { %1087 = vmatprep.subr.bf16.mxu1 %v11233_v40 }
  0x8c   :  { %1047 = vmatpush1.bf16.msra.mxu0 %v11224_v37 }
  0x8d   :  { %1048 = vmatprep.subr.bf16.mxu0 %v11226_v38 }
  0x8e   :  { %1088 = vmatpush1.bf16.msra.mxu1 %v11245_v47 }
  0x8f   :  { %1089 = vmatprep.subr.bf16.mxu1 %v11250_v49 }
  0x90   :  { %1049 = vmatpush1.bf16.msra.mxu0 %v11235_v44 }
  0x91   :  { %1050 = vmatprep.subr.bf16.mxu0 %v11241_v46 }
  0x92   :  { %1090 = vmatpush1.bf16.msra.mxu1 %v11256_v53 }
  0x93   :  { %1091 = vmatprep.subr.bf16.mxu1 %v11259_v54 }
  0x94   :  { %1051 = vmatpush1.bf16.msra.mxu0 %v11247_v48 }
  0x95   :  { %1052 = vmatprep.subr.bf16.mxu0 %v11254_v52 }
  0x96   :  { %1092 = vmatpush1.bf16.msra.mxu1 %v11271_v58  ;;  %v10889_v58 = vld [vmem:[#allocation4] ss:$16 sps:$4 sm:$0xff]  }
  0x97   :  { %1093 = vmatprep.subr.bf16.mxu1 %v11274_v60  ;;  %v10891_v60 = vld [vmem:[#allocation4 + $0x24] ss:$16 sps:$4 sm:$0xff]  }
  0x98   :  { %1053 = vmatpush1.bf16.msra.mxu0 %v11263_v55 }
  0x99   :  { %1054 = vmatprep.subr.bf16.mxu0 %v13383_v1  ;;  %v10898_v1 = vld [vmem:[#allocation4 + $0x48] ss:$16 sps:$4 sm:$0xff]  }
  0x9a   :  { %1094 = vmatpush1.bf16.msra.mxu1 %v11284_v42  ;;  %v10893_v42 = vld [vmem:[#allocation4 + $0x20] ss:$16 sps:$4 sm:$0xff]  }
  0x9b   :  { %1095 = vmatprep.subr.bf16.mxu1 %v11287_v43  ;;  %v10894_v43 = vld [vmem:[#allocation4 + $0x28] ss:$16 sps:$4 sm:$0xff]  }
  0x9c   :  { %1055 = vmatpush1.bf16.msra.mxu0 %v13384_v2  ;;  %v10899_v2 = vld [vmem:[#allocation4 + $0x64] ss:$16 sps:$4 sm:$0xff]  }
  0x9d   :  { %1056 = vmatprep.subr.bf16.mxu0 %v13385_v3  ;;  %v10900_v3 = vld [vmem:[#allocation4 + $0x6c] ss:$16 sps:$4 sm:$0xff]  }
  0x9e   :  { %1096 = vmatpush1.bf16.msra.mxu1 %v11296_v61  ;;  %v10897_v61 = vld [vmem:[#allocation4 + $0x40] ss:$16 sps:$4 sm:$0xff]  }
  0x9f   :  { %1097 = vmatprep.subr.bf16.mxu1 %v11299_v0  ;;  %v71_v0 = vld [vmem:[%s13194_s3] sm:$0xf] }
  0xa0   :  { %1057 = vmatpush1.bf16.msra.mxu0 %v11291_v45  ;;  %v11395_v10 = vrot.slane %v71_v0, %v13213_v8  ;;  %v11399_v11 = vrot.slane %v71_v0, %v13212_v9  ;;  %v11406_v20 = vrot.slane %v71_v0, %v13211_v12  ;;  %v11412_v27 = vrot.slane %v71_v0, %v13210_v22  ;;  %v10895_v45 = vld [vmem:[#allocation4 + $0x44] ss:$16 sps:$4 sm:$0xff]   ;;  %v10904_v0 = vld [vmem:[#allocation4 + $0x8c] ss:$16 sps:$4 sm:$0xff]   ;;  %v11599_v9 = vld [vmem:[#allocation4 + $0x1a0] ss:$16 sps:$4 sm:$0xff]  }
  0xa1   :  { %1058 = vmatprep.subr.bf16.mxu0 %v11294_v51  ;;  %v10896_v51 = vld [vmem:[#allocation4 + $0x4c] ss:$16 sps:$4 sm:$0xff]   ;;  %v11595_v22 = vld [vmem:[#allocation4 + $0x1a4] ss:$16 sps:$4 sm:$0xff]   ;;  %13404 = vst [vmem:[#allocation31_spill] sm:$0xff] %v11599_v9 }
  0xa2   :  { %1098 = vmatpush1.bf16.msra.mxu1 %v11306_v57  ;;  %13387 = vst [vmem:[#allocation14_spill] sm:$0xff] %v11395_v10  ;;  %13388 = vst [vmem:[#allocation15_spill] sm:$0xff] %v11399_v11  ;;  %v11597_v12 = vld [vmem:[#allocation4 + $0x1ac] ss:$16 sps:$4 sm:$0xff]   ;;  %v11601_v8 = vld [vmem:[#allocation4 + $0x1a8] ss:$16 sps:$4 sm:$0xff]  }
  0xa3   :  { %1099 = vmatprep.subr.bf16.mxu1 %v11309_v63  ;;  %13389 = vst [vmem:[#allocation16_spill] sm:$0xff] %v11406_v20  ;;  %13390 = vst [vmem:[#allocation17_spill] sm:$0xff] %v11412_v27 }
  0xa4   :  { %1059 = vmatpush1.bf16.msra.mxu0 %v11303_v50  ;;  %13402 = vst [vmem:[#allocation29_spill] sm:$0xff] %v11595_v22  ;;  %13403 = vst [vmem:[#allocation30_spill] sm:$0xff] %v11597_v12 }
  0xa5   :  { %1551 = vmatprep.subr.bf16.mxu0 %v10887_v4  ;;  %v10901_v4 = vld [vmem:[#allocation4 + $0x60] ss:$16 sps:$4 sm:$0xff]   ;;  %13405 = vst [vmem:[#allocation32_spill] sm:$0xff] %v11601_v8 }
  0xa6   :  { %1100 = vmatpush1.bf16.msra.mxu1 %v11315_v62 }
  0xa7   :  { %1592 = vmatprep.subr.bf16.mxu1 %v10888_v5  ;;  %v10902_v5 = vld [vmem:[#allocation4 + $0x68] ss:$16 sps:$4 sm:$0xff]  }
 0x13a   :  { %v540_v13 = vpop.f32.mrb[0].mxu0 }
 0x13b   :  { %v541_v14 = vadd.f32 %v540_v13, %v11395_v10  ;;  %v542_v15 = vpop.f32.mrb[1].mxu0  ;;  %v10905_v13 = vld [vmem:[#allocation4 + $0x80] ss:$16 sps:$4 sm:$0xff]  }
 0x13c   :  { %v543_v16 = vadd.f32 %v542_v15, %v11399_v11  ;;  %v544_v17 = vpop.f32.mrb[2].mxu0  ;;  %v581_v23 = vpop.f32.mrb[0].mxu1  ;;  %v10907_v15 = vld [vmem:[#allocation4 + $0xa4] ss:$16 sps:$4 sm:$0xff]  }
 0x13d   :  { %v8895_v18 = vmul.f32 -1.442695, %v541_v14  ;;  %v545_v19 = vpop.f32.mrb[3].mxu0  ;;  %v583_v24 = vpop.f32.mrb[1].mxu1  ;;  %v582_v30 = vadd.f32 %v581_v23, %v11412_v27  ;;  %v10906_v14 = vld [vmem:[#allocation4 + $0x88] ss:$16 sps:$4 sm:$0xff]  }
 0x13e   :  { %v8896_v21 = vmul.f32 -1.442695, %v543_v16  ;;  %v584_v25 = vadd.f32 %v583_v24, %v11406_v20  ;;  %v585_v26 = vpop.f32.mrb[2].mxu1  ;;  %v10908_v16 = vld [vmem:[#allocation4 + $0xac] ss:$16 sps:$4 sm:$0xff]  }
 0x13f   :  { %10627 = vpow2.f32 %v8895_v18  ;;  %v586_v28 = vpop.f32.mrb[3].mxu1  ;;  %v10909_v17 = vld [vmem:[#allocation4 + $0xa0] ss:$16 sps:$4 sm:$0xff]   ;;  %v10910_v18 = vld [vmem:[#allocation4 + $0xa8] ss:$16 sps:$4 sm:$0xff]  }
 0x140   :  { %10629 = vpow2.f32 %v8896_v21  ;;  %v8897_v29 = vmul.f32 -1.442695, %v584_v25  ;;  %v10911_v19 = vld [vmem:[#allocation4 + $0xc4] ss:$16 sps:$4 sm:$0xff]   ;;  %v10912_v21 = vld [vmem:[#allocation4 + $0xcc] ss:$16 sps:$4 sm:$0xff]  }
 0x141   :  { %v10913_v23 = vld [vmem:[#allocation4 + $0xc0] ss:$16 sps:$4 sm:$0xff]   ;;  %v10914_v24 = vld [vmem:[#allocation4 + $0xc8] ss:$16 sps:$4 sm:$0xff]   ;;  %v10915_v25 = vld [vmem:[#allocation4 + $0xe4] ss:$16 sps:$4 sm:$0xff]  }
 0x142   :  { %10631 = vpow2.f32 %v8897_v29  ;;  %v10916_v26 = vld [vmem:[#allocation4 + $0xec] ss:$16 sps:$4 sm:$0xff]   ;;  %v10917_v28 = vld [vmem:[#allocation4 + $0xe0] ss:$16 sps:$4 sm:$0xff]   ;;  %v10918_v29 = vld [vmem:[#allocation4 + $0xe8] ss:$16 sps:$4 sm:$0xff]  }
 0x143   :  { %10633 = vtanh.f32 %v582_v30  ;;  %v10919_v30 = vld [vmem:[#allocation4 + $0x104] ss:$16 sps:$4 sm:$0xff]  }
 0x149   :  { %v10628_v31 = vpop.eup %10627 }
 0x14a   :  { %v10630_v32 = vpop.eup %10629  ;;  %v591_v33 = vadd.f32 1.0, %v10628_v31  ;;  %v10920_v31 = vld [vmem:[#allocation4 + $0x10c] ss:$16 sps:$4 sm:$0xff]  }
 0x14b   :  { %v597_v34 = vadd.f32 1.0, %v10630_v32  ;;  %v10921_v32 = vld [vmem:[#allocation4 + $0x100] ss:$16 sps:$4 sm:$0xff]  }
 0x14c   :  { %10635 = vrcp.f32 %v591_v33  ;;  %v10632_v35 = vpop.eup %10631  ;;  %v10922_v33 = vld [vmem:[#allocation4 + $0x108] ss:$16 sps:$4 sm:$0xff]  }
 0x14d   :  { %10637 = vrcp.f32 %v597_v34  ;;  %v10634_v36 = vpop.eup %10633  ;;  %v604_v38 = vadd.f32 1.0, %v10632_v35  ;;  %v10923_v34 = vld [vmem:[#allocation4 + $0x124] ss:$16 sps:$4 sm:$0xff]   ;;  %v10924_v35 = vld [vmem:[#allocation4 + $0x12c] ss:$16 sps:$4 sm:$0xff]  }
 0x14f   :  { %10639 = vrcp.f32 %v604_v38  ;;  %v10927_v38 = vld [vmem:[#allocation4 + $0x144] ss:$16 sps:$4 sm:$0xff]  }
 0x156   :  { %v10636_v37 = vpop.eup %10635 }
 0x157   :  { %v10638_v39 = vpop.eup %10637  ;;  %v608_v40 = vmul.f32 %v10636_v37, %v10634_v36  ;;  %v10925_v36 = vld [vmem:[#allocation4 + $0x120] ss:$16 sps:$4 sm:$0xff]   ;;  %v10926_v37 = vld [vmem:[#allocation4 + $0x128] ss:$16 sps:$4 sm:$0xff]  }
 0x158   :  { %v607_v44 = vmul.f32 0.0, %v10638_v39  ;;  %v10928_v39 = vld [vmem:[#allocation4 + $0x14c] ss:$16 sps:$4 sm:$0xff]  }
 0x159   :  { %v10640_v47 = vpop.eup %10639 }
 0x15a   :  { %v11415_v46 = vadd.f32 %v608_v40, %v607_v44  ;;  %v10929_v40 = vld [vmem:[#allocation4 + $0x140] ss:$16 sps:$4 sm:$0xff]   ;;  %v10930_v44 = vld [vmem:[#allocation4 + $0x148] ss:$16 sps:$4 sm:$0xff]  }
 0x15c   :  { %10641 = vtanh.f32 %v11415_v46 }
 0x166   :  { %v10642_v48 = vpop.eup %10641 }
 0x167   :  { %v611_v49 = vmul.f32 %v10642_v48, %v10640_v47  ;;  %v10931_v47 = vld [vmem:[#allocation4 + $0x164] ss:$16 sps:$4 sm:$0xff]   ;;  %v10932_v48 = vld [vmem:[#allocation4 + $0x16c] ss:$16 sps:$4 sm:$0xff]  }
 0x169   :  { %v612_v50 = vpack.c.bf16 %v611_v49, %v611_v49  ;;  %v10933_v49 = vld [vmem:[#allocation4 + $0x160] ss:$16 sps:$4 sm:$0xff]  }
 0x16b   :  { %613 = vst [vmem:[#allocation2] sm:$0x1] %v612_v50  ;;  %614 = vst [vmem:[#allocation3] sm:$0x1] %v612_v50  ;;  %v10934_v50 = vld [vmem:[#allocation4 + $0x168] ss:$16 sps:$4 sm:$0xff]  }
 0x172   :  { %v8899_v52 = vld.sshfl [vmem:[#allocation3] sm:$0x11 pattern:$0x75316420] }
 0x173   :  { %v691_v53 = vcombine.high %v8899_v52, %v8899_v52  ;;  %v698_v55 = vrot.slane %v8899_v52, %v11267_v56  ;;  %v10935_v52 = vld [vmem:[#allocation4 + $0x184] ss:$16 sps:$4 sm:$0xff]  }
 0x175   :  { %v705_v54 = vrot.slane %v691_v53, %v11267_v56  ;;  %v10936_v53 = vld [vmem:[#allocation4 + $0x18c] ss:$16 sps:$4 sm:$0xff]  }
 0x177   :  { %1060 = vmatprep.mubr.bf16.mxu0 %v705_v54  ;;  %1101 = vmatprep.mubr.bf16.mxu1 %v705_v54  ;;  %v10937_v54 = vld [vmem:[#allocation4 + $0x180] ss:$16 sps:$4 sm:$0xff]  }
 0x178   :  { %1061 = vmatmul.mubr.bf16.vlgmr.msra.gmra.mrb[4].mxu0 %v698_v55  ;;  %1102 = vmatmul.mubr.bf16.vlgmr.msra.gmra.mrb[4].mxu1 %v698_v55  ;;  %v10938_v55 = vld [vmem:[#allocation4 + $0x188] ss:$16 sps:$4 sm:$0xff]  }
 0x179   :  { %1552 = vmatpush1.bf16.msra.mxu0 %v10889_v58  ;;  %1593 = vmatpush1.bf16.msra.mxu1 %v10890_v59  ;;  %v10939_v58 = vld [vmem:[#allocation4 + $0x1a4] ss:$16 sps:$4 sm:$0xff]   ;;  %v10940_v59 = vld [vmem:[#allocation4 + $0x1ac] ss:$16 sps:$4 sm:$0xff]  }
 0x17a   :  { %1553 = vmatprep.subr.bf16.mxu0 %v10891_v60  ;;  %1594 = vmatprep.subr.bf16.mxu1 %v10892_v41  ;;  %v10941_v60 = vld [vmem:[#allocation4 + $0x1a0] ss:$16 sps:$4 sm:$0xff]   ;;  %v10942_v41 = vld [vmem:[#allocation4 + $0x1a8] ss:$16 sps:$4 sm:$0xff]  }
 0x17d   :  { %1554 = vmatpush1.bf16.msra.mxu0 %v10893_v42  ;;  %1595 = vmatpush1.bf16.msra.mxu1 %v10894_v43  ;;  %v10943_v42 = vld [vmem:[#allocation4 + $0x1c4] ss:$16 sps:$4 sm:$0xff]   ;;  %v10944_v43 = vld [vmem:[#allocation4 + $0x1cc] ss:$16 sps:$4 sm:$0xff]  }
 0x17e   :  { %1555 = vmatprep.subr.bf16.mxu0 %v10895_v45  ;;  %1596 = vmatprep.subr.bf16.mxu1 %v10896_v51  ;;  %v10945_v45 = vld [vmem:[#allocation4 + $0x1c0] ss:$16 sps:$4 sm:$0xff]   ;;  %v10946_v51 = vld [vmem:[#allocation4 + $0x1e4] ss:$16 sps:$4 sm:$0xff]  }
 0x181   :  { %1556 = vmatpush1.bf16.msra.mxu0 %v10897_v61  ;;  %1597 = vmatpush1.bf16.msra.mxu1 %v10898_v1  ;;  %v10947_v61 = vld [vmem:[#allocation4 + $0x1e0] ss:$16 sps:$4 sm:$0xff]   ;;  %v8967_v1 = vld [vmem:[%s13191_s0 + $0x2] sm:$0x1] }
 0x182   :  { %1557 = vmatprep.subr.bf16.mxu0 %v10899_v2  ;;  %1598 = vmatprep.subr.bf16.mxu1 %v10900_v3  ;;  %1140 = vst [vmem:[#allocation3 + $0x1] sm:$0x1] %v8967_v1  ;;  %v11426_v2 = vld [vmem:[#allocation4 + $0x4] ss:$16 sps:$4 sm:$0xff]   ;;  %v11428_v3 = vld [vmem:[#allocation4 + $0xc] ss:$16 sps:$4 sm:$0xff]  }
 0x183   :  { %13391 = vst [vmem:[#allocation18_spill] sm:$0xff] %v11426_v2  ;;  %13392 = vst [vmem:[#allocation19_spill] sm:$0xff] %v11428_v3  ;;  %v11488_v1 = vld [vmem:[#allocation4 + $0x80] ss:$16 sps:$4 sm:$0xff]  }
 0x185   :  { %1558 = vmatpush1.bf16.msra.mxu0 %v10901_v4  ;;  %1599 = vmatpush1.bf16.msra.mxu1 %v10902_v5 }
 0x186   :  { %1559 = vmatprep.subr.bf16.mxu0 %v10903_v6  ;;  %1600 = vmatprep.subr.bf16.mxu1 %v10904_v0 }
 0x189   :  { %1560 = vmatpush1.bf16.msra.mxu0 %v10905_v13  ;;  %1601 = vmatpush1.bf16.msra.mxu1 %v10906_v14 }
 0x18a   :  { %1561 = vmatprep.subr.bf16.mxu0 %v10907_v15  ;;  %1602 = vmatprep.subr.bf16.mxu1 %v10908_v16 }
 0x18d   :  { %1562 = vmatpush1.bf16.msra.mxu0 %v10909_v17  ;;  %1603 = vmatpush1.bf16.msra.mxu1 %v10910_v18 }
 0x18e   :  { %1563 = vmatprep.subr.bf16.mxu0 %v10911_v19  ;;  %1604 = vmatprep.subr.bf16.mxu1 %v10912_v21 }
 0x191   :  { %1564 = vmatpush1.bf16.msra.mxu0 %v10913_v23  ;;  %1605 = vmatpush1.bf16.msra.mxu1 %v10914_v24 }
 0x192   :  { %1565 = vmatprep.subr.bf16.mxu0 %v10915_v25  ;;  %1606 = vmatprep.subr.bf16.mxu1 %v10916_v26 }
 0x195   :  { %1566 = vmatpush1.bf16.msra.mxu0 %v10917_v28  ;;  %1607 = vmatpush1.bf16.msra.mxu1 %v10918_v29 }
 0x196   :  { %1567 = vmatprep.subr.bf16.mxu0 %v10919_v30  ;;  %1608 = vmatprep.subr.bf16.mxu1 %v10920_v31 }
 0x199   :  { %1568 = vmatpush1.bf16.msra.mxu0 %v10921_v32  ;;  %1609 = vmatpush1.bf16.msra.mxu1 %v10922_v33 }
 0x19a   :  { %1569 = vmatprep.subr.bf16.mxu0 %v10923_v34  ;;  %1610 = vmatprep.subr.bf16.mxu1 %v10924_v35 }
 0x19d   :  { %1570 = vmatpush1.bf16.msra.mxu0 %v10925_v36  ;;  %1611 = vmatpush1.bf16.msra.mxu1 %v10926_v37 }
 0x19e   :  { %1571 = vmatprep.subr.bf16.mxu0 %v10927_v38  ;;  %1612 = vmatprep.subr.bf16.mxu1 %v10928_v39 }
 0x1a1   :  { %1572 = vmatpush1.bf16.msra.mxu0 %v10929_v40  ;;  %1613 = vmatpush1.bf16.msra.mxu1 %v10930_v44 }
 0x1a2   :  { %1573 = vmatprep.subr.bf16.mxu0 %v10931_v47  ;;  %1614 = vmatprep.subr.bf16.mxu1 %v10932_v48  ;;  %v11441_v48 = vld [vmem:[#allocation4] ss:$16 sps:$4 sm:$0xff]  }
 0x1a5   :  { %1574 = vmatpush1.bf16.msra.mxu0 %v10933_v49  ;;  %1615 = vmatpush1.bf16.msra.mxu1 %v10934_v50  ;;  %v11443_v49 = vld [vmem:[#allocation4 + $0x8] ss:$16 sps:$4 sm:$0xff]   ;;  %v11448_v50 = vld [vmem:[#allocation4 + $0x24] ss:$16 sps:$4 sm:$0xff]  }
 0x1a6   :  { %1575 = vmatprep.subr.bf16.mxu0 %v10935_v52  ;;  %1616 = vmatprep.subr.bf16.mxu1 %v10936_v53  ;;  %v11450_v52 = vld [vmem:[#allocation4 + $0x2c] ss:$16 sps:$4 sm:$0xff]   ;;  %v11452_v53 = vld [vmem:[#allocation4 + $0x20] ss:$16 sps:$4 sm:$0xff]  }
 0x1a9   :  { %1576 = vmatpush1.bf16.msra.mxu0 %v10937_v54  ;;  %1617 = vmatpush1.bf16.msra.mxu1 %v10938_v55  ;;  %v11454_v54 = vld [vmem:[#allocation4 + $0x28] ss:$16 sps:$4 sm:$0xff]   ;;  %v11460_v55 = vld [vmem:[#allocation4 + $0x44] ss:$16 sps:$4 sm:$0xff]  }
 0x1aa   :  { %1577 = vmatprep.subr.bf16.mxu0 %v10939_v58  ;;  %1618 = vmatprep.subr.bf16.mxu1 %v10940_v59  ;;  %v11462_v58 = vld [vmem:[#allocation4 + $0x4c] ss:$16 sps:$4 sm:$0xff]   ;;  %v11464_v59 = vld [vmem:[#allocation4 + $0x40] ss:$16 sps:$4 sm:$0xff]  }
 0x1ad   :  { %1578 = vmatpush1.bf16.msra.mxu0 %v10941_v60  ;;  %1619 = vmatpush1.bf16.msra.mxu1 %v10942_v41  ;;  %v11466_v60 = vld [vmem:[#allocation4 + $0x48] ss:$16 sps:$4 sm:$0xff]   ;;  %v11472_v41 = vld [vmem:[#allocation4 + $0x64] ss:$16 sps:$4 sm:$0xff]  }
 0x1ae   :  { %1579 = vmatprep.subr.bf16.mxu0 %v10943_v42  ;;  %1620 = vmatprep.subr.bf16.mxu1 %v10944_v43  ;;  %v11474_v42 = vld [vmem:[#allocation4 + $0x6c] ss:$16 sps:$4 sm:$0xff]   ;;  %v11476_v43 = vld [vmem:[#allocation4 + $0x60] ss:$16 sps:$4 sm:$0xff]  }
 0x1b1   :  { %1580 = vmatpush1.bf16.msra.mxu0 %v10945_v45  ;;  %1621 = vmatpush1.bf16.msra.mxu1 %v11306_v57  ;;  %v11478_v45 = vld [vmem:[#allocation4 + $0x68] ss:$16 sps:$4 sm:$0xff]  }
 0x1b2   :  { %1581 = vmatprep.subr.bf16.mxu0 %v10946_v51  ;;  %1622 = vmatprep.subr.bf16.mxu1 %v11309_v63  ;;  %v11484_v51 = vld [vmem:[#allocation4 + $0x84] ss:$16 sps:$4 sm:$0xff]  }
 0x1b5   :  { %1582 = vmatpush1.bf16.msra.mxu0 %v10947_v61  ;;  %1623 = vmatpush1.bf16.msra.mxu1 %v11315_v62  ;;  %v11486_v61 = vld [vmem:[#allocation4 + $0x8c] ss:$16 sps:$4 sm:$0xff]  }
 0x1b6   :  { %2074 = vmatprep.subr.bf16.mxu0 %v11426_v2  ;;  %2115 = vmatprep.subr.bf16.mxu1 %v11428_v3 }
 0x24b   :  { %v1062_v57 = vpop.f32.mrb[4].mxu0  ;;  %v1103_v4 = vpop.f32.mrb[4].mxu1 }
 0x24c   :  { %v1063_v63 = vadd.f32 %v1062_v57, %v11395_v10  ;;  %v1064_v5 = vpop.f32.mrb[5].mxu0  ;;  %v1105_v6 = vpop.f32.mrb[5].mxu1  ;;  %v1104_v21 = vadd.f32 %v1103_v4, %v11412_v27  ;;  %v11490_v57 = vld [vmem:[#allocation4 + $0x88] ss:$16 sps:$4 sm:$0xff]   ;;  %v11496_v4 = vld [vmem:[#allocation4 + $0xa4] ss:$16 sps:$4 sm:$0xff]  }
 0x24d   :  { %v1065_v62 = vadd.f32 %v1064_v5, %v11399_v11  ;;  %v1066_v0 = vpop.f32.mrb[6].mxu0  ;;  %v1107_v13 = vpop.f32.mrb[6].mxu1  ;;  %v1106_v18 = vadd.f32 %v1105_v6, %v11406_v20  ;;  %v11500_v5 = vld [vmem:[#allocation4 + $0xa0] ss:$16 sps:$4 sm:$0xff]   ;;  %v11502_v6 = vld [vmem:[#allocation4 + $0xa8] ss:$16 sps:$4 sm:$0xff]  }
 0x24e   :  { %v8964_v14 = vmul.f32 -1.442695, %v1063_v63  ;;  %v1067_v15 = vpop.f32.mrb[7].mxu0  ;;  %v1108_v16 = vpop.f32.mrb[7].mxu1  ;;  %v11498_v63 = vld [vmem:[#allocation4 + $0xac] ss:$16 sps:$4 sm:$0xff]  }
 0x24f   :  { %v8965_v17 = vmul.f32 -1.442695, %v1065_v62  ;;  %v8966_v19 = vmul.f32 -1.442695, %v1106_v18  ;;  %v11508_v62 = vld [vmem:[#allocation4 + $0xc4] ss:$16 sps:$4 sm:$0xff]  }
 0x250   :  { %10643 = vpow2.f32 %v8964_v14  ;;  %v11510_v0 = vld [vmem:[#allocation4 + $0xcc] ss:$16 sps:$4 sm:$0xff]   ;;  %v11512_v13 = vld [vmem:[#allocation4 + $0xc0] ss:$16 sps:$4 sm:$0xff]   ;;  %v11514_v14 = vld [vmem:[#allocation4 + $0xc8] ss:$16 sps:$4 sm:$0xff]  }
 0x251   :  { %10645 = vpow2.f32 %v8965_v17  ;;  %v11520_v15 = vld [vmem:[#allocation4 + $0xe4] ss:$16 sps:$4 sm:$0xff]   ;;  %v11522_v16 = vld [vmem:[#allocation4 + $0xec] ss:$16 sps:$4 sm:$0xff]   ;;  %v11524_v17 = vld [vmem:[#allocation4 + $0xe0] ss:$16 sps:$4 sm:$0xff]  }
 0x252   :  { %10647 = vpow2.f32 %v8966_v19  ;;  %v11526_v18 = vld [vmem:[#allocation4 + $0xe8] ss:$16 sps:$4 sm:$0xff]   ;;  %v11532_v19 = vld [vmem:[#allocation4 + $0x104] ss:$16 sps:$4 sm:$0xff]  }
 0x253   :  { %10649 = vtanh.f32 %v1104_v21  ;;  %v11534_v21 = vld [vmem:[#allocation4 + $0x10c] ss:$16 sps:$4 sm:$0xff]  }
 0x25a   :  { %v10644_v23 = vpop.eup %10643 }
 0x25b   :  { %v10646_v24 = vpop.eup %10645  ;;  %v1113_v25 = vadd.f32 1.0, %v10644_v23  ;;  %v11536_v23 = vld [vmem:[#allocation4 + $0x100] ss:$16 sps:$4 sm:$0xff]  }
 0x25c   :  { %v1119_v26 = vadd.f32 1.0, %v10646_v24  ;;  %v10648_v28 = vpop.eup %10647  ;;  %v11538_v24 = vld [vmem:[#allocation4 + $0x108] ss:$16 sps:$4 sm:$0xff]  }
 0x25d   :  { %10651 = vrcp.f32 %v1113_v25  ;;  %v10650_v29 = vpop.eup %10649  ;;  %v1126_v33 = vadd.f32 1.0, %v10648_v28  ;;  %v11544_v25 = vld [vmem:[#allocation4 + $0x124] ss:$16 sps:$4 sm:$0xff]   ;;  %v11548_v28 = vld [vmem:[#allocation4 + $0x120] ss:$16 sps:$4 sm:$0xff]  }
 0x25e   :  { %10653 = vrcp.f32 %v1119_v26  ;;  %v11546_v26 = vld [vmem:[#allocation4 + $0x12c] ss:$16 sps:$4 sm:$0xff]  }
 0x25f   :  { %10655 = vrcp.f32 %v1126_v33  ;;  %v11562_v33 = vld [vmem:[#allocation4 + $0x148] ss:$16 sps:$4 sm:$0xff]  }
 0x260   :  { %13393 = vst [vmem:[#allocation20_spill] sm:$0xff] %v11562_v33 }
 0x267   :  { %v10652_v30 = vpop.eup %10651 }
 0x268   :  { %v10654_v31 = vpop.eup %10653  ;;  %v1130_v32 = vmul.f32 %v10652_v30, %v10650_v29  ;;  %v11550_v29 = vld [vmem:[#allocation4 + $0x128] ss:$16 sps:$4 sm:$0xff]   ;;  %v11556_v30 = vld [vmem:[#allocation4 + $0x144] ss:$16 sps:$4 sm:$0xff]  }
 0x269   :  { %v1129_v34 = vmul.f32 %v10654_v31, %v11415_v46  ;;  %v10656_v36 = vpop.eup %10655  ;;  %v11558_v31 = vld [vmem:[#allocation4 + $0x14c] ss:$16 sps:$4 sm:$0xff]  }
 0x26b   :  { %v11437_v35 = vadd.f32 %v1130_v32, %v1129_v34  ;;  %v11560_v32 = vld [vmem:[#allocation4 + $0x140] ss:$16 sps:$4 sm:$0xff]   ;;  %v11568_v34 = vld [vmem:[#allocation4 + $0x164] ss:$16 sps:$4 sm:$0xff]  }
 0x26c   :  { %13394 = vst [vmem:[#allocation21_spill] sm:$0xff] %v11568_v34 }
 0x26d   :  { %10657 = vtanh.f32 %v11437_v35 }
 0x277   :  { %v10658_v37 = vpop.eup %10657 }
 0x278   :  { %v1133_v38 = vmul.f32 %v10658_v37, %v10656_v36  ;;  %v11570_v36 = vld [vmem:[#allocation4 + $0x16c] ss:$16 sps:$4 sm:$0xff]   ;;  %v11572_v37 = vld [vmem:[#allocation4 + $0x160] ss:$16 sps:$4 sm:$0xff]  }
 0x279   :  { %13395 = vst [vmem:[#allocation22_spill] sm:$0xff] %v11570_v36  ;;  %13396 = vst [vmem:[#allocation23_spill] sm:$0xff] %v11572_v37 }
 0x27a   :  { %v1134_v39 = vpack.c.bf16 %v1133_v38, %v1133_v38  ;;  %v11574_v38 = vld [vmem:[#allocation4 + $0x168] ss:$16 sps:$4 sm:$0xff]  }
 0x27b   :  { %13397 = vst [vmem:[#allocation24_spill] sm:$0xff] %v11574_v38 }
 0x27c   :  { %1136 = vst [vmem:[#allocation2 + $0x1] sm:$0x1] %v1134_v39  ;;  %1137 = vst [vmem:[#allocation3] sm:$0x1] %v1134_v39  ;;  %v11580_v39 = vld [vmem:[#allocation4 + $0x184] ss:$16 sps:$4 sm:$0xff]  }
 0x27d   :  { %13398 = vst [vmem:[#allocation25_spill] sm:$0xff] %v11580_v39 }
 0x283   :  { %v8968_v40 = vld.sshfl [vmem:[#allocation3] sm:$0x11 pattern:$0x75316420] }
 0x284   :  { %v1214_v44 = vcombine.high %v8968_v40, %v8968_v40  ;;  %v1221_v46 = vrot.slane %v8968_v40, %v11267_v56  ;;  %v11582_v40 = vld [vmem:[#allocation4 + $0x18c] ss:$16 sps:$4 sm:$0xff]  }
 0x285   :  { %13399 = vst [vmem:[#allocation26_spill] sm:$0xff] %v11582_v40 }
 0x286   :  { %v1228_v47 = vrot.slane %v1214_v44, %v11267_v56  ;;  %v11584_v44 = vld [vmem:[#allocation4 + $0x180] ss:$16 sps:$4 sm:$0xff]  }
 0x287   :  { %13400 = vst [vmem:[#allocation27_spill] sm:$0xff] %v11584_v44 }
 0x288   :  { %1583 = vmatprep.mubr.bf16.mxu0 %v1228_v47  ;;  %1624 = vmatprep.mubr.bf16.mxu1 %v1228_v47  ;;  %v11586_v47 = vld [vmem:[#allocation4 + $0x188] ss:$16 sps:$4 sm:$0xff]  }
 0x289   :  { %1584 = vmatmul.mubr.bf16.vlgmr.msra.gmra.mrb[8].mxu0 %v1221_v46  ;;  %1625 = vmatmul.mubr.bf16.vlgmr.msra.gmra.mrb[8].mxu1 %v1221_v46  ;;  %13401 = vst [vmem:[#allocation28_spill] sm:$0xff] %v11586_v47  ;;  %v9036_v46 = vld [vmem:[%s13191_s0 + $0x3] sm:$0x1] }
 0x28a   :  { %2075 = vmatpush1.bf16.msra.mxu0 %v11441_v48  ;;  %2116 = vmatpush1.bf16.msra.mxu1 %v11443_v49  ;;  %1663 = vst [vmem:[#allocation3 + $0x1] sm:$0x1] %v9036_v46  ;;  %v11619_v46 = vld [vmem:[#allocation4 + $0x1e0] ss:$16 sps:$4 sm:$0xff]  }
 0x28b   :  { %2076 = vmatprep.subr.bf16.mxu0 %v11448_v50  ;;  %2117 = vmatprep.subr.bf16.mxu1 %v11450_v52  ;;  %13410 = vst [vmem:[#allocation37_spill] sm:$0xff] %v11619_v46 }
 0x28e   :  { %2077 = vmatpush1.bf16.msra.mxu0 %v11452_v53  ;;  %2118 = vmatpush1.bf16.msra.mxu1 %v11454_v54 }
 0x28f   :  { %2078 = vmatprep.subr.bf16.mxu0 %v11460_v55  ;;  %2119 = vmatprep.subr.bf16.mxu1 %v11462_v58 }
 0x292   :  { %2079 = vmatpush1.bf16.msra.mxu0 %v11464_v59  ;;  %2120 = vmatpush1.bf16.msra.mxu1 %v11466_v60 }
 0x293   :  { %2080 = vmatprep.subr.bf16.mxu0 %v11472_v41  ;;  %2121 = vmatprep.subr.bf16.mxu1 %v11474_v42 }
 0x296   :  { %2081 = vmatpush1.bf16.msra.mxu0 %v11476_v43  ;;  %2122 = vmatpush1.bf16.msra.mxu1 %v11478_v45 }
 0x297   :  { %2082 = vmatprep.subr.bf16.mxu0 %v11484_v51  ;;  %2123 = vmatprep.subr.bf16.mxu1 %v11486_v61 }
 0x29a   :  { %2083 = vmatpush1.bf16.msra.mxu0 %v11488_v1  ;;  %2124 = vmatpush1.bf16.msra.mxu1 %v11490_v57 }
 0x29b   :  { %2084 = vmatprep.subr.bf16.mxu0 %v11496_v4  ;;  %2125 = vmatprep.subr.bf16.mxu1 %v11498_v63 }
 0x29e   :  { %2085 = vmatpush1.bf16.msra.mxu0 %v11500_v5  ;;  %2126 = vmatpush1.bf16.msra.mxu1 %v11502_v6 }
 0x29f   :  { %2086 = vmatprep.subr.bf16.mxu0 %v11508_v62  ;;  %2127 = vmatprep.subr.bf16.mxu1 %v11510_v0 }
 0x2a2   :  { %2087 = vmatpush1.bf16.msra.mxu0 %v11512_v13  ;;  %2128 = vmatpush1.bf16.msra.mxu1 %v11514_v14 }
 0x2a3   :  { %2088 = vmatprep.subr.bf16.mxu0 %v11520_v15  ;;  %2129 = vmatprep.subr.bf16.mxu1 %v11522_v16 }
 0x2a6   :  { %2089 = vmatpush1.bf16.msra.mxu0 %v11524_v17  ;;  %2130 = vmatpush1.bf16.msra.mxu1 %v11526_v18 }
 0x2a7   :  { %2090 = vmatprep.subr.bf16.mxu0 %v11532_v19  ;;  %2131 = vmatprep.subr.bf16.mxu1 %v11534_v21 }
 0x2aa   :  { %2091 = vmatpush1.bf16.msra.mxu0 %v11536_v23  ;;  %2132 = vmatpush1.bf16.msra.mxu1 %v11538_v24 }
 0x2ab   :  { %2092 = vmatprep.subr.bf16.mxu0 %v11544_v25  ;;  %2133 = vmatprep.subr.bf16.mxu1 %v11546_v26 }
 0x2ae   :  { %2093 = vmatpush1.bf16.msra.mxu0 %v11548_v28  ;;  %2134 = vmatpush1.bf16.msra.mxu1 %v11550_v29 }
 0x2af   :  { %2094 = vmatprep.subr.bf16.mxu0 %v11556_v30  ;;  %2135 = vmatprep.subr.bf16.mxu1 %v11558_v31 }
 0x2b2   :  { %2095 = vmatpush1.bf16.msra.mxu0 %v11560_v32  ;;  %2136 = vmatpush1.bf16.msra.mxu1 %v11562_v33 }
 0x2b3   :  { %2096 = vmatprep.subr.bf16.mxu0 %v11568_v34  ;;  %2137 = vmatprep.subr.bf16.mxu1 %v11570_v36 }
 0x2b6   :  { %2097 = vmatpush1.bf16.msra.mxu0 %v11572_v37  ;;  %2138 = vmatpush1.bf16.msra.mxu1 %v11574_v38 }
 0x2b7   :  { %2098 = vmatprep.subr.bf16.mxu0 %v11580_v39  ;;  %2139 = vmatprep.subr.bf16.mxu1 %v11582_v40  ;;  %v11613_v40 = vld [vmem:[#allocation4 + $0x1c8] ss:$16 sps:$4 sm:$0xff]  }
 0x2b8   :  { %13409 = vst [vmem:[#allocation36_spill] sm:$0xff] %v11613_v40 }
 0x2ba   :  { %2099 = vmatpush1.bf16.msra.mxu0 %v11584_v44  ;;  %2140 = vmatpush1.bf16.msra.mxu1 %v11586_v47  ;;  %v11609_v47 = vld [vmem:[#allocation4 + $0x1cc] ss:$16 sps:$4 sm:$0xff]   ;;  %v11611_v44 = vld [vmem:[#allocation4 + $0x1c0] ss:$16 sps:$4 sm:$0xff]  }
 0x2bb   :  { %2100 = vmatprep.subr.bf16.mxu0 %v11595_v22  ;;  %2141 = vmatprep.subr.bf16.mxu1 %v11597_v12  ;;  %13407 = vst [vmem:[#allocation34_spill] sm:$0xff] %v11609_v47  ;;  %13408 = vst [vmem:[#allocation35_spill] sm:$0xff] %v11611_v44  ;;  %v11625_v12 = vld [vmem:[#allocation4 + $0x1ec] ss:$16 sps:$4 sm:$0xff]  }
 0x2bc   :  { %13413 = vst [vmem:[#allocation40_spill] sm:$0xff] %v11625_v12 }
 0x2be   :  { %2101 = vmatpush1.bf16.msra.mxu0 %v11599_v9  ;;  %2142 = vmatpush1.bf16.msra.mxu1 %v11601_v8  ;;  %v11621_v9 = vld [vmem:[#allocation4 + $0x1e4] ss:$16 sps:$4 sm:$0xff]   ;;  %v11623_v8 = vld [vmem:[#allocation4 + $0x1e8] ss:$16 sps:$4 sm:$0xff]  }
 0x2bf   :  { %2102 = vmatprep.subr.bf16.mxu0 %v11607_v7  ;;  %2143 = vmatprep.subr.bf16.mxu1 %v11609_v47  ;;  %13411 = vst [vmem:[#allocation38_spill] sm:$0xff] %v11621_v9  ;;  %13412 = vst [vmem:[#allocation39_spill] sm:$0xff] %v11623_v8 }
 0x2c2   :  { %2103 = vmatpush1.bf16.msra.mxu0 %v11611_v44  ;;  %2144 = vmatpush1.bf16.msra.mxu1 %v11613_v40 }
 0x2c3   :  { %2104 = vmatprep.subr.bf16.mxu0 %v11621_v9  ;;  %2145 = vmatprep.subr.bf16.mxu1 %v11625_v12 }
 0x2c6   :  { %2105 = vmatpush1.bf16.msra.mxu0 %v11619_v46  ;;  %2146 = vmatpush1.bf16.msra.mxu1 %v11623_v8 }
 0x2c7   :  { %2597 = vmatprep.subr.bf16.mxu0 %v11426_v2  ;;  %2638 = vmatprep.subr.bf16.mxu1 %v11428_v3 }
 0x35c   :  { %v1585_v40 = vpop.f32.mrb[8].mxu0  ;;  %v1626_v44 = vpop.f32.mrb[8].mxu1 }
 0x35d   :  { %v1586_v47 = vadd.f32 %v1585_v40, %v11395_v10  ;;  %v1587_v7 = vpop.f32.mrb[9].mxu0  ;;  %v1628_v22 = vpop.f32.mrb[9].mxu1  ;;  %v1627_v3 = vadd.f32 %v1626_v44, %v11412_v27 }
 0x35e   :  { %v1588_v39 = vadd.f32 %v1587_v7, %v11399_v11  ;;  %v1589_v38 = vpop.f32.mrb[10].mxu0  ;;  %v1630_v9 = vpop.f32.mrb[10].mxu1  ;;  %v1629_v2 = vadd.f32 %v1628_v22, %v11406_v20 }
 0x35f   :  { %v9033_v37 = vmul.f32 -1.442695, %v1586_v47  ;;  %v1590_v12 = vpop.f32.mrb[11].mxu0  ;;  %v1631_v36 = vpop.f32.mrb[11].mxu1 }
 0x360   :  { %v9034_v46 = vmul.f32 -1.442695, %v1588_v39  ;;  %v9035_v8 = vmul.f32 -1.442695, %v1629_v2 }
 0x361   :  { %10659 = vpow2.f32 %v9033_v37 }
 0x362   :  { %10661 = vpow2.f32 %v9034_v46  ;;  %v13415_v46 = vld [vmem:[#allocation21_spill] sm:$0xff] }
 0x363   :  { %10663 = vpow2.f32 %v9035_v8 }
 0x364   :  { %10665 = vtanh.f32 %v1627_v3 }
 0x36b   :  { %v10660_v34 = vpop.eup %10659 }
 0x36c   :  { %v10662_v33 = vpop.eup %10661  ;;  %v1636_v40 = vadd.f32 1.0, %v10660_v34 }
 0x36d   :  { %v1642_v10 = vadd.f32 1.0, %v10662_v33  ;;  %v10664_v7 = vpop.eup %10663 }
 0x36e   :  { %10667 = vrcp.f32 %v1636_v40  ;;  %v10666_v9 = vpop.eup %10665  ;;  %v1649_v37 = vadd.f32 1.0, %v10664_v7  ;;  %v13416_v40 = vld [vmem:[#allocation22_spill] sm:$0xff]  ;;  %v13417_v7 = vld [vmem:[#allocation23_spill] sm:$0xff] }
 0x36f   :  { %10669 = vrcp.f32 %v1642_v10 }
 0x370   :  { %10671 = vrcp.f32 %v1649_v37  ;;  %v13422_v37 = vld [vmem:[#allocation28_spill] sm:$0xff] }
 0x378   :  { %v10668_v12 = vpop.eup %10667 }
 0x379   :  { %v10670_v36 = vpop.eup %10669  ;;  %v1653_v38 = vmul.f32 %v10668_v12, %v10666_v9  ;;  %v13418_v9 = vld [vmem:[#allocation24_spill] sm:$0xff]  ;;  %v13419_v12 = vld [vmem:[#allocation25_spill] sm:$0xff] }
 0x37a   :  { %v1652_v39 = vmul.f32 %v10670_v36, %v11437_v35  ;;  %v10672_v2 = vpop.eup %10671  ;;  %v13414_v35 = vld [vmem:[#allocation20_spill] sm:$0xff]  ;;  %v13420_v36 = vld [vmem:[#allocation26_spill] sm:$0xff] }
 0x37c   :  { %v11638_v22 = vadd.f32 %v1653_v38, %v1652_v39  ;;  %v13421_v38 = vld [vmem:[#allocation27_spill] sm:$0xff]  ;;  %v13423_v39 = vld [vmem:[#allocation29_spill] sm:$0xff] }
 0x37e   :  { %10673 = vtanh.f32 %v11638_v22 }
 0x388   :  { %v10674_v34 = vpop.eup %10673 }
 0x389   :  { %v1656_v8 = vmul.f32 %v10674_v34, %v10672_v2  ;;  %v13424_v2 = vld [vmem:[#allocation30_spill] sm:$0xff]  ;;  %v13425_v34 = vld [vmem:[#allocation31_spill] sm:$0xff] }
 0x38b   :  { %v1657_v3 = vpack.c.bf16 %v1656_v8, %v1656_v8  ;;  %v13426_v8 = vld [vmem:[#allocation32_spill] sm:$0xff] }
 0x38d   :  { %1659 = vst [vmem:[#allocation2 + $0x2] sm:$0x1] %v1657_v3  ;;  %1660 = vst [vmem:[#allocation3] sm:$0x1] %v1657_v3  ;;  %v13427_v3 = vld [vmem:[#allocation33_spill] sm:$0xff] }
 0x394   :  { %v9037_v10 = vld.sshfl [vmem:[#allocation3] sm:$0x11 pattern:$0x75316420] }
 0x395   :  { %v1737_v33 = vcombine.high %v9037_v10, %v9037_v10  ;;  %v1744_v47 = vrot.slane %v9037_v10, %v11267_v56  ;;  %v13428_v10 = vld [vmem:[#allocation34_spill] sm:$0xff] }
 0x397   :  { %v1751_v44 = vrot.slane %v1737_v33, %v11267_v56  ;;  %v13429_v33 = vld [vmem:[#allocation35_spill] sm:$0xff] }
 0x399   :  { %2106 = vmatprep.mubr.bf16.mxu0 %v1751_v44  ;;  %2147 = vmatprep.mubr.bf16.mxu1 %v1751_v44  ;;  %v13430_v44 = vld [vmem:[#allocation36_spill] sm:$0xff] }
 0x39a   :  { %2107 = vmatmul.mubr.bf16.vlgmr.msra.gmra.mrb[12].mxu0 %v1744_v47  ;;  %2148 = vmatmul.mubr.bf16.vlgmr.msra.gmra.mrb[12].mxu1 %v1744_v47  ;;  %v13431_v47 = vld [vmem:[#allocation38_spill] sm:$0xff] }
 0x39b   :  { %2598 = vmatpush1.bf16.msra.mxu0 %v11441_v48  ;;  %2639 = vmatpush1.bf16.msra.mxu1 %v11443_v49 }
 0x39c   :  { %2599 = vmatprep.subr.bf16.mxu0 %v11448_v50  ;;  %2640 = vmatprep.subr.bf16.mxu1 %v11450_v52 }
 0x39f   :  { %2600 = vmatpush1.bf16.msra.mxu0 %v11452_v53  ;;  %2641 = vmatpush1.bf16.msra.mxu1 %v11454_v54 }
 0x3a0   :  { %2601 = vmatprep.subr.bf16.mxu0 %v11460_v55  ;;  %2642 = vmatprep.subr.bf16.mxu1 %v11462_v58 }
 0x3a3   :  { %2602 = vmatpush1.bf16.msra.mxu0 %v11464_v59  ;;  %2643 = vmatpush1.bf16.msra.mxu1 %v11466_v60 }
 0x3a4   :  { %2603 = vmatprep.subr.bf16.mxu0 %v11472_v41  ;;  %2644 = vmatprep.subr.bf16.mxu1 %v11474_v42 }
 0x3a7   :  { %2604 = vmatpush1.bf16.msra.mxu0 %v11476_v43  ;;  %2645 = vmatpush1.bf16.msra.mxu1 %v11478_v45 }
 0x3a8   :  { %2605 = vmatprep.subr.bf16.mxu0 %v11484_v51  ;;  %2646 = vmatprep.subr.bf16.mxu1 %v11486_v61 }
 0x3ab   :  { %2606 = vmatpush1.bf16.msra.mxu0 %v11488_v1  ;;  %2647 = vmatpush1.bf16.msra.mxu1 %v11490_v57 }
 0x3ac   :  { %2607 = vmatprep.subr.bf16.mxu0 %v11496_v4  ;;  %2648 = vmatprep.subr.bf16.mxu1 %v11498_v63 }
 0x3af   :  { %2608 = vmatpush1.bf16.msra.mxu0 %v11500_v5  ;;  %2649 = vmatpush1.bf16.msra.mxu1 %v11502_v6 }
 0x3b0   :  { %2609 = vmatprep.subr.bf16.mxu0 %v11508_v62  ;;  %2650 = vmatprep.subr.bf16.mxu1 %v11510_v0 }
 0x3b3   :  { %2610 = vmatpush1.bf16.msra.mxu0 %v11512_v13  ;;  %2651 = vmatpush1.bf16.msra.mxu1 %v11514_v14 }
 0x3b4   :  { %2611 = vmatprep.subr.bf16.mxu0 %v11520_v15  ;;  %2652 = vmatprep.subr.bf16.mxu1 %v11522_v16 }
 0x3b7   :  { %2612 = vmatpush1.bf16.msra.mxu0 %v11524_v17  ;;  %2653 = vmatpush1.bf16.msra.mxu1 %v11526_v18 }
 0x3b8   :  { %2613 = vmatprep.subr.bf16.mxu0 %v11532_v19  ;;  %2654 = vmatprep.subr.bf16.mxu1 %v11534_v21 }
 0x3bb   :  { %2614 = vmatpush1.bf16.msra.mxu0 %v11536_v23  ;;  %2655 = vmatpush1.bf16.msra.mxu1 %v11538_v24 }
 0x3bc   :  { %2615 = vmatprep.subr.bf16.mxu0 %v11544_v25  ;;  %2656 = vmatprep.subr.bf16.mxu1 %v11546_v26 }
 0x3bf   :  { %2616 = vmatpush1.bf16.msra.mxu0 %v11548_v28  ;;  %2657 = vmatpush1.bf16.msra.mxu1 %v11550_v29 }
 0x3c0   :  { %2617 = vmatprep.subr.bf16.mxu0 %v11556_v30  ;;  %2658 = vmatprep.subr.bf16.mxu1 %v11558_v31 }
 0x3c3   :  { %2618 = vmatpush1.bf16.msra.mxu0 %v11560_v32  ;;  %2659 = vmatpush1.bf16.msra.mxu1 %v13414_v35 }
 0x3c4   :  { %2619 = vmatprep.subr.bf16.mxu0 %v13415_v46  ;;  %2660 = vmatprep.subr.bf16.mxu1 %v13416_v40 }
 0x3c7   :  { %2620 = vmatpush1.bf16.msra.mxu0 %v13417_v7  ;;  %2661 = vmatpush1.bf16.msra.mxu1 %v13418_v9 }
 0x3c8   :  { %2621 = vmatprep.subr.bf16.mxu0 %v13419_v12  ;;  %2662 = vmatprep.subr.bf16.mxu1 %v13420_v36 }
 0x3cb   :  { %2622 = vmatpush1.bf16.msra.mxu0 %v13421_v38  ;;  %2663 = vmatpush1.bf16.msra.mxu1 %v13422_v37  ;;  %v13432_v38 = vld [vmem:[#allocation40_spill] sm:$0xff]  ;;  %v13433_v37 = vld [vmem:[#allocation37_spill] sm:$0xff] }
 0x3cc   :  { %2623 = vmatprep.subr.bf16.mxu0 %v13423_v39  ;;  %2664 = vmatprep.subr.bf16.mxu1 %v13424_v2  ;;  %v13434_v39 = vld [vmem:[#allocation39_spill] sm:$0xff]  ;;  %v13435_v2 = vld [vmem:[#allocation18_spill] sm:$0xff] }
 0x3cf   :  { %2624 = vmatpush1.bf16.msra.mxu0 %v13425_v34  ;;  %2665 = vmatpush1.bf16.msra.mxu1 %v13426_v8  ;;  %v13436_v34 = vld [vmem:[#allocation19_spill] sm:$0xff] }
 0x3d0   :  { %2625 = vmatprep.subr.bf16.mxu0 %v13427_v3  ;;  %2666 = vmatprep.subr.bf16.mxu1 %v13428_v10  ;;  %v9105_v10 = vld [vmem:[%s13191_s0 + $0x4] sm:$0x1] }
 0x3d1   :  { %2186 = vst [vmem:[#allocation3 + $0x1] sm:$0x1] %v9105_v10 }
 0x3d3   :  { %2626 = vmatpush1.bf16.msra.mxu0 %v13429_v33  ;;  %2667 = vmatpush1.bf16.msra.mxu1 %v13430_v44  ;;  %v13437_v44 = vld [vmem:[#allocation14_spill] sm:$0xff] }
 0x3d4   :  { %2627 = vmatprep.subr.bf16.mxu0 %v13431_v47  ;;  %2668 = vmatprep.subr.bf16.mxu1 %v13432_v38 }
 0x3d7   :  { %2628 = vmatpush1.bf16.msra.mxu0 %v13433_v37  ;;  %2669 = vmatpush1.bf16.msra.mxu1 %v13434_v39 }
 0x3d8   :  { %3120 = vmatprep.subr.bf16.mxu0 %v13435_v2  ;;  %3161 = vmatprep.subr.bf16.mxu1 %v13436_v34 }
 0x46d   :  { %v2108_v33 = vpop.f32.mrb[12].mxu0  ;;  %v2149_v3 = vpop.f32.mrb[12].mxu1 }
 0x46e   :  { %v2109_v8 = vadd.f32 %v2108_v33, %v13437_v44  ;;  %v2110_v47 = vpop.f32.mrb[13].mxu0  ;;  %v2151_v36 = vpop.f32.mrb[13].mxu1  ;;  %v2150_v10 = vadd.f32 %v2149_v3, %v11412_v27 }
 0x46f   :  { %v2111_v38 = vadd.f32 %v2110_v47, %v11399_v11  ;;  %v2112_v37 = vpop.f32.mrb[14].mxu0  ;;  %v2153_v12 = vpop.f32.mrb[14].mxu1  ;;  %v2152_v34 = vadd.f32 %v2151_v36, %v11406_v20 }
 0x470   :  { %v9102_v39 = vmul.f32 -1.442695, %v2109_v8  ;;  %v2113_v9 = vpop.f32.mrb[15].mxu0  ;;  %v2154_v2 = vpop.f32.mrb[15].mxu1 }
 0x471   :  { %v9103_v7 = vmul.f32 -1.442695, %v2111_v38  ;;  %v9104_v40 = vmul.f32 -1.442695, %v2152_v34 }
 0x472   :  { %10675 = vpow2.f32 %v9102_v39 }
 0x473   :  { %10677 = vpow2.f32 %v9103_v7 }
 0x474   :  { %10679 = vpow2.f32 %v9104_v40 }
 0x475   :  { %10681 = vtanh.f32 %v2150_v10 }
 0x47c   :  { %v10676_v46 = vpop.eup %10675 }
 0x47d   :  { %v10678_v35 = vpop.eup %10677  ;;  %v2159_v33 = vadd.f32 1.0, %v10676_v46 }
 0x47e   :  { %v2165_v44 = vadd.f32 1.0, %v10678_v35  ;;  %v10680_v12 = vpop.eup %10679 }
 0x47f   :  { %10683 = vrcp.f32 %v2159_v33  ;;  %v10682_v37 = vpop.eup %10681  ;;  %v2172_v39 = vadd.f32 1.0, %v10680_v12 }
 0x480   :  { %10685 = vrcp.f32 %v2165_v44 }
 0x481   :  { %10687 = vrcp.f32 %v2172_v39 }
 0x489   :  { %v10684_v9 = vpop.eup %10683 }
 0x48a   :  { %v10686_v8 = vpop.eup %10685  ;;  %v2176_v38 = vmul.f32 %v10684_v9, %v10682_v37 }
 0x48b   :  { %v2175_v7 = vmul.f32 %v10686_v8, %v11638_v22  ;;  %v10688_v3 = vpop.eup %10687 }
 0x48d   :  { %v11715_v36 = vadd.f32 %v2176_v38, %v2175_v7 }
 0x48f   :  { %10689 = vtanh.f32 %v11715_v36 }
 0x499   :  { %v10690_v46 = vpop.eup %10689 }
 0x49a   :  { %v2179_v40 = vmul.f32 %v10690_v46, %v10688_v3 }
 0x49c   :  { %v2180_v47 = vpack.c.bf16 %v2179_v40, %v2179_v40 }
 0x49e   :  { %2182 = vst [vmem:[#allocation2 + $0x3] sm:$0x1] %v2180_v47  ;;  %2183 = vst [vmem:[#allocation3] sm:$0x1] %v2180_v47 }
 0x4a5   :  { %v9106_v35 = vld.sshfl [vmem:[#allocation3] sm:$0x11 pattern:$0x75316420] }
 0x4a6   :  { %v2260_v44 = vcombine.high %v9106_v35, %v9106_v35  ;;  %v2267_v34 = vrot.slane %v9106_v35, %v11267_v56 }
 0x4a8   :  { %v2274_v2 = vrot.slane %v2260_v44, %v11267_v56 }
 0x4aa   :  { %2629 = vmatprep.mubr.bf16.mxu0 %v2274_v2  ;;  %2670 = vmatprep.mubr.bf16.mxu1 %v2274_v2 }
 0x4ab   :  { %2630 = vmatmul.mubr.bf16.vlgmr.msra.gmra.mrb[16].mxu0 %v2267_v34  ;;  %2671 = vmatmul.mubr.bf16.vlgmr.msra.gmra.mrb[16].mxu1 %v2267_v34 }
 0x4ac   :  { %3121 = vmatpush1.bf16.msra.mxu0 %v11441_v48  ;;  %3162 = vmatpush1.bf16.msra.mxu1 %v11443_v49  ;;  %v13438_v48 = vld [vmem:[#allocation20_spill] sm:$0xff]  ;;  %v13439_v49 = vld [vmem:[#allocation21_spill] sm:$0xff] }
 0x4ad   :  { %3122 = vmatprep.subr.bf16.mxu0 %v11448_v50  ;;  %3163 = vmatprep.subr.bf16.mxu1 %v11450_v52  ;;  %v13440_v50 = vld [vmem:[#allocation22_spill] sm:$0xff]  ;;  %v13441_v52 = vld [vmem:[#allocation23_spill] sm:$0xff] }
 0x4b0   :  { %3123 = vmatpush1.bf16.msra.mxu0 %v11452_v53  ;;  %3164 = vmatpush1.bf16.msra.mxu1 %v11454_v54  ;;  %v13442_v53 = vld [vmem:[#allocation24_spill] sm:$0xff]  ;;  %v13443_v54 = vld [vmem:[#allocation25_spill] sm:$0xff] }
 0x4b1   :  { %3124 = vmatprep.subr.bf16.mxu0 %v11460_v55  ;;  %3165 = vmatprep.subr.bf16.mxu1 %v11462_v58  ;;  %v13444_v55 = vld [vmem:[#allocation26_spill] sm:$0xff]  ;;  %v13445_v58 = vld [vmem:[#allocation27_spill] sm:$0xff] }
 0x4b4   :  { %3125 = vmatpush1.bf16.msra.mxu0 %v11464_v59  ;;  %3166 = vmatpush1.bf16.msra.mxu1 %v11466_v60  ;;  %v13446_v59 = vld [vmem:[#allocation28_spill] sm:$0xff]  ;;  %v13447_v60 = vld [vmem:[#allocation29_spill] sm:$0xff] }
 0x4b5   :  { %3126 = vmatprep.subr.bf16.mxu0 %v11472_v41  ;;  %3167 = vmatprep.subr.bf16.mxu1 %v11474_v42  ;;  %v13448_v41 = vld [vmem:[#allocation30_spill] sm:$0xff]  ;;  %v13449_v42 = vld [vmem:[#allocation31_spill] sm:$0xff] }
 0x4b8   :  { %3127 = vmatpush1.bf16.msra.mxu0 %v11476_v43  ;;  %3168 = vmatpush1.bf16.msra.mxu1 %v11478_v45  ;;  %v13450_v43 = vld [vmem:[#allocation32_spill] sm:$0xff]  ;;  %v13451_v45 = vld [vmem:[#allocation33_spill] sm:$0xff] }
 0x4b9   :  { %3128 = vmatprep.subr.bf16.mxu0 %v11484_v51  ;;  %3169 = vmatprep.subr.bf16.mxu1 %v11486_v61  ;;  %v13452_v51 = vld [vmem:[#allocation34_spill] sm:$0xff]  ;;  %v13453_v61 = vld [vmem:[#allocation35_spill] sm:$0xff] }
 0x4bc   :  { %3129 = vmatpush1.bf16.msra.mxu0 %v11488_v1  ;;  %3170 = vmatpush1.bf16.msra.mxu1 %v11490_v57  ;;  %v13454_v1 = vld [vmem:[#allocation36_spill] sm:$0xff]  ;;  %v13455_v57 = vld [vmem:[#allocation38_spill] sm:$0xff] }
 0x4bd   :  { %3130 = vmatprep.subr.bf16.mxu0 %v11496_v4  ;;  %3171 = vmatprep.subr.bf16.mxu1 %v11498_v63  ;;  %v13456_v4 = vld [vmem:[#allocation40_spill] sm:$0xff]  ;;  %v13457_v63 = vld [vmem:[#allocation37_spill] sm:$0xff] }
 0x4c0   :  { %3131 = vmatpush1.bf16.msra.mxu0 %v11500_v5  ;;  %3172 = vmatpush1.bf16.msra.mxu1 %v11502_v6  ;;  %v13458_v5 = vld [vmem:[#allocation39_spill] sm:$0xff]  ;;  %v9174_v6 = vld [vmem:[%s13191_s0 + $0x5] sm:$0x1] }
 0x4c1   :  { %3132 = vmatprep.subr.bf16.mxu0 %v11508_v62  ;;  %3173 = vmatprep.subr.bf16.mxu1 %v11510_v0  ;;  %2709 = vst [vmem:[#allocation3 + $0x1] sm:$0x1] %v9174_v6  ;;  %v11785_v62 = vld [vmem:[#allocation4 + $0x4] ss:$16 sps:$4 sm:$0xff]   ;;  %v11787_v0 = vld [vmem:[#allocation4 + $0xc] ss:$16 sps:$4 sm:$0xff]  }
 0x4c2   :  { %v11861_v6 = vld [vmem:[#allocation4 + $0xa8] ss:$16 sps:$4 sm:$0xff]  }
 0x4c4   :  { %3133 = vmatpush1.bf16.msra.mxu0 %v11512_v13  ;;  %3174 = vmatpush1.bf16.msra.mxu1 %v11514_v14 }
 0x4c5   :  { %3134 = vmatprep.subr.bf16.mxu0 %v11520_v15  ;;  %3175 = vmatprep.subr.bf16.mxu1 %v11522_v16  ;;  %v13459_v15 = vld [vmem:[#allocation14_spill] sm:$0xff] }
 0x4c8   :  { %3135 = vmatpush1.bf16.msra.mxu0 %v11524_v17  ;;  %3176 = vmatpush1.bf16.msra.mxu1 %v11526_v18 }
 0x4c9   :  { %3136 = vmatprep.subr.bf16.mxu0 %v11532_v19  ;;  %3177 = vmatprep.subr.bf16.mxu1 %v11534_v21 }
 0x4cc   :  { %3137 = vmatpush1.bf16.msra.mxu0 %v11536_v23  ;;  %3178 = vmatpush1.bf16.msra.mxu1 %v11538_v24 }
 0x4cd   :  { %3138 = vmatprep.subr.bf16.mxu0 %v11544_v25  ;;  %3179 = vmatprep.subr.bf16.mxu1 %v11546_v26 }
 0x4d0   :  { %3139 = vmatpush1.bf16.msra.mxu0 %v11548_v28  ;;  %3180 = vmatpush1.bf16.msra.mxu1 %v11550_v29 }
 0x4d1   :  { %3140 = vmatprep.subr.bf16.mxu0 %v11556_v30  ;;  %3181 = vmatprep.subr.bf16.mxu1 %v11558_v31 }
 0x4d4   :  { %3141 = vmatpush1.bf16.msra.mxu0 %v11560_v32  ;;  %3182 = vmatpush1.bf16.msra.mxu1 %v13438_v48  ;;  %v11800_v48 = vld [vmem:[#allocation4] ss:$16 sps:$4 sm:$0xff]  }
 0x4d5   :  { %3142 = vmatprep.subr.bf16.mxu0 %v13439_v49  ;;  %3183 = vmatprep.subr.bf16.mxu1 %v13440_v50  ;;  %v11802_v49 = vld [vmem:[#allocation4 + $0x8] ss:$16 sps:$4 sm:$0xff]   ;;  %v11807_v50 = vld [vmem:[#allocation4 + $0x24] ss:$16 sps:$4 sm:$0xff]  }
 0x4d8   :  { %3143 = vmatpush1.bf16.msra.mxu0 %v13441_v52  ;;  %3184 = vmatpush1.bf16.msra.mxu1 %v13442_v53  ;;  %v11809_v52 = vld [vmem:[#allocation4 + $0x2c] ss:$16 sps:$4 sm:$0xff]   ;;  %v11811_v53 = vld [vmem:[#allocation4 + $0x20] ss:$16 sps:$4 sm:$0xff]  }
 0x4d9   :  { %3144 = vmatprep.subr.bf16.mxu0 %v13443_v54  ;;  %3185 = vmatprep.subr.bf16.mxu1 %v13444_v55  ;;  %v11813_v54 = vld [vmem:[#allocation4 + $0x28] ss:$16 sps:$4 sm:$0xff]   ;;  %v11819_v55 = vld [vmem:[#allocation4 + $0x44] ss:$16 sps:$4 sm:$0xff]  }
 0x4dc   :  { %3145 = vmatpush1.bf16.msra.mxu0 %v13445_v58  ;;  %3186 = vmatpush1.bf16.msra.mxu1 %v13446_v59  ;;  %v11821_v58 = vld [vmem:[#allocation4 + $0x4c] ss:$16 sps:$4 sm:$0xff]   ;;  %v11823_v59 = vld [vmem:[#allocation4 + $0x40] ss:$16 sps:$4 sm:$0xff]  }
 0x4dd   :  { %3146 = vmatprep.subr.bf16.mxu0 %v13447_v60  ;;  %3187 = vmatprep.subr.bf16.mxu1 %v13448_v41  ;;  %v11825_v60 = vld [vmem:[#allocation4 + $0x48] ss:$16 sps:$4 sm:$0xff]   ;;  %v11831_v41 = vld [vmem:[#allocation4 + $0x64] ss:$16 sps:$4 sm:$0xff]  }
 0x4e0   :  { %3147 = vmatpush1.bf16.msra.mxu0 %v13449_v42  ;;  %3188 = vmatpush1.bf16.msra.mxu1 %v13450_v43  ;;  %v11833_v42 = vld [vmem:[#allocation4 + $0x6c] ss:$16 sps:$4 sm:$0xff]   ;;  %v11835_v43 = vld [vmem:[#allocation4 + $0x60] ss:$16 sps:$4 sm:$0xff]  }
 0x4e1   :  { %3148 = vmatprep.subr.bf16.mxu0 %v13451_v45  ;;  %3189 = vmatprep.subr.bf16.mxu1 %v13452_v51  ;;  %v11837_v45 = vld [vmem:[#allocation4 + $0x68] ss:$16 sps:$4 sm:$0xff]   ;;  %v11843_v51 = vld [vmem:[#allocation4 + $0x84] ss:$16 sps:$4 sm:$0xff]  }
 0x4e4   :  { %3149 = vmatpush1.bf16.msra.mxu0 %v13453_v61  ;;  %3190 = vmatpush1.bf16.msra.mxu1 %v13454_v1  ;;  %v11845_v61 = vld [vmem:[#allocation4 + $0x8c] ss:$16 sps:$4 sm:$0xff]   ;;  %v11847_v1 = vld [vmem:[#allocation4 + $0x80] ss:$16 sps:$4 sm:$0xff]  }
 0x4e5   :  { %3150 = vmatprep.subr.bf16.mxu0 %v13455_v57  ;;  %3191 = vmatprep.subr.bf16.mxu1 %v13456_v4  ;;  %v11849_v57 = vld [vmem:[#allocation4 + $0x88] ss:$16 sps:$4 sm:$0xff]   ;;  %v11855_v4 = vld [vmem:[#allocation4 + $0xa4] ss:$16 sps:$4 sm:$0xff]  }
 0x4e8   :  { %3151 = vmatpush1.bf16.msra.mxu0 %v13457_v63  ;;  %3192 = vmatpush1.bf16.msra.mxu1 %v13458_v5  ;;  %v11857_v63 = vld [vmem:[#allocation4 + $0xac] ss:$16 sps:$4 sm:$0xff]   ;;  %v11859_v5 = vld [vmem:[#allocation4 + $0xa0] ss:$16 sps:$4 sm:$0xff]  }
 0x4e9   :  { %3643 = vmatprep.subr.bf16.mxu0 %v11785_v62  ;;  %3684 = vmatprep.subr.bf16.mxu1 %v11787_v0 }
 0x57e   :  { %v2631_v13 = vpop.f32.mrb[16].mxu0  ;;  %v2672_v14 = vpop.f32.mrb[16].mxu1 }
 0x57f   :  { %v2632_v16 = vadd.f32 %v2631_v13, %v13459_v15  ;;  %v2633_v17 = vpop.f32.mrb[17].mxu0  ;;  %v2674_v18 = vpop.f32.mrb[17].mxu1  ;;  %v2673_v31 = vadd.f32 %v2672_v14, %v11412_v27  ;;  %v11867_v13 = vld [vmem:[#allocation4 + $0xc4] ss:$16 sps:$4 sm:$0xff]   ;;  %v11869_v14 = vld [vmem:[#allocation4 + $0xcc] ss:$16 sps:$4 sm:$0xff]  }
 0x580   :  { %v2634_v19 = vadd.f32 %v2633_v17, %v11399_v11  ;;  %v2635_v21 = vpop.f32.mrb[18].mxu0  ;;  %v2676_v23 = vpop.f32.mrb[18].mxu1  ;;  %v2675_v29 = vadd.f32 %v2674_v18, %v11406_v20  ;;  %v11873_v17 = vld [vmem:[#allocation4 + $0xc8] ss:$16 sps:$4 sm:$0xff]   ;;  %v11879_v18 = vld [vmem:[#allocation4 + $0xe4] ss:$16 sps:$4 sm:$0xff]  }
 0x581   :  { %v9171_v24 = vmul.f32 -1.442695, %v2632_v16  ;;  %v2636_v25 = vpop.f32.mrb[19].mxu0  ;;  %v2677_v26 = vpop.f32.mrb[19].mxu1  ;;  %v11871_v16 = vld [vmem:[#allocation4 + $0xc0] ss:$16 sps:$4 sm:$0xff]  }
 0x582   :  { %v9172_v28 = vmul.f32 -1.442695, %v2634_v19  ;;  %v9173_v30 = vmul.f32 -1.442695, %v2675_v29  ;;  %v11881_v19 = vld [vmem:[#allocation4 + $0xec] ss:$16 sps:$4 sm:$0xff]  }
 0x583   :  { %10691 = vpow2.f32 %v9171_v24  ;;  %v11883_v21 = vld [vmem:[#allocation4 + $0xe0] ss:$16 sps:$4 sm:$0xff]   ;;  %v11885_v23 = vld [vmem:[#allocation4 + $0xe8] ss:$16 sps:$4 sm:$0xff]   ;;  %v11891_v24 = vld [vmem:[#allocation4 + $0x104] ss:$16 sps:$4 sm:$0xff]  }
 0x584   :  { %10693 = vpow2.f32 %v9172_v28  ;;  %v11893_v25 = vld [vmem:[#allocation4 + $0x10c] ss:$16 sps:$4 sm:$0xff]   ;;  %v11895_v26 = vld [vmem:[#allocation4 + $0x100] ss:$16 sps:$4 sm:$0xff]   ;;  %v11897_v28 = vld [vmem:[#allocation4 + $0x108] ss:$16 sps:$4 sm:$0xff]  }
 0x585   :  { %10695 = vpow2.f32 %v9173_v30  ;;  %v11903_v29 = vld [vmem:[#allocation4 + $0x124] ss:$16 sps:$4 sm:$0xff]   ;;  %v11905_v30 = vld [vmem:[#allocation4 + $0x12c] ss:$16 sps:$4 sm:$0xff]  }
 0x586   :  { %10697 = vtanh.f32 %v2673_v31  ;;  %v11907_v31 = vld [vmem:[#allocation4 + $0x120] ss:$16 sps:$4 sm:$0xff]  }
 0x58d   :  { %v10692_v32 = vpop.eup %10691 }
 0x58e   :  { %v10694_v22 = vpop.eup %10693  ;;  %v2682_v10 = vadd.f32 1.0, %v10692_v32  ;;  %v11909_v32 = vld [vmem:[#allocation4 + $0x128] ss:$16 sps:$4 sm:$0xff]  }
 0x58f   :  { %v2688_v33 = vadd.f32 1.0, %v10694_v22  ;;  %v10696_v12 = vpop.eup %10695  ;;  %v11915_v22 = vld [vmem:[#allocation4 + $0x144] ss:$16 sps:$4 sm:$0xff]  }
 0x590   :  { %10699 = vrcp.f32 %v2682_v10  ;;  %v10698_v37 = vpop.eup %10697  ;;  %v2695_v39 = vadd.f32 1.0, %v10696_v12  ;;  %v11917_v10 = vld [vmem:[#allocation4 + $0x14c] ss:$16 sps:$4 sm:$0xff]   ;;  %v11921_v12 = vld [vmem:[#allocation4 + $0x148] ss:$16 sps:$4 sm:$0xff]  }
 0x591   :  { %10701 = vrcp.f32 %v2688_v33  ;;  %v11919_v33 = vld [vmem:[#allocation4 + $0x140] ss:$16 sps:$4 sm:$0xff]   ;;  %13460 = vst [vmem:[#allocation18_spill] sm:$0xff] %v11921_v12 }
 0x592   :  { %10703 = vrcp.f32 %v2695_v39  ;;  %v11939_v39 = vld [vmem:[#allocation4 + $0x184] ss:$16 sps:$4 sm:$0xff]  }
 0x593   :  { %13465 = vst [vmem:[#allocation23_spill] sm:$0xff] %v11939_v39 }
 0x59a   :  { %v10700_v9 = vpop.eup %10699 }
 0x59b   :  { %v10702_v8 = vpop.eup %10701  ;;  %v2699_v38 = vmul.f32 %v10700_v9, %v10698_v37  ;;  %v11927_v37 = vld [vmem:[#allocation4 + $0x164] ss:$16 sps:$4 sm:$0xff]   ;;  %v11929_v9 = vld [vmem:[#allocation4 + $0x16c] ss:$16 sps:$4 sm:$0xff]  }
 0x59c   :  { %v2698_v7 = vmul.f32 %v10702_v8, %v11715_v36  ;;  %v10704_v46 = vpop.eup %10703  ;;  %13461 = vst [vmem:[#allocation19_spill] sm:$0xff] %v11927_v37  ;;  %13462 = vst [vmem:[#allocation20_spill] sm:$0xff] %v11929_v9  ;;  %v11931_v8 = vld [vmem:[#allocation4 + $0x160] ss:$16 sps:$4 sm:$0xff]  }
 0x59d   :  { %13463 = vst [vmem:[#allocation21_spill] sm:$0xff] %v11931_v8 }
 0x59e   :  { %v11796_v3 = vadd.f32 %v2699_v38, %v2698_v7  ;;  %v11933_v38 = vld [vmem:[#allocation4 + $0x168] ss:$16 sps:$4 sm:$0xff]   ;;  %v11941_v7 = vld [vmem:[#allocation4 + $0x18c] ss:$16 sps:$4 sm:$0xff]  }
 0x59f   :  { %13464 = vst [vmem:[#allocation22_spill] sm:$0xff] %v11933_v38  ;;  %13466 = vst [vmem:[#allocation24_spill] sm:$0xff] %v11941_v7 }
 0x5a0   :  { %10705 = vtanh.f32 %v11796_v3 }
 0x5aa   :  { %v10706_v40 = vpop.eup %10705 }
 0x5ab   :  { %v2702_v47 = vmul.f32 %v10706_v40, %v10704_v46  ;;  %v11943_v46 = vld [vmem:[#allocation4 + $0x180] ss:$16 sps:$4 sm:$0xff]   ;;  %v11945_v40 = vld [vmem:[#allocation4 + $0x188] ss:$16 sps:$4 sm:$0xff]  }
 0x5ac   :  { %13467 = vst [vmem:[#allocation25_spill] sm:$0xff] %v11943_v46  ;;  %13468 = vst [vmem:[#allocation26_spill] sm:$0xff] %v11945_v40 }
 0x5ad   :  { %v2703_v35 = vpack.c.bf16 %v2702_v47, %v2702_v47  ;;  %v9243_v47 = vld [vmem:[%s13191_s0 + $0x6] sm:$0x1] }
 0x5af   :  { %2705 = vst [vmem:[#allocation2 + $0x4] sm:$0x1] %v2703_v35  ;;  %2706 = vst [vmem:[#allocation3] sm:$0x1] %v2703_v35  ;;  %v11954_v35 = vld [vmem:[#allocation4 + $0x1a4] ss:$16 sps:$4 sm:$0xff]  }
 0x5b0   :  { %13469 = vst [vmem:[#allocation27_spill] sm:$0xff] %v11954_v35 }
 0x5b6   :  { %v9175_v44 = vld.sshfl [vmem:[#allocation3] sm:$0x11 pattern:$0x75316420] }
 0x5b7   :  { %v2783_v2 = vcombine.high %v9175_v44, %v9175_v44  ;;  %v2790_v36 = vrot.slane %v9175_v44, %v11267_v56  ;;  %v11956_v44 = vld [vmem:[#allocation4 + $0x1ac] ss:$16 sps:$4 sm:$0xff]   ;;  %3232 = vst [vmem:[#allocation3 + $0x1] sm:$0x1] %v9243_v47  ;;  %v11978_v47 = vld [vmem:[#allocation4 + $0x1e0] ss:$16 sps:$4 sm:$0xff]  }
 0x5b8   :  { %13470 = vst [vmem:[#allocation28_spill] sm:$0xff] %v11956_v44  ;;  %13477 = vst [vmem:[#allocation35_spill] sm:$0xff] %v11978_v47 }
 0x5b9   :  { %v2797_v34 = vrot.slane %v2783_v2, %v11267_v56  ;;  %v11958_v2 = vld [vmem:[#allocation4 + $0x1a0] ss:$16 sps:$4 sm:$0xff]  }
 0x5ba   :  { %13471 = vst [vmem:[#allocation29_spill] sm:$0xff] %v11958_v2 }
 0x5bb   :  { %3152 = vmatprep.mubr.bf16.mxu0 %v2797_v34  ;;  %3193 = vmatprep.mubr.bf16.mxu1 %v2797_v34  ;;  %v11960_v34 = vld [vmem:[#allocation4 + $0x1a8] ss:$16 sps:$4 sm:$0xff]  }
 0x5bc   :  { %3153 = vmatmul.mubr.bf16.vlgmr.msra.gmra.mrb[20].mxu0 %v2790_v36  ;;  %3194 = vmatmul.mubr.bf16.vlgmr.msra.gmra.mrb[20].mxu1 %v2790_v36  ;;  %13472 = vst [vmem:[#allocation30_spill] sm:$0xff] %v11960_v34  ;;  %v11966_v36 = vld [vmem:[#allocation4 + $0x1c4] ss:$16 sps:$4 sm:$0xff]  }
 0x5bd   :  { %3644 = vmatpush1.bf16.msra.mxu0 %v11800_v48  ;;  %3685 = vmatpush1.bf16.msra.mxu1 %v11802_v49  ;;  %13473 = vst [vmem:[#allocation31_spill] sm:$0xff] %v11966_v36 }
 0x5be   :  { %3645 = vmatprep.subr.bf16.mxu0 %v11807_v50  ;;  %3686 = vmatprep.subr.bf16.mxu1 %v11809_v52 }
 0x5c1   :  { %3646 = vmatpush1.bf16.msra.mxu0 %v11811_v53  ;;  %3687 = vmatpush1.bf16.msra.mxu1 %v11813_v54 }
 0x5c2   :  { %3647 = vmatprep.subr.bf16.mxu0 %v11819_v55  ;;  %3688 = vmatprep.subr.bf16.mxu1 %v11821_v58 }
 0x5c5   :  { %3648 = vmatpush1.bf16.msra.mxu0 %v11823_v59  ;;  %3689 = vmatpush1.bf16.msra.mxu1 %v11825_v60 }
 0x5c6   :  { %3649 = vmatprep.subr.bf16.mxu0 %v11831_v41  ;;  %3690 = vmatprep.subr.bf16.mxu1 %v11833_v42 }
 0x5c9   :  { %3650 = vmatpush1.bf16.msra.mxu0 %v11835_v43  ;;  %3691 = vmatpush1.bf16.msra.mxu1 %v11837_v45 }
 0x5ca   :  { %3651 = vmatprep.subr.bf16.mxu0 %v11843_v51  ;;  %3692 = vmatprep.subr.bf16.mxu1 %v11845_v61 }
 0x5cd   :  { %3652 = vmatpush1.bf16.msra.mxu0 %v11847_v1  ;;  %3693 = vmatpush1.bf16.msra.mxu1 %v11849_v57 }
 0x5ce   :  { %3653 = vmatprep.subr.bf16.mxu0 %v11855_v4  ;;  %3694 = vmatprep.subr.bf16.mxu1 %v11857_v63 }
 0x5d1   :  { %3654 = vmatpush1.bf16.msra.mxu0 %v11859_v5  ;;  %3695 = vmatpush1.bf16.msra.mxu1 %v11861_v6 }
 0x5d2   :  { %3655 = vmatprep.subr.bf16.mxu0 %v11867_v13  ;;  %3696 = vmatprep.subr.bf16.mxu1 %v11869_v14 }
 0x5d5   :  { %3656 = vmatpush1.bf16.msra.mxu0 %v11871_v16  ;;  %3697 = vmatpush1.bf16.msra.mxu1 %v11873_v17 }
 0x5d6   :  { %3657 = vmatprep.subr.bf16.mxu0 %v11879_v18  ;;  %3698 = vmatprep.subr.bf16.mxu1 %v11881_v19 }
 0x5d9   :  { %3658 = vmatpush1.bf16.msra.mxu0 %v11883_v21  ;;  %3699 = vmatpush1.bf16.msra.mxu1 %v11885_v23 }
 0x5da   :  { %3659 = vmatprep.subr.bf16.mxu0 %v11891_v24  ;;  %3700 = vmatprep.subr.bf16.mxu1 %v11893_v25 }
 0x5dd   :  { %3660 = vmatpush1.bf16.msra.mxu0 %v11895_v26  ;;  %3701 = vmatpush1.bf16.msra.mxu1 %v11897_v28 }
 0x5de   :  { %3661 = vmatprep.subr.bf16.mxu0 %v11903_v29  ;;  %3702 = vmatprep.subr.bf16.mxu1 %v11905_v30 }
 0x5e1   :  { %3662 = vmatpush1.bf16.msra.mxu0 %v11907_v31  ;;  %3703 = vmatpush1.bf16.msra.mxu1 %v11909_v32 }
 0x5e2   :  { %3663 = vmatprep.subr.bf16.mxu0 %v11915_v22  ;;  %3704 = vmatprep.subr.bf16.mxu1 %v11917_v10 }
 0x5e5   :  { %3664 = vmatpush1.bf16.msra.mxu0 %v11919_v33  ;;  %3705 = vmatpush1.bf16.msra.mxu1 %v11921_v12 }
 0x5e6   :  { %3665 = vmatprep.subr.bf16.mxu0 %v11927_v37  ;;  %3706 = vmatprep.subr.bf16.mxu1 %v11929_v9 }
 0x5e9   :  { %3666 = vmatpush1.bf16.msra.mxu0 %v11931_v8  ;;  %3707 = vmatpush1.bf16.msra.mxu1 %v11933_v38 }
 0x5ea   :  { %3667 = vmatprep.subr.bf16.mxu0 %v11939_v39  ;;  %3708 = vmatprep.subr.bf16.mxu1 %v11941_v7  ;;  %v11972_v7 = vld [vmem:[#allocation4 + $0x1c8] ss:$16 sps:$4 sm:$0xff]  }
 0x5eb   :  { %13476 = vst [vmem:[#allocation34_spill] sm:$0xff] %v11972_v7 }
 0x5ed   :  { %3668 = vmatpush1.bf16.msra.mxu0 %v11943_v46  ;;  %3709 = vmatpush1.bf16.msra.mxu1 %v11945_v40  ;;  %v11968_v40 = vld [vmem:[#allocation4 + $0x1cc] ss:$16 sps:$4 sm:$0xff]   ;;  %v11970_v46 = vld [vmem:[#allocation4 + $0x1c0] ss:$16 sps:$4 sm:$0xff]  }
 0x5ee   :  { %3669 = vmatprep.subr.bf16.mxu0 %v11954_v35  ;;  %3710 = vmatprep.subr.bf16.mxu1 %v11956_v44  ;;  %13474 = vst [vmem:[#allocation32_spill] sm:$0xff] %v11968_v40  ;;  %13475 = vst [vmem:[#allocation33_spill] sm:$0xff] %v11970_v46  ;;  %v11984_v44 = vld [vmem:[#allocation4 + $0x1ec] ss:$16 sps:$4 sm:$0xff]  }
 0x5ef   :  { %13480 = vst [vmem:[#allocation40_spill] sm:$0xff] %v11984_v44 }
 0x5f1   :  { %3670 = vmatpush1.bf16.msra.mxu0 %v11958_v2  ;;  %3711 = vmatpush1.bf16.msra.mxu1 %v11960_v34  ;;  %v11980_v2 = vld [vmem:[#allocation4 + $0x1e4] ss:$16 sps:$4 sm:$0xff]   ;;  %v11982_v34 = vld [vmem:[#allocation4 + $0x1e8] ss:$16 sps:$4 sm:$0xff]  }
 0x5f2   :  { %3671 = vmatprep.subr.bf16.mxu0 %v11966_v36  ;;  %3712 = vmatprep.subr.bf16.mxu1 %v11968_v40  ;;  %13478 = vst [vmem:[#allocation36_spill] sm:$0xff] %v11980_v2  ;;  %13479 = vst [vmem:[#allocation38_spill] sm:$0xff] %v11982_v34 }
 0x5f5   :  { %3672 = vmatpush1.bf16.msra.mxu0 %v11970_v46  ;;  %3713 = vmatpush1.bf16.msra.mxu1 %v11972_v7 }
 0x5f6   :  { %3673 = vmatprep.subr.bf16.mxu0 %v11980_v2  ;;  %3714 = vmatprep.subr.bf16.mxu1 %v11984_v44 }
 0x5f9   :  { %3674 = vmatpush1.bf16.msra.mxu0 %v11978_v47  ;;  %3715 = vmatpush1.bf16.msra.mxu1 %v11982_v34 }
 0x5fa   :  { %4166 = vmatprep.subr.bf16.mxu0 %v11785_v62  ;;  %4207 = vmatprep.subr.bf16.mxu1 %v11787_v0 }
 0x68f   :  { %v3154_v7 = vpop.f32.mrb[20].mxu0  ;;  %v3195_v46 = vpop.f32.mrb[20].mxu1 }
 0x690   :  { %v3155_v40 = vadd.f32 %v3154_v7, %v13459_v15  ;;  %v3156_v36 = vpop.f32.mrb[21].mxu0  ;;  %v3197_v35 = vpop.f32.mrb[21].mxu1  ;;  %v3196_v0 = vadd.f32 %v3195_v46, %v11412_v27 }
 0x691   :  { %v3157_v39 = vadd.f32 %v3156_v36, %v11399_v11  ;;  %v3158_v38 = vpop.f32.mrb[22].mxu0  ;;  %v3199_v2 = vpop.f32.mrb[22].mxu1  ;;  %v3198_v62 = vadd.f32 %v3197_v35, %v11406_v20 }
 0x692   :  { %v9240_v8 = vmul.f32 -1.442695, %v3155_v40  ;;  %v3159_v44 = vpop.f32.mrb[23].mxu0  ;;  %v3200_v9 = vpop.f32.mrb[23].mxu1 }
 0x693   :  { %v9241_v47 = vmul.f32 -1.442695, %v3157_v39  ;;  %v9242_v34 = vmul.f32 -1.442695, %v3198_v62 }
 0x694   :  { %10707 = vpow2.f32 %v9240_v8 }
 0x695   :  { %10709 = vpow2.f32 %v9241_v47 }
 0x696   :  { %10711 = vpow2.f32 %v9242_v34 }
 0x697   :  { %10713 = vtanh.f32 %v3196_v0 }
 0x69e   :  { %v10708_v37 = vpop.eup %10707 }
 0x69f   :  { %v10710_v12 = vpop.eup %10709  ;;  %v3205_v7 = vadd.f32 1.0, %v10708_v37 }
 0x6a0   :  { %v3211_v15 = vadd.f32 1.0, %v10710_v12  ;;  %v10712_v38 = vpop.eup %10711 }
 0x6a1   :  { %10715 = vrcp.f32 %v3205_v7  ;;  %v10714_v40 = vpop.eup %10713  ;;  %v3218_v8 = vadd.f32 1.0, %v10712_v38 }
 0x6a2   :  { %10717 = vrcp.f32 %v3211_v15 }
 0x6a3   :  { %10719 = vrcp.f32 %v3218_v8 }
 0x6ab   :  { %v10716_v44 = vpop.eup %10715 }
 0x6ac   :  { %v10718_v9 = vpop.eup %10717  ;;  %v3222_v39 = vmul.f32 %v10716_v44, %v10714_v40 }
 0x6ad   :  { %v3221_v2 = vmul.f32 %v10718_v9, %v11796_v3  ;;  %v10720_v46 = vpop.eup %10719  ;;  %v13481_v3 = vld [vmem:[#allocation18_spill] sm:$0xff] }
 0x6af   :  { %v11997_v35 = vadd.f32 %v3222_v39, %v3221_v2 }
 0x6b1   :  { %10721 = vtanh.f32 %v11997_v35 }
 0x6bb   :  { %v10722_v37 = vpop.eup %10721 }
 0x6bc   :  { %v3225_v34 = vmul.f32 %v10722_v37, %v10720_v46 }
 0x6be   :  { %v3226_v36 = vpack.c.bf16 %v3225_v34, %v3225_v34 }
 0x6c0   :  { %3228 = vst [vmem:[#allocation2 + $0x5] sm:$0x1] %v3226_v36  ;;  %3229 = vst [vmem:[#allocation3] sm:$0x1] %v3226_v36 }
 0x6c7   :  { %v9244_v15 = vld.sshfl [vmem:[#allocation3] sm:$0x11 pattern:$0x75316420] }
 0x6c8   :  { %v3306_v12 = vcombine.high %v9244_v15, %v9244_v15  ;;  %v3313_v62 = vrot.slane %v9244_v15, %v11267_v56 }
 0x6ca   :  { %v3320_v47 = vrot.slane %v3306_v12, %v11267_v56  ;;  %v4298_v12 = vld [vmem:[#allocation2] sm:$0x1] }
 0x6cc   :  { %3675 = vmatprep.mubr.bf16.mxu0 %v3320_v47  ;;  %3716 = vmatprep.mubr.bf16.mxu1 %v3320_v47 }
 0x6cd   :  { %3676 = vmatmul.mubr.bf16.vlgmr.msra.gmra.mrb[24].mxu0 %v3313_v62  ;;  %3717 = vmatmul.mubr.bf16.vlgmr.msra.gmra.mrb[24].mxu1 %v3313_v62 }
 0x6ce   :  { %4167 = vmatpush1.bf16.msra.mxu0 %v11800_v48  ;;  %4208 = vmatpush1.bf16.msra.mxu1 %v11802_v49  ;;  %v13482_v48 = vld [vmem:[#allocation19_spill] sm:$0xff]  ;;  %v13483_v49 = vld [vmem:[#allocation20_spill] sm:$0xff] }
 0x6cf   :  { %4168 = vmatprep.subr.bf16.mxu0 %v11807_v50  ;;  %4209 = vmatprep.subr.bf16.mxu1 %v11809_v52  ;;  %v13484_v50 = vld [vmem:[#allocation21_spill] sm:$0xff]  ;;  %v13485_v52 = vld [vmem:[#allocation22_spill] sm:$0xff] }
 0x6d2   :  { %4169 = vmatpush1.bf16.msra.mxu0 %v11811_v53  ;;  %4210 = vmatpush1.bf16.msra.mxu1 %v11813_v54  ;;  %v13486_v53 = vld [vmem:[#allocation23_spill] sm:$0xff]  ;;  %v13487_v54 = vld [vmem:[#allocation24_spill] sm:$0xff] }
 0x6d3   :  { %4170 = vmatprep.subr.bf16.mxu0 %v11819_v55  ;;  %4211 = vmatprep.subr.bf16.mxu1 %v11821_v58  ;;  %v13488_v55 = vld [vmem:[#allocation25_spill] sm:$0xff]  ;;  %v13489_v58 = vld [vmem:[#allocation26_spill] sm:$0xff] }
 0x6d6   :  { %4171 = vmatpush1.bf16.msra.mxu0 %v11823_v59  ;;  %4212 = vmatpush1.bf16.msra.mxu1 %v11825_v60  ;;  %v13490_v59 = vld [vmem:[#allocation27_spill] sm:$0xff]  ;;  %v13491_v60 = vld [vmem:[#allocation28_spill] sm:$0xff] }
 0x6d7   :  { %4172 = vmatprep.subr.bf16.mxu0 %v11831_v41  ;;  %4213 = vmatprep.subr.bf16.mxu1 %v11833_v42  ;;  %v13492_v41 = vld [vmem:[#allocation29_spill] sm:$0xff]  ;;  %v13493_v42 = vld [vmem:[#allocation30_spill] sm:$0xff] }
 0x6da   :  { %4173 = vmatpush1.bf16.msra.mxu0 %v11835_v43  ;;  %4214 = vmatpush1.bf16.msra.mxu1 %v11837_v45  ;;  %v13494_v43 = vld [vmem:[#allocation31_spill] sm:$0xff]  ;;  %v13495_v45 = vld [vmem:[#allocation32_spill] sm:$0xff] }
 0x6db   :  { %4174 = vmatprep.subr.bf16.mxu0 %v11843_v51  ;;  %4215 = vmatprep.subr.bf16.mxu1 %v11845_v61  ;;  %v13496_v51 = vld [vmem:[#allocation33_spill] sm:$0xff]  ;;  %v13497_v61 = vld [vmem:[#allocation34_spill] sm:$0xff] }
 0x6de   :  { %4175 = vmatpush1.bf16.msra.mxu0 %v11847_v1  ;;  %4216 = vmatpush1.bf16.msra.mxu1 %v11849_v57  ;;  %v13498_v1 = vld [vmem:[#allocation36_spill] sm:$0xff] }
 0x6df   :  { %4176 = vmatprep.subr.bf16.mxu0 %v11855_v4  ;;  %4217 = vmatprep.subr.bf16.mxu1 %v11857_v63  ;;  %v13499_v57 = vld [vmem:[#allocation40_spill] sm:$0xff]  ;;  %v13500_v4 = vld [vmem:[#allocation35_spill] sm:$0xff]  ;;  %v13501_v63 = vld [vmem:[#allocation38_spill] sm:$0xff] }
 0x6e2   :  { %4177 = vmatpush1.bf16.msra.mxu0 %v11859_v5  ;;  %4218 = vmatpush1.bf16.msra.mxu1 %v11861_v6  ;;  %v9312_v5 = vld [vmem:[%s13191_s0 + $0x7] sm:$0x1]  ;;  %v12067_v6 = vld [vmem:[#allocation7 + $0x4] ss:$16 sps:$4 sm:$0xff]  }
 0x6e3   :  { %4178 = vmatprep.subr.bf16.mxu0 %v11867_v13  ;;  %4219 = vmatprep.subr.bf16.mxu1 %v11869_v14  ;;  %3755 = vst [vmem:[#allocation3 + $0x1] sm:$0x1] %v9312_v5  ;;  %v12069_v13 = vld [vmem:[#allocation7 + $0xc] ss:$16 sps:$4 sm:$0xff]  }
 0x6e4   :  { %v12131_v5 = vld [vmem:[#allocation7 + $0x8c] ss:$16 sps:$4 sm:$0xff]  }
 0x6e6   :  { %4179 = vmatpush1.bf16.msra.mxu0 %v11871_v16  ;;  %4220 = vmatpush1.bf16.msra.mxu1 %v11873_v17  ;;  %v13502_v17 = vld [vmem:[#allocation14_spill] sm:$0xff] }
 0x6e7   :  { %4180 = vmatprep.subr.bf16.mxu0 %v11879_v18  ;;  %4221 = vmatprep.subr.bf16.mxu1 %v11881_v19 }
 0x6ea   :  { %4181 = vmatpush1.bf16.msra.mxu0 %v11883_v21  ;;  %4222 = vmatpush1.bf16.msra.mxu1 %v11885_v23 }
 0x6eb   :  { %4182 = vmatprep.subr.bf16.mxu0 %v11891_v24  ;;  %4223 = vmatprep.subr.bf16.mxu1 %v11893_v25 }
 0x6ee   :  { %4183 = vmatpush1.bf16.msra.mxu0 %v11895_v26  ;;  %4224 = vmatpush1.bf16.msra.mxu1 %v11897_v28 }
 0x6ef   :  { %4184 = vmatprep.subr.bf16.mxu0 %v11903_v29  ;;  %4225 = vmatprep.subr.bf16.mxu1 %v11905_v30 }
 0x6f2   :  { %4185 = vmatpush1.bf16.msra.mxu0 %v11907_v31  ;;  %4226 = vmatpush1.bf16.msra.mxu1 %v11909_v32 }
 0x6f3   :  { %4186 = vmatprep.subr.bf16.mxu0 %v11915_v22  ;;  %4227 = vmatprep.subr.bf16.mxu1 %v11917_v10 }
 0x6f6   :  { %4187 = vmatpush1.bf16.msra.mxu0 %v11919_v33  ;;  %4228 = vmatpush1.bf16.msra.mxu1 %v13481_v3  ;;  %v13504_v3 = vmov 0  }
 0x6f7   :  { %4188 = vmatprep.subr.bf16.mxu0 %v13482_v48  ;;  %4229 = vmatprep.subr.bf16.mxu1 %v13483_v49  ;;  %v12085_v49 = vld [vmem:[#allocation7 + $0x8] ss:$16 sps:$4 sm:$0xff]  }
 0x6fa   :  { %4189 = vmatpush1.bf16.msra.mxu0 %v13484_v50  ;;  %4230 = vmatpush1.bf16.msra.mxu1 %v13485_v52  ;;  %v12088_v52 = vld [vmem:[#allocation7 + $0x24] ss:$16 sps:$4 sm:$0xff]  }
 0x6fb   :  { %4190 = vmatprep.subr.bf16.mxu0 %v13486_v53  ;;  %4231 = vmatprep.subr.bf16.mxu1 %v13487_v54  ;;  %v12090_v53 = vld [vmem:[#allocation7 + $0x2c] ss:$16 sps:$4 sm:$0xff]   ;;  %v4819_v54 = vld [vmem:[#allocation2 + $0x1] sm:$0x1] }
 0x6fe   :  { %4191 = vmatpush1.bf16.msra.mxu0 %v13488_v55  ;;  %4232 = vmatpush1.bf16.msra.mxu1 %v13489_v58  ;;  %v12094_v55 = vld [vmem:[#allocation7 + $0x20] ss:$16 sps:$4 sm:$0xff]   ;;  %v12096_v58 = vld [vmem:[#allocation7 + $0x28] ss:$16 sps:$4 sm:$0xff]  }
 0x6ff   :  { %4192 = vmatprep.subr.bf16.mxu0 %v13490_v59  ;;  %4233 = vmatprep.subr.bf16.mxu1 %v13491_v60  ;;  %v12098_v59 = vld [vmem:[#allocation7 + $0x44] ss:$16 sps:$4 sm:$0xff]  }
 0x702   :  { %4193 = vmatpush1.bf16.msra.mxu0 %v13492_v41  ;;  %4234 = vmatpush1.bf16.msra.mxu1 %v13493_v42  ;;  %v12104_v41 = vld [vmem:[#allocation7 + $0x4c] ss:$16 sps:$4 sm:$0xff]  }
 0x703   :  { %4194 = vmatprep.subr.bf16.mxu0 %v13494_v43  ;;  %4235 = vmatprep.subr.bf16.mxu1 %v13495_v45  ;;  %v12110_v43 = vld [vmem:[#allocation7 + $0x40] ss:$16 sps:$4 sm:$0xff]  }
 0x706   :  { %4195 = vmatpush1.bf16.msra.mxu0 %v13496_v51  ;;  %4236 = vmatpush1.bf16.msra.mxu1 %v13497_v61  ;;  %v12113_v51 = vld [vmem:[#allocation7 + $0x48] ss:$16 sps:$4 sm:$0xff]   ;;  %v12117_v61 = vld [vmem:[#allocation7 + $0x64] ss:$16 sps:$4 sm:$0xff]  }
 0x707   :  { %4196 = vmatprep.subr.bf16.mxu0 %v13498_v1  ;;  %4237 = vmatprep.subr.bf16.mxu1 %v13499_v57  ;;  %v12119_v1 = vld [vmem:[#allocation7 + $0x6c] ss:$16 sps:$4 sm:$0xff]   ;;  %v12123_v57 = vld [vmem:[#allocation7 + $0x60] ss:$16 sps:$4 sm:$0xff]  }
 0x70a   :  { %4197 = vmatpush1.bf16.msra.mxu0 %v13500_v4  ;;  %4238 = vmatpush1.bf16.msra.mxu1 %v13501_v63  ;;  %v12125_v4 = vld [vmem:[#allocation7 + $0x68] ss:$16 sps:$4 sm:$0xff]   ;;  %v12129_v63 = vld [vmem:[#allocation7 + $0x84] ss:$16 sps:$4 sm:$0xff]  }
 0x70b   :  { %4710 = vmatprep.subr.bf16.mxu0 %v12067_v6  ;;  %4751 = vmatprep.subr.bf16.mxu1 %v12069_v13 }
 0x7a0   :  { %v3677_v14 = vpop.f32.mrb[24].mxu0  ;;  %v3718_v16 = vpop.f32.mrb[24].mxu1 }
 0x7a1   :  { %v3678_v18 = vadd.f32 %v3677_v14, %v13502_v17  ;;  %v3679_v19 = vpop.f32.mrb[25].mxu0  ;;  %v3720_v21 = vpop.f32.mrb[25].mxu1  ;;  %v3719_v22 = vadd.f32 %v3718_v16, %v11412_v27  ;;  %v12135_v14 = vld [vmem:[#allocation7 + $0x80] ss:$16 sps:$4 sm:$0xff]   ;;  %v12137_v16 = vld [vmem:[#allocation7 + $0x88] ss:$16 sps:$4 sm:$0xff]  }
 0x7a2   :  { %v3680_v23 = vadd.f32 %v3679_v19, %v11399_v11  ;;  %v3681_v24 = vpop.f32.mrb[26].mxu0  ;;  %v3722_v25 = vpop.f32.mrb[26].mxu1  ;;  %v3721_v31 = vadd.f32 %v3720_v21, %v11406_v20  ;;  %v12143_v19 = vld [vmem:[#allocation7 + $0xac] ss:$16 sps:$4 sm:$0xff]   ;;  %v12147_v21 = vld [vmem:[#allocation7 + $0xa0] ss:$16 sps:$4 sm:$0xff]  }
 0x7a3   :  { %v9309_v26 = vmul.f32 -1.442695, %v3678_v18  ;;  %v3682_v28 = vpop.f32.mrb[27].mxu0  ;;  %v3723_v29 = vpop.f32.mrb[27].mxu1  ;;  %v12141_v18 = vld [vmem:[#allocation7 + $0xa4] ss:$16 sps:$4 sm:$0xff]  }
 0x7a4   :  { %v9310_v30 = vmul.f32 -1.442695, %v3680_v23  ;;  %v9311_v32 = vmul.f32 -1.442695, %v3721_v31  ;;  %v12149_v23 = vld [vmem:[#allocation7 + $0xa8] ss:$16 sps:$4 sm:$0xff]  }
 0x7a5   :  { %10723 = vpow2.f32 %v9309_v26  ;;  %v12153_v24 = vld [vmem:[#allocation7 + $0xc4] ss:$16 sps:$4 sm:$0xff]   ;;  %v12155_v25 = vld [vmem:[#allocation7 + $0xcc] ss:$16 sps:$4 sm:$0xff]   ;;  %v12159_v26 = vld [vmem:[#allocation7 + $0xc0] ss:$16 sps:$4 sm:$0xff]  }
 0x7a6   :  { %10725 = vpow2.f32 %v9310_v30  ;;  %v12161_v28 = vld [vmem:[#allocation7 + $0xc8] ss:$16 sps:$4 sm:$0xff]   ;;  %v12165_v29 = vld [vmem:[#allocation7 + $0xe4] ss:$16 sps:$4 sm:$0xff]   ;;  %v12167_v30 = vld [vmem:[#allocation7 + $0xec] ss:$16 sps:$4 sm:$0xff]  }
 0x7a7   :  { %10727 = vpow2.f32 %v9311_v32  ;;  %v12171_v31 = vld [vmem:[#allocation7 + $0xe0] ss:$16 sps:$4 sm:$0xff]   ;;  %v12173_v32 = vld [vmem:[#allocation7 + $0xe8] ss:$16 sps:$4 sm:$0xff]   ;;  %v12261_v11 = vld [vmem:[#allocation7 + $0x1e4] ss:$16 sps:$4 sm:$0xff]  }
 0x7a8   :  { %10729 = vtanh.f32 %v3719_v22  ;;  %v12177_v22 = vld [vmem:[#allocation7 + $0x104] ss:$16 sps:$4 sm:$0xff]   ;;  %v12255_v27 = vld [vmem:[#allocation7 + $0x1c0] ss:$16 sps:$4 sm:$0xff]   ;;  %v12257_v20 = vld [vmem:[#allocation7 + $0x1c8] ss:$16 sps:$4 sm:$0xff]  }
 0x7a9   :  { %13519 = vst [vmem:[#allocation31_spill] sm:$0xff] %v12255_v27  ;;  %13520 = vst [vmem:[#allocation32_spill] sm:$0xff] %v12257_v20  ;;  %v12263_v17 = vld [vmem:[#allocation7 + $0x1ec] ss:$16 sps:$4 sm:$0xff]  }
 0x7aa   :  { %13521 = vst [vmem:[#allocation33_spill] sm:$0xff] %v12261_v11  ;;  %13522 = vst [vmem:[#allocation34_spill] sm:$0xff] %v12263_v17 }
 0x7af   :  { %v10724_v10 = vpop.eup %10723 }
 0x7b0   :  { %v10726_v33 = vpop.eup %10725  ;;  %v3728_v0 = vadd.f32 1.0, %v10724_v10  ;;  %v12179_v10 = vld [vmem:[#allocation7 + $0x10c] ss:$16 sps:$4 sm:$0xff]  }
 0x7b1   :  { %v3734_v7 = vadd.f32 1.0, %v10726_v33  ;;  %v10728_v38 = vpop.eup %10727  ;;  %v12183_v33 = vld [vmem:[#allocation7 + $0x100] ss:$16 sps:$4 sm:$0xff]  }
 0x7b2   :  { %10731 = vrcp.f32 %v3728_v0  ;;  %v10730_v40 = vpop.eup %10729  ;;  %v3741_v8 = vadd.f32 1.0, %v10728_v38  ;;  %v12185_v0 = vld [vmem:[#allocation7 + $0x108] ss:$16 sps:$4 sm:$0xff]   ;;  %v12191_v38 = vld [vmem:[#allocation7 + $0x12c] ss:$16 sps:$4 sm:$0xff]  }
 0x7b3   :  { %10733 = vrcp.f32 %v3734_v7  ;;  %v12189_v7 = vld [vmem:[#allocation7 + $0x124] ss:$16 sps:$4 sm:$0xff]  }
 0x7b4   :  { %10735 = vrcp.f32 %v3741_v8  ;;  %v12207_v8 = vld [vmem:[#allocation7 + $0x140] ss:$16 sps:$4 sm:$0xff]  }
 0x7bc   :  { %v10732_v44 = vpop.eup %10731 }
 0x7bd   :  { %v10734_v9 = vpop.eup %10733  ;;  %v3745_v39 = vmul.f32 %v10732_v44, %v10730_v40  ;;  %v12195_v40 = vld [vmem:[#allocation7 + $0x120] ss:$16 sps:$4 sm:$0xff]   ;;  %v12197_v44 = vld [vmem:[#allocation7 + $0x128] ss:$16 sps:$4 sm:$0xff]  }
 0x7be   :  { %v3744_v2 = vmul.f32 %v10734_v9, %v11997_v35  ;;  %v10736_v37 = vpop.eup %10735  ;;  %v12083_v35 = vld [vmem:[#allocation7] ss:$16 sps:$4 sm:$0xff]   ;;  %v12201_v9 = vld [vmem:[#allocation7 + $0x144] ss:$16 sps:$4 sm:$0xff]  }
 0x7c0   :  { %v12078_v46 = vadd.f32 %v3745_v39, %v3744_v2  ;;  %v12203_v39 = vld [vmem:[#allocation7 + $0x14c] ss:$16 sps:$4 sm:$0xff]   ;;  %v12209_v2 = vld [vmem:[#allocation7 + $0x148] ss:$16 sps:$4 sm:$0xff]  }
 0x7c2   :  { %13503 = vst [vmem:[#allocation37_spill] sm:$0xff] %v12078_v46  ;;  %10737 = vtanh.f32 %v12078_v46  ;;  %v12251_v46 = vld [vmem:[#allocation7 + $0x1cc] ss:$16 sps:$4 sm:$0xff]  }
 0x7c3   :  { %13518 = vst [vmem:[#allocation30_spill] sm:$0xff] %v12251_v46 }
 0x7cc   :  { %v10738_v34 = vpop.eup %10737 }
 0x7cd   :  { %v3748_v36 = vmul.f32 %v10738_v34, %v10736_v37  ;;  %v12213_v37 = vld [vmem:[#allocation7 + $0x164] ss:$16 sps:$4 sm:$0xff]   ;;  %v12215_v34 = vld [vmem:[#allocation7 + $0x16c] ss:$16 sps:$4 sm:$0xff]  }
 0x7ce   :  { %13505 = vst [vmem:[#allocation39_spill] sm:$0xff] %v12213_v37  ;;  %13506 = vst [vmem:[#allocation18_spill] sm:$0xff] %v12215_v34 }
 0x7cf   :  { %v3749_v15 = vpack.c.bf16 %v3748_v36, %v3748_v36  ;;  %v12219_v36 = vld [vmem:[#allocation7 + $0x160] ss:$16 sps:$4 sm:$0xff]  }
 0x7d0   :  { %13507 = vst [vmem:[#allocation19_spill] sm:$0xff] %v12219_v36 }
 0x7d1   :  { %3751 = vst [vmem:[#allocation2 + $0x6] sm:$0x1] %v3749_v15  ;;  %3752 = vst [vmem:[#allocation3] sm:$0x1] %v3749_v15  ;;  %v12221_v15 = vld [vmem:[#allocation7 + $0x168] ss:$16 sps:$4 sm:$0xff]  }
 0x7d2   :  { %13508 = vst [vmem:[#allocation20_spill] sm:$0xff] %v12221_v15 }
 0x7d8   :  { %v9313_v47 = vld.sshfl [vmem:[#allocation3] sm:$0x11 pattern:$0x75316420] }
 0x7d9   :  { %v3829_v62 = vcombine.high %v9313_v47, %v9313_v47  ;;  %4297 = vst [vmem:[#allocation3] sm:$0x1] %v13504_v3  ;;  %4299 = vst [vmem:[#allocation3 + $0x1] sm:$0x1] %v4298_v12  ;;  %v3836_v50 = vrot.slane %v9313_v47, %v11267_v56  ;;  %v12225_v12 = vld [vmem:[#allocation7 + $0x184] ss:$16 sps:$4 sm:$0xff]  }
 0x7da   :  { %13509 = vst [vmem:[#allocation21_spill] sm:$0xff] %v12225_v12  ;;  %v12227_v47 = vld [vmem:[#allocation7 + $0x18c] ss:$16 sps:$4 sm:$0xff]   ;;  %v12233_v3 = vld [vmem:[#allocation7 + $0x188] ss:$16 sps:$4 sm:$0xff]  }
 0x7db   :  { %v3843_v48 = vrot.slane %v3829_v62, %v11267_v56  ;;  %13510 = vst [vmem:[#allocation22_spill] sm:$0xff] %v12227_v47  ;;  %v12231_v62 = vld [vmem:[#allocation7 + $0x180] ss:$16 sps:$4 sm:$0xff]   ;;  %13512 = vst [vmem:[#allocation24_spill] sm:$0xff] %v12233_v3 }
 0x7dc   :  { %13511 = vst [vmem:[#allocation23_spill] sm:$0xff] %v12231_v62 }
 0x7dd   :  { %4198 = vmatprep.mubr.bf16.mxu0 %v3843_v48  ;;  %4239 = vmatprep.mubr.bf16.mxu1 %v3843_v48  ;;  %v12237_v48 = vld [vmem:[#allocation7 + $0x1a4] ss:$16 sps:$4 sm:$0xff]  }
 0x7de   :  { %4199 = vmatmul.mubr.bf16.vlgmr.msra.gmra.mrb[28].mxu0 %v3836_v50  ;;  %4240 = vmatmul.mubr.bf16.vlgmr.msra.gmra.mrb[28].mxu1 %v3836_v50  ;;  %13513 = vst [vmem:[#allocation25_spill] sm:$0xff] %v12237_v48  ;;  %v12239_v50 = vld [vmem:[#allocation7 + $0x1ac] ss:$16 sps:$4 sm:$0xff]  }
 0x7df   :  { %4711 = vmatpush1.bf16.msra.mxu0 %v12083_v35  ;;  %4752 = vmatpush1.bf16.msra.mxu1 %v12085_v49  ;;  %13514 = vst [vmem:[#allocation26_spill] sm:$0xff] %v12239_v50 }
 0x7e0   :  { %4712 = vmatprep.subr.bf16.mxu0 %v12088_v52  ;;  %4753 = vmatprep.subr.bf16.mxu1 %v12090_v53  ;;  %v12102_v60 = vld.sshfl [vmem:[#allocation3] sm:$0x11 pattern:$0x75316420] }
 0x7e1   :  { %v4373_v42 = vcombine.high %v12102_v60, %v12102_v60  ;;  %4820 = vst [vmem:[#allocation3 + $0x1] sm:$0x1] %v4819_v54  ;;  %v12243_v54 = vld [vmem:[#allocation7 + $0x1a0] ss:$16 sps:$4 sm:$0xff]  }
 0x7e2   :  { %13515 = vst [vmem:[#allocation27_spill] sm:$0xff] %v12243_v54 }
 0x7e3   :  { %4713 = vmatpush1.bf16.msra.mxu0 %v12094_v55  ;;  %4754 = vmatpush1.bf16.msra.mxu1 %v12096_v58  ;;  %v4387_v45 = vrot.slane %v4373_v42, %v11267_v56  ;;  %v12245_v42 = vld [vmem:[#allocation7 + $0x1a8] ss:$16 sps:$4 sm:$0xff]  }
 0x7e4   :  { %4714 = vmatprep.subr.bf16.mxu0 %v12098_v59  ;;  %4755 = vmatprep.subr.bf16.mxu1 %v12104_v41  ;;  %13516 = vst [vmem:[#allocation28_spill] sm:$0xff] %v12245_v42 }
 0x7e5   :  { %4742 = vmatprep.mubr.bf16.mxu0 %v4387_v45  ;;  %4783 = vmatprep.mubr.bf16.mxu1 %v4387_v45  ;;  %v12249_v45 = vld [vmem:[#allocation7 + $0x1c4] ss:$16 sps:$4 sm:$0xff]  }
 0x7e6   :  { %13517 = vst [vmem:[#allocation29_spill] sm:$0xff] %v12249_v45 }
 0x7e7   :  { %4715 = vmatpush1.bf16.msra.mxu0 %v12110_v43  ;;  %4756 = vmatpush1.bf16.msra.mxu1 %v12113_v51 }
 0x7e8   :  { %4716 = vmatprep.subr.bf16.mxu0 %v12117_v61  ;;  %4757 = vmatprep.subr.bf16.mxu1 %v12119_v1 }
 0x7eb   :  { %4717 = vmatpush1.bf16.msra.mxu0 %v12123_v57  ;;  %4758 = vmatpush1.bf16.msra.mxu1 %v12125_v4 }
 0x7ec   :  { %4718 = vmatprep.subr.bf16.mxu0 %v12129_v63  ;;  %4759 = vmatprep.subr.bf16.mxu1 %v12131_v5 }
 0x7ef   :  { %4719 = vmatpush1.bf16.msra.mxu0 %v12135_v14  ;;  %4760 = vmatpush1.bf16.msra.mxu1 %v12137_v16 }
 0x7f0   :  { %4720 = vmatprep.subr.bf16.mxu0 %v12141_v18  ;;  %4761 = vmatprep.subr.bf16.mxu1 %v12143_v19 }
 0x7f3   :  { %4721 = vmatpush1.bf16.msra.mxu0 %v12147_v21  ;;  %4762 = vmatpush1.bf16.msra.mxu1 %v12149_v23 }
 0x7f4   :  { %4722 = vmatprep.subr.bf16.mxu0 %v12153_v24  ;;  %4763 = vmatprep.subr.bf16.mxu1 %v12155_v25 }
 0x7f7   :  { %4723 = vmatpush1.bf16.msra.mxu0 %v12159_v26  ;;  %4764 = vmatpush1.bf16.msra.mxu1 %v12161_v28 }
 0x7f8   :  { %4724 = vmatprep.subr.bf16.mxu0 %v12165_v29  ;;  %4765 = vmatprep.subr.bf16.mxu1 %v12167_v30 }
 0x7fb   :  { %4725 = vmatpush1.bf16.msra.mxu0 %v12171_v31  ;;  %4766 = vmatpush1.bf16.msra.mxu1 %v12173_v32 }
 0x7fc   :  { %4726 = vmatprep.subr.bf16.mxu0 %v12177_v22  ;;  %4767 = vmatprep.subr.bf16.mxu1 %v12179_v10 }
 0x7ff   :  { %4727 = vmatpush1.bf16.msra.mxu0 %v12183_v33  ;;  %4768 = vmatpush1.bf16.msra.mxu1 %v12185_v0 }
 0x800   :  { %4728 = vmatprep.subr.bf16.mxu0 %v12189_v7  ;;  %4769 = vmatprep.subr.bf16.mxu1 %v12191_v38 }
 0x803   :  { %4729 = vmatpush1.bf16.msra.mxu0 %v12195_v40  ;;  %4770 = vmatpush1.bf16.msra.mxu1 %v12197_v44 }
 0x804   :  { %4730 = vmatprep.subr.bf16.mxu0 %v12201_v9  ;;  %4771 = vmatprep.subr.bf16.mxu1 %v12203_v39 }
 0x807   :  { %4731 = vmatpush1.bf16.msra.mxu0 %v12207_v8  ;;  %4772 = vmatpush1.bf16.msra.mxu1 %v12209_v2 }
 0x808   :  { %4732 = vmatprep.subr.bf16.mxu0 %v12213_v37  ;;  %4773 = vmatprep.subr.bf16.mxu1 %v12215_v34 }
 0x80b   :  { %4733 = vmatpush1.bf16.msra.mxu0 %v12219_v36  ;;  %4774 = vmatpush1.bf16.msra.mxu1 %v12221_v15 }
 0x80c   :  { %4734 = vmatprep.subr.bf16.mxu0 %v12225_v12  ;;  %4775 = vmatprep.subr.bf16.mxu1 %v12227_v47 }
 0x80f   :  { %4735 = vmatpush1.bf16.msra.mxu0 %v12231_v62  ;;  %4776 = vmatpush1.bf16.msra.mxu1 %v12233_v3 }
 0x810   :  { %4736 = vmatprep.subr.bf16.mxu0 %v12237_v48  ;;  %4777 = vmatprep.subr.bf16.mxu1 %v12239_v50  ;;  %v12267_v50 = vld [vmem:[#allocation7 + $0x1e0] ss:$16 sps:$4 sm:$0xff]  }
 0x811   :  { %13523 = vst [vmem:[#allocation36_spill] sm:$0xff] %v12267_v50 }
 0x813   :  { %4737 = vmatpush1.bf16.msra.mxu0 %v12243_v54  ;;  %4778 = vmatpush1.bf16.msra.mxu1 %v12245_v42  ;;  %v12269_v54 = vld [vmem:[#allocation7 + $0x1e8] ss:$16 sps:$4 sm:$0xff]  }
 0x814   :  { %4738 = vmatprep.subr.bf16.mxu0 %v12249_v45  ;;  %4779 = vmatprep.subr.bf16.mxu1 %v12251_v46  ;;  %13524 = vst [vmem:[#allocation40_spill] sm:$0xff] %v12269_v54  ;;  %v4380_v46 = vrot.slane %v12102_v60, %v11267_v56  ;;  %v13526_v60 = vld [vmem:[#allocation27_spill] sm:$0xff] }
 0x817   :  { %4739 = vmatpush1.bf16.msra.mxu0 %v12255_v27  ;;  %4780 = vmatpush1.bf16.msra.mxu1 %v12257_v20 }
 0x818   :  { %4740 = vmatprep.subr.bf16.mxu0 %v12261_v11  ;;  %4781 = vmatprep.subr.bf16.mxu1 %v12263_v17 }
 0x81b   :  { %4741 = vmatpush1.bf16.msra.mxu0 %v12267_v50  ;;  %4782 = vmatpush1.bf16.msra.mxu1 %v12269_v54 }
 0x81c   :  { %5231 = vmatprep.subr.bf16.mxu0 %v12067_v6  ;;  %5272 = vmatprep.subr.bf16.mxu1 %v12069_v13 }
 0x81e   :  { %4743 = vmatmul.mubr.bf16.vlgmr.msra.gmra.mrb[32].mxu0 %v4380_v46  ;;  %4784 = vmatmul.mubr.bf16.vlgmr.msra.gmra.mrb[32].mxu1 %v4380_v46  ;;  %v13525_v46 = vld [vmem:[#allocation26_spill] sm:$0xff] }
 0x81f   :  { %5232 = vmatpush1.bf16.msra.mxu0 %v12083_v35  ;;  %5273 = vmatpush1.bf16.msra.mxu1 %v12085_v49 }
 0x820   :  { %5233 = vmatprep.subr.bf16.mxu0 %v12088_v52  ;;  %5274 = vmatprep.subr.bf16.mxu1 %v12090_v53 }
 0x823   :  { %5234 = vmatpush1.bf16.msra.mxu0 %v12094_v55  ;;  %5275 = vmatpush1.bf16.msra.mxu1 %v12096_v58 }
 0x824   :  { %5235 = vmatprep.subr.bf16.mxu0 %v12098_v59  ;;  %5276 = vmatprep.subr.bf16.mxu1 %v12104_v41 }
 0x827   :  { %5236 = vmatpush1.bf16.msra.mxu0 %v12110_v43  ;;  %5277 = vmatpush1.bf16.msra.mxu1 %v12113_v51 }
 0x828   :  { %5237 = vmatprep.subr.bf16.mxu0 %v12117_v61  ;;  %5278 = vmatprep.subr.bf16.mxu1 %v12119_v1 }
 0x82b   :  { %5238 = vmatpush1.bf16.msra.mxu0 %v12123_v57  ;;  %5279 = vmatpush1.bf16.msra.mxu1 %v12125_v4 }
 0x82c   :  { %5239 = vmatprep.subr.bf16.mxu0 %v12129_v63  ;;  %5280 = vmatprep.subr.bf16.mxu1 %v12131_v5 }
 0x82f   :  { %5240 = vmatpush1.bf16.msra.mxu0 %v12135_v14  ;;  %5281 = vmatpush1.bf16.msra.mxu1 %v12137_v16 }
 0x830   :  { %5241 = vmatprep.subr.bf16.mxu0 %v12141_v18  ;;  %5282 = vmatprep.subr.bf16.mxu1 %v12143_v19 }
 0x833   :  { %5242 = vmatpush1.bf16.msra.mxu0 %v12147_v21  ;;  %5283 = vmatpush1.bf16.msra.mxu1 %v12149_v23 }
 0x834   :  { %5243 = vmatprep.subr.bf16.mxu0 %v12153_v24  ;;  %5284 = vmatprep.subr.bf16.mxu1 %v12155_v25 }
 0x837   :  { %5244 = vmatpush1.bf16.msra.mxu0 %v12159_v26  ;;  %5285 = vmatpush1.bf16.msra.mxu1 %v12161_v28 }
 0x838   :  { %5245 = vmatprep.subr.bf16.mxu0 %v12165_v29  ;;  %5286 = vmatprep.subr.bf16.mxu1 %v12167_v30 }
 0x83b   :  { %5246 = vmatpush1.bf16.msra.mxu0 %v12171_v31  ;;  %5287 = vmatpush1.bf16.msra.mxu1 %v12173_v32 }
 0x83c   :  { %5247 = vmatprep.subr.bf16.mxu0 %v12177_v22  ;;  %5288 = vmatprep.subr.bf16.mxu1 %v12179_v10 }
 0x83f   :  { %5248 = vmatpush1.bf16.msra.mxu0 %v12183_v33  ;;  %5289 = vmatpush1.bf16.msra.mxu1 %v12185_v0 }
 0x840   :  { %5249 = vmatprep.subr.bf16.mxu0 %v12189_v7  ;;  %5290 = vmatprep.subr.bf16.mxu1 %v12191_v38 }
 0x843   :  { %5250 = vmatpush1.bf16.msra.mxu0 %v12195_v40  ;;  %5291 = vmatpush1.bf16.msra.mxu1 %v12197_v44 }
 0x844   :  { %5251 = vmatprep.subr.bf16.mxu0 %v12201_v9  ;;  %5292 = vmatprep.subr.bf16.mxu1 %v12203_v39 }
 0x847   :  { %5252 = vmatpush1.bf16.msra.mxu0 %v12207_v8  ;;  %5293 = vmatpush1.bf16.msra.mxu1 %v12209_v2 }
 0x848   :  { %5253 = vmatprep.subr.bf16.mxu0 %v12213_v37  ;;  %5294 = vmatprep.subr.bf16.mxu1 %v12215_v34 }
 0x84b   :  { %5254 = vmatpush1.bf16.msra.mxu0 %v12219_v36  ;;  %5295 = vmatpush1.bf16.msra.mxu1 %v12221_v15  ;;  %v13527_v36 = vld [vmem:[#allocation30_spill] sm:$0xff] }
 0x84c   :  { %5255 = vmatprep.subr.bf16.mxu0 %v12225_v12  ;;  %5296 = vmatprep.subr.bf16.mxu1 %v12227_v47 }
 0x84f   :  { %5256 = vmatpush1.bf16.msra.mxu0 %v12231_v62  ;;  %5297 = vmatpush1.bf16.msra.mxu1 %v12233_v3 }
 0x850   :  { %5257 = vmatprep.subr.bf16.mxu0 %v12237_v48  ;;  %5298 = vmatprep.subr.bf16.mxu1 %v13525_v46  ;;  %v13529_v48 = vld [vmem:[#allocation15_spill] sm:$0xff] }
 0x853   :  { %5258 = vmatpush1.bf16.msra.mxu0 %v13526_v60  ;;  %5299 = vmatpush1.bf16.msra.mxu1 %v12245_v42  ;;  %v13528_v60 = vld [vmem:[#allocation14_spill] sm:$0xff] }
 0x854   :  { %5259 = vmatprep.subr.bf16.mxu0 %v12249_v45  ;;  %5300 = vmatprep.subr.bf16.mxu1 %v13527_v36 }
 0x857   :  { %5260 = vmatpush1.bf16.msra.mxu0 %v12255_v27  ;;  %5301 = vmatpush1.bf16.msra.mxu1 %v12257_v20 }
 0x858   :  { %5261 = vmatprep.subr.bf16.mxu0 %v12261_v11  ;;  %5302 = vmatprep.subr.bf16.mxu1 %v12263_v17 }
 0x85b   :  { %5262 = vmatpush1.bf16.msra.mxu0 %v12267_v50  ;;  %5303 = vmatpush1.bf16.msra.mxu1 %v12269_v54  ;;  %v13530_v54 = vld [vmem:[#allocation16_spill] sm:$0xff] }
 0x85c   :  { %5752 = vmatprep.subr.bf16.mxu0 %v12067_v6  ;;  %5793 = vmatprep.subr.bf16.mxu1 %v12069_v13  ;;  %v13531_v13 = vld [vmem:[#allocation17_spill] sm:$0xff] }
 0x8b1   :  { %v4200_v42 = vpop.f32.mrb[28].mxu0  ;;  %v4241_v45 = vpop.f32.mrb[28].mxu1 }
 0x8b2   :  { %v4201_v36 = vadd.f32 %v4200_v42, %v13528_v60  ;;  %v4202_v46 = vpop.f32.mrb[29].mxu0  ;;  %v4243_v27 = vpop.f32.mrb[29].mxu1  ;;  %v4242_v15 = vadd.f32 %v4241_v45, %v13531_v13 }
 0x8b3   :  { %v4203_v20 = vadd.f32 %v4202_v46, %v13529_v48  ;;  %v4204_v3 = vpop.f32.mrb[30].mxu0  ;;  %v4245_v11 = vpop.f32.mrb[30].mxu1  ;;  %v4244_v6 = vadd.f32 %v4243_v27, %v13530_v54 }
 0x8b4   :  { %v9378_v62 = vmul.f32 -1.442695, %v4201_v36  ;;  %v4205_v17 = vpop.f32.mrb[31].mxu0  ;;  %v4246_v47 = vpop.f32.mrb[31].mxu1  ;;  %v13532_v3 = vld [vmem:[#allocation37_spill] sm:$0xff] }
 0x8b5   :  { %v9379_v50 = vmul.f32 -1.442695, %v4203_v20  ;;  %v9380_v12 = vmul.f32 -1.442695, %v4244_v6 }
 0x8b6   :  { %10739 = vpow2.f32 %v9378_v62 }
 0x8b7   :  { %10741 = vpow2.f32 %v9379_v50 }
 0x8b8   :  { %10743 = vpow2.f32 %v9380_v12 }
 0x8b9   :  { %10745 = vtanh.f32 %v4242_v15  ;;  %v13534_v15 = vld [vmem:[#allocation13_spill] sm:$0xff] }
 0x8ba   :  { %v13535_v12 = vsub.s32 0, %v13534_v15  ;;  %v13537_v6 = vsub.s32 1, %v13534_v15 }
 0x8c0   :  { %v10740_v34 = vpop.eup %10739 }
 0x8c1   :  { %v10742_v37 = vpop.eup %10741  ;;  %v4251_v42 = vadd.f32 1.0, %v10740_v34 }
 0x8c2   :  { %v4257_v60 = vadd.f32 1.0, %v10742_v37  ;;  %v10744_v11 = vpop.eup %10743  ;;  %v4275_v37 = vld [vmem:[%s13196_s5] sm:$0xf] }
 0x8c3   :  { %10747 = vrcp.f32 %v4251_v42  ;;  %v10746_v36 = vpop.eup %10745  ;;  %v4264_v62 = vadd.f32 1.0, %v10744_v11  ;;  %v12356_v46 = vrot.slane %v4275_v37, %v13535_v12  ;;  %v12360_v13 = vrot.slane %v4275_v37, %v13537_v6 }
 0x8c4   :  { %10749 = vrcp.f32 %v4257_v60  ;;  %v13539_v6 = vsub.s32 2, %v13534_v15 }
 0x8c5   :  { %10751 = vrcp.f32 %v4264_v62  ;;  %13536 = vst [vmem:[#allocation38_spill] sm:$0xff] %v12356_v46 }
 0x8cd   :  { %v10748_v17 = vpop.eup %10747 }
 0x8ce   :  { %v10750_v47 = vpop.eup %10749  ;;  %v4268_v20 = vmul.f32 %v10748_v17, %v10746_v36 }
 0x8cf   :  { %v4267_v48 = vmul.f32 %v10750_v47, %v13532_v3  ;;  %v10752_v50 = vpop.eup %10751 }
 0x8d1   :  { %v4269_v27 = vadd.f32 %v4268_v20, %v4267_v48 }
 0x8d3   :  { %10753 = vtanh.f32 %v4269_v27 }
 0x8dd   :  { %v10754_v54 = vpop.eup %10753 }
 0x8de   :  { %v4271_v45 = vmul.f32 %v10754_v54, %v10752_v50  ;;  %v13538_v54 = vsub.s32 3, %v13534_v15 }
 0x8e0   :  { %v12348_v34 = vpack.c.bf16 %v4271_v45, %v4271_v45  ;;  %v12366_v45 = vrot.slane %v4275_v37, %v13538_v54 }
 0x8e2   :  { %13533 = vst [vmem:[#allocation35_spill] sm:$0xff] %v12348_v34  ;;  %4274 = vst [vmem:[#allocation2 + $0x7] sm:$0x1] %v12348_v34 }
 0x8f1   :  { %v4744_v42 = vpop.f32.mrb[32].mxu0  ;;  %v4785_v60 = vpop.f32.mrb[32].mxu1 }
 0x8f2   :  { %v4745_v11 = vadd.f32 %v4744_v42, %v12356_v46  ;;  %v4746_v36 = vpop.f32.mrb[33].mxu0  ;;  %v4787_v17 = vpop.f32.mrb[33].mxu1  ;;  %v12371_v42 = vrot.slane %v4275_v37, %v13539_v6 }
 0x8f3   :  { %v4747_v47 = vadd.f32 %v4746_v36, %v12360_v13  ;;  %v4748_v20 = vpop.f32.mrb[34].mxu0  ;;  %v4789_v62 = vpop.f32.mrb[34].mxu1  ;;  %v4788_v12 = vadd.f32 %v4787_v17, %v12366_v45 }
 0x8f4   :  { %v9446_v3 = vmul.f32 -1.442695, %v4745_v11  ;;  %v4749_v48 = vpop.f32.mrb[35].mxu0  ;;  %v4790_v27 = vpop.f32.mrb[35].mxu1  ;;  %v4786_v36 = vadd.f32 %v4785_v60, %v12371_v42 }
 0x8f5   :  { %v9447_v50 = vmul.f32 -1.442695, %v4747_v47  ;;  %v9448_v34 = vmul.f32 -1.442695, %v4788_v12 }
 0x8f6   :  { %10755 = vpow2.f32 %v9446_v3 }
 0x8f7   :  { %10757 = vpow2.f32 %v9447_v50 }
 0x8f8   :  { %10759 = vpow2.f32 %v9448_v34 }
 0x8f9   :  { %10761 = vtanh.f32 %v4786_v36  ;;  %v5340_v36 = vld [vmem:[#allocation2 + $0x2] sm:$0x1] }
 0x900   :  { %v10756_v20 = vpop.eup %10755 }
 0x901   :  { %v10758_v11 = vpop.eup %10757  ;;  %v4795_v62 = vadd.f32 1.0, %v10756_v20 }
 0x902   :  { %v4801_v47 = vadd.f32 1.0, %v10758_v11  ;;  %v10760_v48 = vpop.eup %10759 }
 0x903   :  { %10763 = vrcp.f32 %v4795_v62  ;;  %v10762_v3 = vpop.eup %10761  ;;  %v4808_v54 = vadd.f32 1.0, %v10760_v48 }
 0x904   :  { %10765 = vrcp.f32 %v4801_v47 }
 0x905   :  { %10767 = vrcp.f32 %v4808_v54 }
 0x90d   :  { %v10764_v27 = vpop.eup %10763 }
 0x90e   :  { %v10766_v50 = vpop.eup %10765  ;;  %v4812_v17 = vmul.f32 %v10764_v27, %v10762_v3 }
 0x90f   :  { %v4811_v15 = vmul.f32 0.0, %v10766_v50  ;;  %v10768_v60 = vpop.eup %10767 }
 0x911   :  { %v12374_v37 = vadd.f32 %v4812_v17, %v4811_v15 }
 0x913   :  { %10769 = vtanh.f32 %v12374_v37 }
 0x91d   :  { %v10770_v12 = vpop.eup %10769 }
 0x91e   :  { %v4815_v6 = vmul.f32 %v10770_v12, %v10768_v60 }
 0x920   :  { %v4816_v34 = vpack.c.bf16 %v4815_v6, %v4815_v6 }
 0x922   :  { %4817 = vst [vmem:[#allocation2] sm:$0x1] %v4816_v34  ;;  %4818 = vst [vmem:[#allocation3] sm:$0x1] %v4816_v34 }
 0x929   :  { %v9449_v20 = vld.sshfl [vmem:[#allocation3] sm:$0x11 pattern:$0x75316420] }
 0x92a   :  { %v4894_v11 = vcombine.high %v9449_v20, %v9449_v20  ;;  %5341 = vst [vmem:[#allocation3 + $0x1] sm:$0x1] %v5340_v36  ;;  %v4901_v47 = vrot.slane %v9449_v20, %v11267_v56  ;;  %v5861_v36 = vld [vmem:[#allocation2 + $0x3] sm:$0x1] }
 0x92c   :  { %v4908_v62 = vrot.slane %v4894_v11, %v11267_v56 }
 0x92e   :  { %5263 = vmatprep.mubr.bf16.mxu0 %v4908_v62  ;;  %5304 = vmatprep.mubr.bf16.mxu1 %v4908_v62 }
 0x92f   :  { %5264 = vmatmul.mubr.bf16.vlgmr.msra.gmra.mrb[36].mxu0 %v4901_v47  ;;  %5305 = vmatmul.mubr.bf16.vlgmr.msra.gmra.mrb[36].mxu1 %v4901_v47  ;;  %v12456_v47 = vld [vmem:[#allocation7] ss:$16 sps:$4 sm:$0xff]  }
 0x930   :  { %5753 = vmatpush1.bf16.msra.mxu0 %v12083_v35  ;;  %5794 = vmatpush1.bf16.msra.mxu1 %v12085_v49  ;;  %v13540_v35 = vld [vmem:[#allocation39_spill] sm:$0xff]  ;;  %v13541_v49 = vld [vmem:[#allocation18_spill] sm:$0xff] }
 0x931   :  { %5754 = vmatprep.subr.bf16.mxu0 %v12088_v52  ;;  %5795 = vmatprep.subr.bf16.mxu1 %v12090_v53  ;;  %v13542_v52 = vld [vmem:[#allocation19_spill] sm:$0xff]  ;;  %v13543_v53 = vld [vmem:[#allocation20_spill] sm:$0xff] }
 0x934   :  { %5755 = vmatpush1.bf16.msra.mxu0 %v12094_v55  ;;  %5796 = vmatpush1.bf16.msra.mxu1 %v12096_v58  ;;  %v13544_v55 = vld [vmem:[#allocation21_spill] sm:$0xff]  ;;  %v13545_v58 = vld [vmem:[#allocation22_spill] sm:$0xff] }
 0x935   :  { %5756 = vmatprep.subr.bf16.mxu0 %v12098_v59  ;;  %5797 = vmatprep.subr.bf16.mxu1 %v12104_v41  ;;  %v13546_v59 = vld [vmem:[#allocation23_spill] sm:$0xff]  ;;  %v13547_v41 = vld [vmem:[#allocation24_spill] sm:$0xff] }
 0x938   :  { %5757 = vmatpush1.bf16.msra.mxu0 %v12110_v43  ;;  %5798 = vmatpush1.bf16.msra.mxu1 %v12113_v51  ;;  %v13548_v43 = vld [vmem:[#allocation25_spill] sm:$0xff]  ;;  %v13549_v51 = vld [vmem:[#allocation26_spill] sm:$0xff] }
 0x939   :  { %5758 = vmatprep.subr.bf16.mxu0 %v12117_v61  ;;  %5799 = vmatprep.subr.bf16.mxu1 %v12119_v1  ;;  %v13550_v61 = vld [vmem:[#allocation27_spill] sm:$0xff]  ;;  %v13551_v1 = vld [vmem:[#allocation28_spill] sm:$0xff] }
 0x93c   :  { %5759 = vmatpush1.bf16.msra.mxu0 %v12123_v57  ;;  %5800 = vmatpush1.bf16.msra.mxu1 %v12125_v4  ;;  %v13552_v57 = vld [vmem:[#allocation29_spill] sm:$0xff]  ;;  %v13553_v4 = vld [vmem:[#allocation30_spill] sm:$0xff] }
 0x93d   :  { %5760 = vmatprep.subr.bf16.mxu0 %v12129_v63  ;;  %5801 = vmatprep.subr.bf16.mxu1 %v12131_v5  ;;  %v13554_v63 = vld [vmem:[#allocation31_spill] sm:$0xff]  ;;  %v13555_v5 = vld [vmem:[#allocation32_spill] sm:$0xff] }
 0x940   :  { %5761 = vmatpush1.bf16.msra.mxu0 %v12135_v14  ;;  %5802 = vmatpush1.bf16.msra.mxu1 %v12137_v16  ;;  %v13556_v14 = vld [vmem:[#allocation33_spill] sm:$0xff]  ;;  %v13557_v16 = vld [vmem:[#allocation34_spill] sm:$0xff] }
 0x941   :  { %5762 = vmatprep.subr.bf16.mxu0 %v12141_v18  ;;  %5803 = vmatprep.subr.bf16.mxu1 %v12143_v19  ;;  %v13558_v18 = vld [vmem:[#allocation36_spill] sm:$0xff] }
 0x942   :  { %v13559_v19 = vld [vmem:[#allocation40_spill] sm:$0xff] }
 0x944   :  { %5763 = vmatpush1.bf16.msra.mxu0 %v12147_v21  ;;  %5804 = vmatpush1.bf16.msra.mxu1 %v12149_v23  ;;  %v12441_v21 = vld [vmem:[#allocation7 + $0x4] ss:$16 sps:$4 sm:$0xff]   ;;  %v12443_v23 = vld [vmem:[#allocation7 + $0xc] ss:$16 sps:$4 sm:$0xff]  }
 0x945   :  { %5764 = vmatprep.subr.bf16.mxu0 %v12153_v24  ;;  %5805 = vmatprep.subr.bf16.mxu1 %v12155_v25  ;;  %13560 = vst [vmem:[#allocation14_spill] sm:$0xff] %v12441_v21  ;;  %13561 = vst [vmem:[#allocation15_spill] sm:$0xff] %v12443_v23 }
 0x948   :  { %5765 = vmatpush1.bf16.msra.mxu0 %v12159_v26  ;;  %5806 = vmatpush1.bf16.msra.mxu1 %v12161_v28 }
 0x949   :  { %5766 = vmatprep.subr.bf16.mxu0 %v12165_v29  ;;  %5807 = vmatprep.subr.bf16.mxu1 %v12167_v30 }
 0x94c   :  { %5767 = vmatpush1.bf16.msra.mxu0 %v12171_v31  ;;  %5808 = vmatpush1.bf16.msra.mxu1 %v12173_v32 }
 0x94d   :  { %5768 = vmatprep.subr.bf16.mxu0 %v12177_v22  ;;  %5809 = vmatprep.subr.bf16.mxu1 %v12179_v10 }
 0x950   :  { %5769 = vmatpush1.bf16.msra.mxu0 %v12183_v33  ;;  %5810 = vmatpush1.bf16.msra.mxu1 %v12185_v0 }
 0x951   :  { %5770 = vmatprep.subr.bf16.mxu0 %v12189_v7  ;;  %5811 = vmatprep.subr.bf16.mxu1 %v12191_v38 }
 0x954   :  { %5771 = vmatpush1.bf16.msra.mxu0 %v12195_v40  ;;  %5812 = vmatpush1.bf16.msra.mxu1 %v12197_v44 }
 0x955   :  { %5772 = vmatprep.subr.bf16.mxu0 %v12201_v9  ;;  %5813 = vmatprep.subr.bf16.mxu1 %v12203_v39 }
 0x958   :  { %5773 = vmatpush1.bf16.msra.mxu0 %v12207_v8  ;;  %5814 = vmatpush1.bf16.msra.mxu1 %v12209_v2 }
 0x959   :  { %5774 = vmatprep.subr.bf16.mxu0 %v13540_v35  ;;  %5815 = vmatprep.subr.bf16.mxu1 %v13541_v49  ;;  %v12463_v49 = vld [vmem:[#allocation7 + $0x24] ss:$16 sps:$4 sm:$0xff]  }
 0x95c   :  { %5775 = vmatpush1.bf16.msra.mxu0 %v13542_v52  ;;  %5816 = vmatpush1.bf16.msra.mxu1 %v13543_v53  ;;  %v12465_v52 = vld [vmem:[#allocation7 + $0x2c] ss:$16 sps:$4 sm:$0xff]   ;;  %v12467_v53 = vld [vmem:[#allocation7 + $0x20] ss:$16 sps:$4 sm:$0xff]  }
 0x95d   :  { %5776 = vmatprep.subr.bf16.mxu0 %v13544_v55  ;;  %5817 = vmatprep.subr.bf16.mxu1 %v13545_v58  ;;  %v12469_v55 = vld [vmem:[#allocation7 + $0x28] ss:$16 sps:$4 sm:$0xff]   ;;  %v12475_v58 = vld [vmem:[#allocation7 + $0x44] ss:$16 sps:$4 sm:$0xff]  }
 0x960   :  { %5777 = vmatpush1.bf16.msra.mxu0 %v13546_v59  ;;  %5818 = vmatpush1.bf16.msra.mxu1 %v13547_v41  ;;  %v12477_v59 = vld [vmem:[#allocation7 + $0x4c] ss:$16 sps:$4 sm:$0xff]   ;;  %v12479_v41 = vld [vmem:[#allocation7 + $0x40] ss:$16 sps:$4 sm:$0xff]  }
 0x961   :  { %5778 = vmatprep.subr.bf16.mxu0 %v13548_v43  ;;  %5819 = vmatprep.subr.bf16.mxu1 %v13549_v51  ;;  %v12481_v43 = vld [vmem:[#allocation7 + $0x48] ss:$16 sps:$4 sm:$0xff]   ;;  %v12487_v51 = vld [vmem:[#allocation7 + $0x64] ss:$16 sps:$4 sm:$0xff]  }
 0x964   :  { %5779 = vmatpush1.bf16.msra.mxu0 %v13550_v61  ;;  %5820 = vmatpush1.bf16.msra.mxu1 %v13551_v1  ;;  %v12489_v61 = vld [vmem:[#allocation7 + $0x6c] ss:$16 sps:$4 sm:$0xff]   ;;  %v12491_v1 = vld [vmem:[#allocation7 + $0x60] ss:$16 sps:$4 sm:$0xff]  }
 0x965   :  { %5780 = vmatprep.subr.bf16.mxu0 %v13552_v57  ;;  %5821 = vmatprep.subr.bf16.mxu1 %v13553_v4  ;;  %v12493_v57 = vld [vmem:[#allocation7 + $0x68] ss:$16 sps:$4 sm:$0xff]   ;;  %v12499_v4 = vld [vmem:[#allocation7 + $0x84] ss:$16 sps:$4 sm:$0xff]  }
 0x968   :  { %5781 = vmatpush1.bf16.msra.mxu0 %v13554_v63  ;;  %5822 = vmatpush1.bf16.msra.mxu1 %v13555_v5  ;;  %v12501_v63 = vld [vmem:[#allocation7 + $0x8c] ss:$16 sps:$4 sm:$0xff]   ;;  %v12503_v5 = vld [vmem:[#allocation7 + $0x80] ss:$16 sps:$4 sm:$0xff]  }
 0x969   :  { %5782 = vmatprep.subr.bf16.mxu0 %v13556_v14  ;;  %5823 = vmatprep.subr.bf16.mxu1 %v13557_v16  ;;  %v12505_v14 = vld [vmem:[#allocation7 + $0x88] ss:$16 sps:$4 sm:$0xff]   ;;  %v12511_v16 = vld [vmem:[#allocation7 + $0xa4] ss:$16 sps:$4 sm:$0xff]  }
 0x96c   :  { %5783 = vmatpush1.bf16.msra.mxu0 %v13558_v18  ;;  %5824 = vmatpush1.bf16.msra.mxu1 %v13559_v19  ;;  %v12513_v18 = vld [vmem:[#allocation7 + $0xac] ss:$16 sps:$4 sm:$0xff]   ;;  %v12515_v19 = vld [vmem:[#allocation7 + $0xa0] ss:$16 sps:$4 sm:$0xff]  }
 0x96d   :  { %6273 = vmatprep.subr.bf16.mxu0 %v12441_v21  ;;  %6314 = vmatprep.subr.bf16.mxu1 %v12443_v23 }
 0xa02   :  { %v5265_v24 = vpop.f32.mrb[36].mxu0  ;;  %v5306_v25 = vpop.f32.mrb[36].mxu1 }
 0xa03   :  { %v5266_v26 = vadd.f32 %v5265_v24, %v12356_v46  ;;  %v5267_v28 = vpop.f32.mrb[37].mxu0  ;;  %v5308_v29 = vpop.f32.mrb[37].mxu1  ;;  %v5307_v40 = vadd.f32 %v5306_v25, %v12371_v42  ;;  %v12517_v24 = vld [vmem:[#allocation7 + $0xa8] ss:$16 sps:$4 sm:$0xff]   ;;  %v12523_v25 = vld [vmem:[#allocation7 + $0xc4] ss:$16 sps:$4 sm:$0xff]  }
 0xa04   :  { %v5268_v30 = vadd.f32 %v5267_v28, %v12360_v13  ;;  %v5269_v31 = vpop.f32.mrb[38].mxu0  ;;  %v5310_v32 = vpop.f32.mrb[38].mxu1  ;;  %v5309_v7 = vadd.f32 %v5308_v29, %v12366_v45  ;;  %v12527_v28 = vld [vmem:[#allocation7 + $0xc0] ss:$16 sps:$4 sm:$0xff]   ;;  %v12529_v29 = vld [vmem:[#allocation7 + $0xc8] ss:$16 sps:$4 sm:$0xff]  }
 0xa05   :  { %v9514_v22 = vmul.f32 -1.442695, %v5266_v26  ;;  %v5270_v10 = vpop.f32.mrb[39].mxu0  ;;  %v5311_v33 = vpop.f32.mrb[39].mxu1  ;;  %v12525_v26 = vld [vmem:[#allocation7 + $0xcc] ss:$16 sps:$4 sm:$0xff]  }
 0xa06   :  { %v9515_v0 = vmul.f32 -1.442695, %v5268_v30  ;;  %v9516_v38 = vmul.f32 -1.442695, %v5309_v7  ;;  %v12535_v30 = vld [vmem:[#allocation7 + $0xe4] ss:$16 sps:$4 sm:$0xff]  }
 0xa07   :  { %10771 = vpow2.f32 %v9514_v22  ;;  %v12537_v31 = vld [vmem:[#allocation7 + $0xec] ss:$16 sps:$4 sm:$0xff]   ;;  %v12539_v32 = vld [vmem:[#allocation7 + $0xe0] ss:$16 sps:$4 sm:$0xff]   ;;  %v12541_v22 = vld [vmem:[#allocation7 + $0xe8] ss:$16 sps:$4 sm:$0xff]  }
 0xa08   :  { %10773 = vpow2.f32 %v9515_v0  ;;  %v12547_v10 = vld [vmem:[#allocation7 + $0x104] ss:$16 sps:$4 sm:$0xff]   ;;  %v12549_v33 = vld [vmem:[#allocation7 + $0x10c] ss:$16 sps:$4 sm:$0xff]   ;;  %v12551_v0 = vld [vmem:[#allocation7 + $0x100] ss:$16 sps:$4 sm:$0xff]  }
 0xa09   :  { %10775 = vpow2.f32 %v9516_v38  ;;  %v12553_v7 = vld [vmem:[#allocation7 + $0x108] ss:$16 sps:$4 sm:$0xff]   ;;  %v12559_v38 = vld [vmem:[#allocation7 + $0x124] ss:$16 sps:$4 sm:$0xff]  }
 0xa0a   :  { %10777 = vtanh.f32 %v5307_v40  ;;  %v12561_v40 = vld [vmem:[#allocation7 + $0x12c] ss:$16 sps:$4 sm:$0xff]  }
 0xa11   :  { %v10772_v44 = vpop.eup %10771 }
 0xa12   :  { %v10774_v9 = vpop.eup %10773  ;;  %v5316_v39 = vadd.f32 1.0, %v10772_v44  ;;  %v12563_v44 = vld [vmem:[#allocation7 + $0x120] ss:$16 sps:$4 sm:$0xff]  }
 0xa13   :  { %v5322_v8 = vadd.f32 1.0, %v10774_v9  ;;  %v10776_v2 = vpop.eup %10775  ;;  %v12565_v9 = vld [vmem:[#allocation7 + $0x128] ss:$16 sps:$4 sm:$0xff]  }
 0xa14   :  { %10779 = vrcp.f32 %v5316_v39  ;;  %v10778_v48 = vpop.eup %10777  ;;  %v5329_v17 = vadd.f32 1.0, %v10776_v2  ;;  %v12571_v39 = vld [vmem:[#allocation7 + $0x144] ss:$16 sps:$4 sm:$0xff]   ;;  %v12575_v2 = vld [vmem:[#allocation7 + $0x140] ss:$16 sps:$4 sm:$0xff]  }
 0xa15   :  { %10781 = vrcp.f32 %v5322_v8  ;;  %v12573_v8 = vld [vmem:[#allocation7 + $0x14c] ss:$16 sps:$4 sm:$0xff]  }
 0xa16   :  { %10783 = vrcp.f32 %v5329_v17  ;;  %v12589_v17 = vld [vmem:[#allocation7 + $0x168] ss:$16 sps:$4 sm:$0xff]  }
 0xa17   :  { %13566 = vst [vmem:[#allocation39_spill] sm:$0xff] %v12589_v17 }
 0xa1e   :  { %v10780_v3 = vpop.eup %10779 }
 0xa1f   :  { %v10782_v27 = vpop.eup %10781  ;;  %v5333_v50 = vmul.f32 %v10780_v3, %v10778_v48  ;;  %v12577_v48 = vld [vmem:[#allocation7 + $0x148] ss:$16 sps:$4 sm:$0xff]   ;;  %v12583_v3 = vld [vmem:[#allocation7 + $0x164] ss:$16 sps:$4 sm:$0xff]  }
 0xa20   :  { %v5332_v54 = vmul.f32 %v10782_v27, %v12374_v37  ;;  %v10784_v60 = vpop.eup %10783  ;;  %v12458_v37 = vld [vmem:[#allocation7 + $0x8] ss:$16 sps:$4 sm:$0xff]   ;;  %13562 = vst [vmem:[#allocation16_spill] sm:$0xff] %v12577_v48  ;;  %13563 = vst [vmem:[#allocation17_spill] sm:$0xff] %v12583_v3  ;;  %v12585_v27 = vld [vmem:[#allocation7 + $0x16c] ss:$16 sps:$4 sm:$0xff]  }
 0xa21   :  { %13564 = vst [vmem:[#allocation37_spill] sm:$0xff] %v12585_v27 }
 0xa22   :  { %v12452_v15 = vadd.f32 %v5333_v50, %v5332_v54  ;;  %v12587_v50 = vld [vmem:[#allocation7 + $0x160] ss:$16 sps:$4 sm:$0xff]   ;;  %v12595_v54 = vld [vmem:[#allocation7 + $0x184] ss:$16 sps:$4 sm:$0xff]  }
 0xa23   :  { %13565 = vst [vmem:[#allocation13_spill] sm:$0xff] %v12587_v50  ;;  %13567 = vst [vmem:[#allocation18_spill] sm:$0xff] %v12595_v54 }
 0xa24   :  { %10785 = vtanh.f32 %v12452_v15 }
 0xa2e   :  { %v10786_v12 = vpop.eup %10785 }
 0xa2f   :  { %v5336_v6 = vmul.f32 %v10786_v12, %v10784_v60  ;;  %v12597_v60 = vld [vmem:[#allocation7 + $0x18c] ss:$16 sps:$4 sm:$0xff]   ;;  %v12599_v12 = vld [vmem:[#allocation7 + $0x180] ss:$16 sps:$4 sm:$0xff]  }
 0xa30   :  { %13568 = vst [vmem:[#allocation19_spill] sm:$0xff] %v12597_v60  ;;  %13569 = vst [vmem:[#allocation20_spill] sm:$0xff] %v12599_v12 }
 0xa31   :  { %v5337_v34 = vpack.c.bf16 %v5336_v6, %v5336_v6  ;;  %v12601_v6 = vld [vmem:[#allocation7 + $0x188] ss:$16 sps:$4 sm:$0xff]  }
 0xa32   :  { %13570 = vst [vmem:[#allocation21_spill] sm:$0xff] %v12601_v6 }
 0xa33   :  { %5338 = vst [vmem:[#allocation2 + $0x1] sm:$0x1] %v5337_v34  ;;  %5339 = vst [vmem:[#allocation3] sm:$0x1] %v5337_v34  ;;  %v12607_v34 = vld [vmem:[#allocation7 + $0x1a0] ss:$16 sps:$4 sm:$0xff]  }
 0xa34   :  { %13571 = vst [vmem:[#allocation22_spill] sm:$0xff] %v12607_v34 }
 0xa3a   :  { %v9517_v20 = vld.sshfl [vmem:[#allocation3] sm:$0x11 pattern:$0x75316420] }
 0xa3b   :  { %v5415_v11 = vcombine.high %v9517_v20, %v9517_v20  ;;  %5862 = vst [vmem:[#allocation3 + $0x1] sm:$0x1] %v5861_v36  ;;  %v5422_v35 = vrot.slane %v9517_v20, %v11267_v56  ;;  %v12609_v36 = vld [vmem:[#allocation7 + $0x1a4] ss:$16 sps:$4 sm:$0xff]   ;;  %v12611_v20 = vld [vmem:[#allocation7 + $0x1a8] ss:$16 sps:$4 sm:$0xff]  }
 0xa3c   :  { %13572 = vst [vmem:[#allocation23_spill] sm:$0xff] %v12609_v36  ;;  %13573 = vst [vmem:[#allocation24_spill] sm:$0xff] %v12611_v20 }
 0xa3d   :  { %v5429_v62 = vrot.slane %v5415_v11, %v11267_v56  ;;  %v12613_v11 = vld [vmem:[#allocation7 + $0x1ac] ss:$16 sps:$4 sm:$0xff]  }
 0xa3e   :  { %13574 = vst [vmem:[#allocation25_spill] sm:$0xff] %v12613_v11 }
 0xa3f   :  { %5784 = vmatprep.mubr.bf16.mxu0 %v5429_v62  ;;  %5825 = vmatprep.mubr.bf16.mxu1 %v5429_v62  ;;  %v12615_v62 = vld [vmem:[#allocation7 + $0x1c4] ss:$16 sps:$4 sm:$0xff]  }
 0xa40   :  { %5785 = vmatmul.mubr.bf16.vlgmr.msra.gmra.mrb[40].mxu0 %v5422_v35  ;;  %5826 = vmatmul.mubr.bf16.vlgmr.msra.gmra.mrb[40].mxu1 %v5422_v35  ;;  %13575 = vst [vmem:[#allocation26_spill] sm:$0xff] %v12615_v62  ;;  %v12618_v35 = vld [vmem:[#allocation7 + $0x1cc] ss:$16 sps:$4 sm:$0xff]  }
 0xa41   :  { %6274 = vmatpush1.bf16.msra.mxu0 %v12456_v47  ;;  %6315 = vmatpush1.bf16.msra.mxu1 %v12458_v37  ;;  %13576 = vst [vmem:[#allocation27_spill] sm:$0xff] %v12618_v35 }
 0xa42   :  { %6275 = vmatprep.subr.bf16.mxu0 %v12463_v49  ;;  %6316 = vmatprep.subr.bf16.mxu1 %v12465_v52 }
 0xa45   :  { %6276 = vmatpush1.bf16.msra.mxu0 %v12467_v53  ;;  %6317 = vmatpush1.bf16.msra.mxu1 %v12469_v55 }
 0xa46   :  { %6277 = vmatprep.subr.bf16.mxu0 %v12475_v58  ;;  %6318 = vmatprep.subr.bf16.mxu1 %v12477_v59 }
 0xa49   :  { %6278 = vmatpush1.bf16.msra.mxu0 %v12479_v41  ;;  %6319 = vmatpush1.bf16.msra.mxu1 %v12481_v43 }
 0xa4a   :  { %6279 = vmatprep.subr.bf16.mxu0 %v12487_v51  ;;  %6320 = vmatprep.subr.bf16.mxu1 %v12489_v61 }
 0xa4d   :  { %6280 = vmatpush1.bf16.msra.mxu0 %v12491_v1  ;;  %6321 = vmatpush1.bf16.msra.mxu1 %v12493_v57 }
 0xa4e   :  { %6281 = vmatprep.subr.bf16.mxu0 %v12499_v4  ;;  %6322 = vmatprep.subr.bf16.mxu1 %v12501_v63 }
 0xa51   :  { %6282 = vmatpush1.bf16.msra.mxu0 %v12503_v5  ;;  %6323 = vmatpush1.bf16.msra.mxu1 %v12505_v14 }
 0xa52   :  { %6283 = vmatprep.subr.bf16.mxu0 %v12511_v16  ;;  %6324 = vmatprep.subr.bf16.mxu1 %v12513_v18 }
 0xa55   :  { %6284 = vmatpush1.bf16.msra.mxu0 %v12515_v19  ;;  %6325 = vmatpush1.bf16.msra.mxu1 %v12517_v24 }
 0xa56   :  { %6285 = vmatprep.subr.bf16.mxu0 %v12523_v25  ;;  %6326 = vmatprep.subr.bf16.mxu1 %v12525_v26 }
 0xa59   :  { %6286 = vmatpush1.bf16.msra.mxu0 %v12527_v28  ;;  %6327 = vmatpush1.bf16.msra.mxu1 %v12529_v29 }
 0xa5a   :  { %6287 = vmatprep.subr.bf16.mxu0 %v12535_v30  ;;  %6328 = vmatprep.subr.bf16.mxu1 %v12537_v31 }
 0xa5d   :  { %6288 = vmatpush1.bf16.msra.mxu0 %v12539_v32  ;;  %6329 = vmatpush1.bf16.msra.mxu1 %v12541_v22 }
 0xa5e   :  { %6289 = vmatprep.subr.bf16.mxu0 %v12547_v10  ;;  %6330 = vmatprep.subr.bf16.mxu1 %v12549_v33 }
 0xa61   :  { %6290 = vmatpush1.bf16.msra.mxu0 %v12551_v0  ;;  %6331 = vmatpush1.bf16.msra.mxu1 %v12553_v7 }
 0xa62   :  { %6291 = vmatprep.subr.bf16.mxu0 %v12559_v38  ;;  %6332 = vmatprep.subr.bf16.mxu1 %v12561_v40 }
 0xa65   :  { %6292 = vmatpush1.bf16.msra.mxu0 %v12563_v44  ;;  %6333 = vmatpush1.bf16.msra.mxu1 %v12565_v9 }
 0xa66   :  { %6293 = vmatprep.subr.bf16.mxu0 %v12571_v39  ;;  %6334 = vmatprep.subr.bf16.mxu1 %v12573_v8 }
 0xa69   :  { %6294 = vmatpush1.bf16.msra.mxu0 %v12575_v2  ;;  %6335 = vmatpush1.bf16.msra.mxu1 %v12577_v48 }
 0xa6a   :  { %6295 = vmatprep.subr.bf16.mxu0 %v12583_v3  ;;  %6336 = vmatprep.subr.bf16.mxu1 %v12585_v27 }
 0xa6d   :  { %6296 = vmatpush1.bf16.msra.mxu0 %v12587_v50  ;;  %6337 = vmatpush1.bf16.msra.mxu1 %v12589_v17 }
 0xa6e   :  { %6297 = vmatprep.subr.bf16.mxu0 %v12595_v54  ;;  %6338 = vmatprep.subr.bf16.mxu1 %v12597_v60  ;;  %v12628_v60 = vld [vmem:[#allocation7 + $0x1e4] ss:$16 sps:$4 sm:$0xff]   ;;  %v12631_v54 = vld [vmem:[#allocation7 + $0x1ec] ss:$16 sps:$4 sm:$0xff]  }
 0xa6f   :  { %13579 = vst [vmem:[#allocation30_spill] sm:$0xff] %v12628_v60  ;;  %13580 = vst [vmem:[#allocation31_spill] sm:$0xff] %v12631_v54 }
 0xa71   :  { %6298 = vmatpush1.bf16.msra.mxu0 %v12599_v12  ;;  %6339 = vmatpush1.bf16.msra.mxu1 %v12601_v6  ;;  %v12622_v12 = vld [vmem:[#allocation7 + $0x1c0] ss:$16 sps:$4 sm:$0xff]   ;;  %v12626_v6 = vld [vmem:[#allocation7 + $0x1c8] ss:$16 sps:$4 sm:$0xff]  }
 0xa72   :  { %6299 = vmatprep.subr.bf16.mxu0 %v12609_v36  ;;  %6340 = vmatprep.subr.bf16.mxu1 %v12613_v11  ;;  %13577 = vst [vmem:[#allocation28_spill] sm:$0xff] %v12622_v12  ;;  %13578 = vst [vmem:[#allocation29_spill] sm:$0xff] %v12626_v6  ;;  %v12634_v36 = vld [vmem:[#allocation7 + $0x1e0] ss:$16 sps:$4 sm:$0xff]  }
 0xa73   :  { %13581 = vst [vmem:[#allocation32_spill] sm:$0xff] %v12634_v36 }
 0xa75   :  { %6300 = vmatpush1.bf16.msra.mxu0 %v12607_v34  ;;  %6341 = vmatpush1.bf16.msra.mxu1 %v12611_v20  ;;  %v12638_v34 = vld [vmem:[#allocation7 + $0x1e8] ss:$16 sps:$4 sm:$0xff]  }
 0xa76   :  { %6301 = vmatprep.subr.bf16.mxu0 %v12615_v62  ;;  %6342 = vmatprep.subr.bf16.mxu1 %v12618_v35  ;;  %13582 = vst [vmem:[#allocation33_spill] sm:$0xff] %v12638_v34 }
 0xa79   :  { %6302 = vmatpush1.bf16.msra.mxu0 %v12622_v12  ;;  %6343 = vmatpush1.bf16.msra.mxu1 %v12626_v6 }
 0xa7a   :  { %6303 = vmatprep.subr.bf16.mxu0 %v12628_v60  ;;  %6344 = vmatprep.subr.bf16.mxu1 %v12631_v54 }
 0xa7d   :  { %6304 = vmatpush1.bf16.msra.mxu0 %v12634_v36  ;;  %6345 = vmatpush1.bf16.msra.mxu1 %v12638_v34 }
 0xa7e   :  { %6794 = vmatprep.subr.bf16.mxu0 %v12441_v21  ;;  %6835 = vmatprep.subr.bf16.mxu1 %v12443_v23 }
 0xb13   :  { %v5786_v35 = vpop.f32.mrb[40].mxu0  ;;  %v5827_v12 = vpop.f32.mrb[40].mxu1 }
 0xb14   :  { %v5787_v62 = vadd.f32 %v5786_v35, %v12356_v46  ;;  %v5788_v20 = vpop.f32.mrb[41].mxu0  ;;  %v5829_v6 = vpop.f32.mrb[41].mxu1  ;;  %v5828_v23 = vadd.f32 %v5827_v12, %v12371_v42 }
 0xb15   :  { %v5789_v60 = vadd.f32 %v5788_v20, %v12360_v13  ;;  %v5790_v11 = vpop.f32.mrb[42].mxu0  ;;  %v5831_v17 = vpop.f32.mrb[42].mxu1  ;;  %v5830_v21 = vadd.f32 %v5829_v6, %v12366_v45 }
 0xb16   :  { %v9582_v50 = vmul.f32 -1.442695, %v5787_v62  ;;  %v5791_v54 = vpop.f32.mrb[43].mxu0  ;;  %v5832_v27 = vpop.f32.mrb[43].mxu1 }
 0xb17   :  { %v9583_v36 = vmul.f32 -1.442695, %v5789_v60  ;;  %v9584_v34 = vmul.f32 -1.442695, %v5830_v21 }
 0xb18   :  { %10787 = vpow2.f32 %v9582_v50 }
 0xb19   :  { %10789 = vpow2.f32 %v9583_v36 }
 0xb1a   :  { %10791 = vpow2.f32 %v9584_v34 }
 0xb1b   :  { %10793 = vtanh.f32 %v5828_v23 }
 0xb22   :  { %v10788_v3 = vpop.eup %10787 }
 0xb23   :  { %v10790_v48 = vpop.eup %10789  ;;  %v5837_v35 = vadd.f32 1.0, %v10788_v3 }
 0xb24   :  { %v5843_v46 = vadd.f32 1.0, %v10790_v48  ;;  %v10792_v17 = vpop.eup %10791 }
 0xb25   :  { %10795 = vrcp.f32 %v5837_v35  ;;  %v10794_v20 = vpop.eup %10793  ;;  %v5850_v50 = vadd.f32 1.0, %v10792_v17  ;;  %v13584_v35 = vld [vmem:[#allocation17_spill] sm:$0xff] }
 0xb26   :  { %10797 = vrcp.f32 %v5843_v46  ;;  %v6382_v46 = vld [vmem:[#allocation2 + $0x4] sm:$0x1]  ;;  %v13585_v17 = vld [vmem:[#allocation37_spill] sm:$0xff] }
 0xb27   :  { %10799 = vrcp.f32 %v5850_v50  ;;  %v13590_v50 = vld [vmem:[#allocation20_spill] sm:$0xff] }
 0xb2f   :  { %v10796_v54 = vpop.eup %10795 }
 0xb30   :  { %v10798_v27 = vpop.eup %10797  ;;  %v5854_v60 = vmul.f32 %v10796_v54, %v10794_v20  ;;  %v13586_v20 = vld [vmem:[#allocation13_spill] sm:$0xff]  ;;  %v13587_v54 = vld [vmem:[#allocation39_spill] sm:$0xff] }
 0xb31   :  { %v5853_v36 = vmul.f32 %v10798_v27, %v12452_v15  ;;  %v10800_v21 = vpop.eup %10799  ;;  %v13583_v15 = vld [vmem:[#allocation16_spill] sm:$0xff]  ;;  %v13588_v27 = vld [vmem:[#allocation18_spill] sm:$0xff] }
 0xb33   :  { %v12650_v6 = vadd.f32 %v5854_v60, %v5853_v36  ;;  %v13589_v60 = vld [vmem:[#allocation19_spill] sm:$0xff]  ;;  %v13591_v36 = vld [vmem:[#allocation21_spill] sm:$0xff] }
 0xb35   :  { %10801 = vtanh.f32 %v12650_v6 }
 0xb3f   :  { %v10802_v3 = vpop.eup %10801 }
 0xb40   :  { %v5857_v12 = vmul.f32 %v10802_v3, %v10800_v21  ;;  %v13592_v21 = vld [vmem:[#allocation23_spill] sm:$0xff]  ;;  %v13593_v3 = vld [vmem:[#allocation25_spill] sm:$0xff] }
 0xb42   :  { %v5858_v23 = vpack.c.bf16 %v5857_v12, %v5857_v12  ;;  %v13594_v12 = vld [vmem:[#allocation22_spill] sm:$0xff] }
 0xb44   :  { %5859 = vst [vmem:[#allocation2 + $0x2] sm:$0x1] %v5858_v23  ;;  %5860 = vst [vmem:[#allocation3] sm:$0x1] %v5858_v23  ;;  %v13595_v23 = vld [vmem:[#allocation24_spill] sm:$0xff] }
 0xb4b   :  { %v9585_v48 = vld.sshfl [vmem:[#allocation3] sm:$0x11 pattern:$0x75316420] }
 0xb4c   :  { %v5936_v34 = vcombine.high %v9585_v48, %v9585_v48  ;;  %6383 = vst [vmem:[#allocation3 + $0x1] sm:$0x1] %v6382_v46  ;;  %v5943_v62 = vrot.slane %v9585_v48, %v11267_v56  ;;  %v13596_v46 = vld [vmem:[#allocation26_spill] sm:$0xff]  ;;  %v13597_v48 = vld [vmem:[#allocation27_spill] sm:$0xff] }
 0xb4e   :  { %v5950_v11 = vrot.slane %v5936_v34, %v11267_v56  ;;  %v13598_v34 = vld [vmem:[#allocation28_spill] sm:$0xff] }
 0xb50   :  { %6305 = vmatprep.mubr.bf16.mxu0 %v5950_v11  ;;  %6346 = vmatprep.mubr.bf16.mxu1 %v5950_v11  ;;  %v13599_v11 = vld [vmem:[#allocation29_spill] sm:$0xff] }
 0xb51   :  { %6306 = vmatmul.mubr.bf16.vlgmr.msra.gmra.mrb[44].mxu0 %v5943_v62  ;;  %6347 = vmatmul.mubr.bf16.vlgmr.msra.gmra.mrb[44].mxu1 %v5943_v62  ;;  %v13600_v62 = vld [vmem:[#allocation30_spill] sm:$0xff] }
 0xb52   :  { %6795 = vmatpush1.bf16.msra.mxu0 %v12456_v47  ;;  %6836 = vmatpush1.bf16.msra.mxu1 %v12458_v37 }
 0xb53   :  { %6796 = vmatprep.subr.bf16.mxu0 %v12463_v49  ;;  %6837 = vmatprep.subr.bf16.mxu1 %v12465_v52 }
 0xb56   :  { %6797 = vmatpush1.bf16.msra.mxu0 %v12467_v53  ;;  %6838 = vmatpush1.bf16.msra.mxu1 %v12469_v55 }
 0xb57   :  { %6798 = vmatprep.subr.bf16.mxu0 %v12475_v58  ;;  %6839 = vmatprep.subr.bf16.mxu1 %v12477_v59 }
 0xb5a   :  { %6799 = vmatpush1.bf16.msra.mxu0 %v12479_v41  ;;  %6840 = vmatpush1.bf16.msra.mxu1 %v12481_v43 }
 0xb5b   :  { %6800 = vmatprep.subr.bf16.mxu0 %v12487_v51  ;;  %6841 = vmatprep.subr.bf16.mxu1 %v12489_v61 }
 0xb5e   :  { %6801 = vmatpush1.bf16.msra.mxu0 %v12491_v1  ;;  %6842 = vmatpush1.bf16.msra.mxu1 %v12493_v57 }
 0xb5f   :  { %6802 = vmatprep.subr.bf16.mxu0 %v12499_v4  ;;  %6843 = vmatprep.subr.bf16.mxu1 %v12501_v63 }
 0xb62   :  { %6803 = vmatpush1.bf16.msra.mxu0 %v12503_v5  ;;  %6844 = vmatpush1.bf16.msra.mxu1 %v12505_v14 }
 0xb63   :  { %6804 = vmatprep.subr.bf16.mxu0 %v12511_v16  ;;  %6845 = vmatprep.subr.bf16.mxu1 %v12513_v18 }
 0xb66   :  { %6805 = vmatpush1.bf16.msra.mxu0 %v12515_v19  ;;  %6846 = vmatpush1.bf16.msra.mxu1 %v12517_v24 }
 0xb67   :  { %6806 = vmatprep.subr.bf16.mxu0 %v12523_v25  ;;  %6847 = vmatprep.subr.bf16.mxu1 %v12525_v26 }
 0xb6a   :  { %6807 = vmatpush1.bf16.msra.mxu0 %v12527_v28  ;;  %6848 = vmatpush1.bf16.msra.mxu1 %v12529_v29 }
 0xb6b   :  { %6808 = vmatprep.subr.bf16.mxu0 %v12535_v30  ;;  %6849 = vmatprep.subr.bf16.mxu1 %v12537_v31 }
 0xb6e   :  { %6809 = vmatpush1.bf16.msra.mxu0 %v12539_v32  ;;  %6850 = vmatpush1.bf16.msra.mxu1 %v12541_v22 }
 0xb6f   :  { %6810 = vmatprep.subr.bf16.mxu0 %v12547_v10  ;;  %6851 = vmatprep.subr.bf16.mxu1 %v12549_v33 }
 0xb72   :  { %6811 = vmatpush1.bf16.msra.mxu0 %v12551_v0  ;;  %6852 = vmatpush1.bf16.msra.mxu1 %v12553_v7 }
 0xb73   :  { %6812 = vmatprep.subr.bf16.mxu0 %v12559_v38  ;;  %6853 = vmatprep.subr.bf16.mxu1 %v12561_v40 }
 0xb76   :  { %6813 = vmatpush1.bf16.msra.mxu0 %v12563_v44  ;;  %6854 = vmatpush1.bf16.msra.mxu1 %v12565_v9 }
 0xb77   :  { %6814 = vmatprep.subr.bf16.mxu0 %v12571_v39  ;;  %6855 = vmatprep.subr.bf16.mxu1 %v12573_v8 }
 0xb7a   :  { %6815 = vmatpush1.bf16.msra.mxu0 %v12575_v2  ;;  %6856 = vmatpush1.bf16.msra.mxu1 %v13583_v15 }
 0xb7b   :  { %6816 = vmatprep.subr.bf16.mxu0 %v13584_v35  ;;  %6857 = vmatprep.subr.bf16.mxu1 %v13585_v17 }
 0xb7e   :  { %6817 = vmatpush1.bf16.msra.mxu0 %v13586_v20  ;;  %6858 = vmatpush1.bf16.msra.mxu1 %v13587_v54 }
 0xb7f   :  { %6818 = vmatprep.subr.bf16.mxu0 %v13588_v27  ;;  %6859 = vmatprep.subr.bf16.mxu1 %v13589_v60  ;;  %v13606_v60 = vld [vmem:[#allocation38_spill] sm:$0xff] }
 0xb82   :  { %6819 = vmatpush1.bf16.msra.mxu0 %v13590_v50  ;;  %6860 = vmatpush1.bf16.msra.mxu1 %v13591_v36  ;;  %v13601_v50 = vld [vmem:[#allocation31_spill] sm:$0xff]  ;;  %v13602_v36 = vld [vmem:[#allocation32_spill] sm:$0xff] }
 0xb83   :  { %6820 = vmatprep.subr.bf16.mxu0 %v13592_v21  ;;  %6861 = vmatprep.subr.bf16.mxu1 %v13593_v3  ;;  %v13603_v21 = vld [vmem:[#allocation33_spill] sm:$0xff]  ;;  %v13604_v3 = vld [vmem:[#allocation14_spill] sm:$0xff] }
 0xb86   :  { %6821 = vmatpush1.bf16.msra.mxu0 %v13594_v12  ;;  %6862 = vmatpush1.bf16.msra.mxu1 %v13595_v23  ;;  %v13605_v12 = vld [vmem:[#allocation15_spill] sm:$0xff] }
 0xb87   :  { %6822 = vmatprep.subr.bf16.mxu0 %v13596_v46  ;;  %6863 = vmatprep.subr.bf16.mxu1 %v13597_v48 }
 0xb8a   :  { %6823 = vmatpush1.bf16.msra.mxu0 %v13598_v34  ;;  %6864 = vmatpush1.bf16.msra.mxu1 %v13599_v11 }
 0xb8b   :  { %6824 = vmatprep.subr.bf16.mxu0 %v13600_v62  ;;  %6865 = vmatprep.subr.bf16.mxu1 %v13601_v50 }
 0xb8e   :  { %6825 = vmatpush1.bf16.msra.mxu0 %v13602_v36  ;;  %6866 = vmatpush1.bf16.msra.mxu1 %v13603_v21 }
 0xb8f   :  { %7315 = vmatprep.subr.bf16.mxu0 %v13604_v3  ;;  %7356 = vmatprep.subr.bf16.mxu1 %v13605_v12 }
 0xc24   :  { %v6307_v23 = vpop.f32.mrb[44].mxu0  ;;  %v6348_v46 = vpop.f32.mrb[44].mxu1 }
 0xc25   :  { %v6308_v48 = vadd.f32 %v6307_v23, %v13606_v60  ;;  %v6309_v27 = vpop.f32.mrb[45].mxu0  ;;  %v6350_v34 = vpop.f32.mrb[45].mxu1  ;;  %v6349_v12 = vadd.f32 %v6348_v46, %v12371_v42 }
 0xc26   :  { %v6310_v11 = vadd.f32 %v6309_v27, %v12360_v13  ;;  %v6311_v54 = vpop.f32.mrb[46].mxu0  ;;  %v6352_v62 = vpop.f32.mrb[46].mxu1  ;;  %v6351_v3 = vadd.f32 %v6350_v34, %v12366_v45 }
 0xc27   :  { %v9650_v20 = vmul.f32 -1.442695, %v6308_v48  ;;  %v6312_v50 = vpop.f32.mrb[47].mxu0  ;;  %v6353_v17 = vpop.f32.mrb[47].mxu1 }
 0xc28   :  { %v9651_v36 = vmul.f32 -1.442695, %v6310_v11  ;;  %v9652_v21 = vmul.f32 -1.442695, %v6351_v3 }
 0xc29   :  { %10803 = vpow2.f32 %v9650_v20 }
 0xc2a   :  { %10805 = vpow2.f32 %v9651_v36 }
 0xc2b   :  { %10807 = vpow2.f32 %v9652_v21 }
 0xc2c   :  { %10809 = vtanh.f32 %v6349_v12 }
 0xc33   :  { %v10804_v35 = vpop.eup %10803 }
 0xc34   :  { %v10806_v15 = vpop.eup %10805  ;;  %v6358_v23 = vadd.f32 1.0, %v10804_v35 }
 0xc35   :  { %v6364_v60 = vadd.f32 1.0, %v10806_v15  ;;  %v10808_v54 = vpop.eup %10807  ;;  %v6903_v15 = vld [vmem:[#allocation2 + $0x5] sm:$0x1] }
 0xc36   :  { %10811 = vrcp.f32 %v6358_v23  ;;  %v10810_v27 = vpop.eup %10809  ;;  %v6371_v20 = vadd.f32 1.0, %v10808_v54 }
 0xc37   :  { %10813 = vrcp.f32 %v6364_v60 }
 0xc38   :  { %10815 = vrcp.f32 %v6371_v20 }
 0xc40   :  { %v10812_v50 = vpop.eup %10811 }
 0xc41   :  { %v10814_v17 = vpop.eup %10813  ;;  %v6375_v48 = vmul.f32 %v10812_v50, %v10810_v27 }
 0xc42   :  { %v6374_v36 = vmul.f32 %v10814_v17, %v12650_v6  ;;  %v10816_v46 = vpop.eup %10815 }
 0xc44   :  { %v12724_v34 = vadd.f32 %v6375_v48, %v6374_v36 }
 0xc46   :  { %10817 = vtanh.f32 %v12724_v34 }
 0xc50   :  { %v10818_v35 = vpop.eup %10817 }
 0xc51   :  { %v6378_v21 = vmul.f32 %v10818_v35, %v10816_v46 }
 0xc53   :  { %v6379_v11 = vpack.c.bf16 %v6378_v21, %v6378_v21 }
 0xc55   :  { %6380 = vst [vmem:[#allocation2 + $0x3] sm:$0x1] %v6379_v11  ;;  %6381 = vst [vmem:[#allocation3] sm:$0x1] %v6379_v11 }
 0xc5c   :  { %v9653_v60 = vld.sshfl [vmem:[#allocation3] sm:$0x11 pattern:$0x75316420] }
 0xc5d   :  { %v6457_v62 = vcombine.high %v9653_v60, %v9653_v60  ;;  %6904 = vst [vmem:[#allocation3 + $0x1] sm:$0x1] %v6903_v15  ;;  %v6464_v12 = vrot.slane %v9653_v60, %v11267_v56  ;;  %v7424_v60 = vld [vmem:[#allocation2 + $0x6] sm:$0x1] }
 0xc5f   :  { %v6471_v3 = vrot.slane %v6457_v62, %v11267_v56 }
 0xc61   :  { %6826 = vmatprep.mubr.bf16.mxu0 %v6471_v3  ;;  %6867 = vmatprep.mubr.bf16.mxu1 %v6471_v3 }
 0xc62   :  { %6827 = vmatmul.mubr.bf16.vlgmr.msra.gmra.mrb[48].mxu0 %v6464_v12  ;;  %6868 = vmatmul.mubr.bf16.vlgmr.msra.gmra.mrb[48].mxu1 %v6464_v12 }
 0xc63   :  { %7316 = vmatpush1.bf16.msra.mxu0 %v12456_v47  ;;  %7357 = vmatpush1.bf16.msra.mxu1 %v12458_v37  ;;  %v13607_v47 = vld [vmem:[#allocation16_spill] sm:$0xff]  ;;  %v13608_v37 = vld [vmem:[#allocation17_spill] sm:$0xff] }
 0xc64   :  { %7317 = vmatprep.subr.bf16.mxu0 %v12463_v49  ;;  %7358 = vmatprep.subr.bf16.mxu1 %v12465_v52  ;;  %v13609_v49 = vld [vmem:[#allocation37_spill] sm:$0xff] }
 0xc65   :  { %v13610_v52 = vld [vmem:[#allocation13_spill] sm:$0xff] }
 0xc67   :  { %7318 = vmatpush1.bf16.msra.mxu0 %v12467_v53  ;;  %7359 = vmatpush1.bf16.msra.mxu1 %v12469_v55  ;;  %v13611_v53 = vld [vmem:[#allocation39_spill] sm:$0xff]  ;;  %v13612_v55 = vld [vmem:[#allocation18_spill] sm:$0xff] }
 0xc68   :  { %7319 = vmatprep.subr.bf16.mxu0 %v12475_v58  ;;  %7360 = vmatprep.subr.bf16.mxu1 %v12477_v59  ;;  %v13613_v58 = vld [vmem:[#allocation19_spill] sm:$0xff]  ;;  %v13614_v59 = vld [vmem:[#allocation20_spill] sm:$0xff] }
 0xc6b   :  { %7320 = vmatpush1.bf16.msra.mxu0 %v12479_v41  ;;  %7361 = vmatpush1.bf16.msra.mxu1 %v12481_v43  ;;  %v13615_v41 = vld [vmem:[#allocation21_spill] sm:$0xff]  ;;  %v13616_v43 = vld [vmem:[#allocation23_spill] sm:$0xff] }
 0xc6c   :  { %7321 = vmatprep.subr.bf16.mxu0 %v12487_v51  ;;  %7362 = vmatprep.subr.bf16.mxu1 %v12489_v61  ;;  %v13617_v51 = vld [vmem:[#allocation25_spill] sm:$0xff]  ;;  %v13618_v61 = vld [vmem:[#allocation22_spill] sm:$0xff] }
 0xc6f   :  { %7322 = vmatpush1.bf16.msra.mxu0 %v12491_v1  ;;  %7363 = vmatpush1.bf16.msra.mxu1 %v12493_v57  ;;  %v13619_v1 = vld [vmem:[#allocation24_spill] sm:$0xff]  ;;  %v13620_v57 = vld [vmem:[#allocation26_spill] sm:$0xff] }
 0xc70   :  { %7323 = vmatprep.subr.bf16.mxu0 %v12499_v4  ;;  %7364 = vmatprep.subr.bf16.mxu1 %v12501_v63  ;;  %v13621_v4 = vld [vmem:[#allocation27_spill] sm:$0xff]  ;;  %v13622_v63 = vld [vmem:[#allocation28_spill] sm:$0xff] }
 0xc73   :  { %7324 = vmatpush1.bf16.msra.mxu0 %v12503_v5  ;;  %7365 = vmatpush1.bf16.msra.mxu1 %v12505_v14  ;;  %v13623_v5 = vld [vmem:[#allocation29_spill] sm:$0xff]  ;;  %v13624_v14 = vld [vmem:[#allocation30_spill] sm:$0xff] }
 0xc74   :  { %7325 = vmatprep.subr.bf16.mxu0 %v12511_v16  ;;  %7366 = vmatprep.subr.bf16.mxu1 %v12513_v18  ;;  %v13625_v16 = vld [vmem:[#allocation31_spill] sm:$0xff]  ;;  %v13626_v18 = vld [vmem:[#allocation32_spill] sm:$0xff] }
 0xc77   :  { %7326 = vmatpush1.bf16.msra.mxu0 %v12515_v19  ;;  %7367 = vmatpush1.bf16.msra.mxu1 %v12517_v24  ;;  %v13627_v19 = vld [vmem:[#allocation33_spill] sm:$0xff] }
 0xc78   :  { %7327 = vmatprep.subr.bf16.mxu0 %v12523_v25  ;;  %7368 = vmatprep.subr.bf16.mxu1 %v12525_v26  ;;  %v12791_v24 = vld [vmem:[#allocation7 + $0x4] ss:$16 sps:$4 sm:$0xff]   ;;  %v12793_v25 = vld [vmem:[#allocation7 + $0xc] ss:$16 sps:$4 sm:$0xff]  }
 0xc7b   :  { %7328 = vmatpush1.bf16.msra.mxu0 %v12527_v28  ;;  %7369 = vmatpush1.bf16.msra.mxu1 %v12529_v29  ;;  %v13628_v29 = vld [vmem:[#allocation38_spill] sm:$0xff] }
 0xc7c   :  { %7329 = vmatprep.subr.bf16.mxu0 %v12535_v30  ;;  %7370 = vmatprep.subr.bf16.mxu1 %v12537_v31 }
 0xc7f   :  { %7330 = vmatpush1.bf16.msra.mxu0 %v12539_v32  ;;  %7371 = vmatpush1.bf16.msra.mxu1 %v12541_v22 }
 0xc80   :  { %7331 = vmatprep.subr.bf16.mxu0 %v12547_v10  ;;  %7372 = vmatprep.subr.bf16.mxu1 %v12549_v33 }
 0xc83   :  { %7332 = vmatpush1.bf16.msra.mxu0 %v12551_v0  ;;  %7373 = vmatpush1.bf16.msra.mxu1 %v12553_v7 }
 0xc84   :  { %7333 = vmatprep.subr.bf16.mxu0 %v12559_v38  ;;  %7374 = vmatprep.subr.bf16.mxu1 %v12561_v40 }
 0xc87   :  { %7334 = vmatpush1.bf16.msra.mxu0 %v12563_v44  ;;  %7375 = vmatpush1.bf16.msra.mxu1 %v12565_v9 }
 0xc88   :  { %7335 = vmatprep.subr.bf16.mxu0 %v12571_v39  ;;  %7376 = vmatprep.subr.bf16.mxu1 %v12573_v8 }
 0xc8b   :  { %7336 = vmatpush1.bf16.msra.mxu0 %v12575_v2  ;;  %7377 = vmatpush1.bf16.msra.mxu1 %v13607_v47  ;;  %v12806_v47 = vld [vmem:[#allocation7] ss:$16 sps:$4 sm:$0xff]  }
 0xc8c   :  { %7337 = vmatprep.subr.bf16.mxu0 %v13608_v37  ;;  %7378 = vmatprep.subr.bf16.mxu1 %v13609_v49  ;;  %v12813_v49 = vld [vmem:[#allocation7 + $0x24] ss:$16 sps:$4 sm:$0xff]  }
 0xc8f   :  { %7338 = vmatpush1.bf16.msra.mxu0 %v13610_v52  ;;  %7379 = vmatpush1.bf16.msra.mxu1 %v13611_v53  ;;  %v12815_v52 = vld [vmem:[#allocation7 + $0x2c] ss:$16 sps:$4 sm:$0xff]   ;;  %v12817_v53 = vld [vmem:[#allocation7 + $0x20] ss:$16 sps:$4 sm:$0xff]  }
 0xc90   :  { %7339 = vmatprep.subr.bf16.mxu0 %v13612_v55  ;;  %7380 = vmatprep.subr.bf16.mxu1 %v13613_v58  ;;  %v12819_v55 = vld [vmem:[#allocation7 + $0x28] ss:$16 sps:$4 sm:$0xff]   ;;  %v12825_v58 = vld [vmem:[#allocation7 + $0x44] ss:$16 sps:$4 sm:$0xff]  }
 0xc93   :  { %7340 = vmatpush1.bf16.msra.mxu0 %v13614_v59  ;;  %7381 = vmatpush1.bf16.msra.mxu1 %v13615_v41  ;;  %v12827_v59 = vld [vmem:[#allocation7 + $0x4c] ss:$16 sps:$4 sm:$0xff]   ;;  %v12829_v41 = vld [vmem:[#allocation7 + $0x40] ss:$16 sps:$4 sm:$0xff]  }
 0xc94   :  { %7341 = vmatprep.subr.bf16.mxu0 %v13616_v43  ;;  %7382 = vmatprep.subr.bf16.mxu1 %v13617_v51  ;;  %v12831_v43 = vld [vmem:[#allocation7 + $0x48] ss:$16 sps:$4 sm:$0xff]   ;;  %v12837_v51 = vld [vmem:[#allocation7 + $0x64] ss:$16 sps:$4 sm:$0xff]  }
 0xc97   :  { %7342 = vmatpush1.bf16.msra.mxu0 %v13618_v61  ;;  %7383 = vmatpush1.bf16.msra.mxu1 %v13619_v1  ;;  %v12839_v61 = vld [vmem:[#allocation7 + $0x6c] ss:$16 sps:$4 sm:$0xff]   ;;  %v12841_v1 = vld [vmem:[#allocation7 + $0x60] ss:$16 sps:$4 sm:$0xff]  }
 0xc98   :  { %7343 = vmatprep.subr.bf16.mxu0 %v13620_v57  ;;  %7384 = vmatprep.subr.bf16.mxu1 %v13621_v4  ;;  %v12843_v57 = vld [vmem:[#allocation7 + $0x68] ss:$16 sps:$4 sm:$0xff]   ;;  %v12849_v4 = vld [vmem:[#allocation7 + $0x84] ss:$16 sps:$4 sm:$0xff]  }
 0xc9b   :  { %7344 = vmatpush1.bf16.msra.mxu0 %v13622_v63  ;;  %7385 = vmatpush1.bf16.msra.mxu1 %v13623_v5  ;;  %v12851_v63 = vld [vmem:[#allocation7 + $0x8c] ss:$16 sps:$4 sm:$0xff]   ;;  %v12853_v5 = vld [vmem:[#allocation7 + $0x80] ss:$16 sps:$4 sm:$0xff]  }
 0xc9c   :  { %7345 = vmatprep.subr.bf16.mxu0 %v13624_v14  ;;  %7386 = vmatprep.subr.bf16.mxu1 %v13625_v16  ;;  %v12855_v14 = vld [vmem:[#allocation7 + $0x88] ss:$16 sps:$4 sm:$0xff]   ;;  %v12861_v16 = vld [vmem:[#allocation7 + $0xa4] ss:$16 sps:$4 sm:$0xff]  }
 0xc9f   :  { %7346 = vmatpush1.bf16.msra.mxu0 %v13626_v18  ;;  %7387 = vmatpush1.bf16.msra.mxu1 %v13627_v19  ;;  %v12863_v18 = vld [vmem:[#allocation7 + $0xac] ss:$16 sps:$4 sm:$0xff]   ;;  %v12865_v19 = vld [vmem:[#allocation7 + $0xa0] ss:$16 sps:$4 sm:$0xff]  }
 0xca0   :  { %7836 = vmatprep.subr.bf16.mxu0 %v12791_v24  ;;  %7877 = vmatprep.subr.bf16.mxu1 %v12793_v25 }
 0xd35   :  { %v6828_v26 = vpop.f32.mrb[48].mxu0  ;;  %v6869_v28 = vpop.f32.mrb[48].mxu1 }
 0xd36   :  { %v6829_v30 = vadd.f32 %v6828_v26, %v13628_v29  ;;  %v6830_v31 = vpop.f32.mrb[49].mxu0  ;;  %v6871_v32 = vpop.f32.mrb[49].mxu1  ;;  %v6870_v39 = vadd.f32 %v6869_v28, %v12371_v42  ;;  %v12867_v26 = vld [vmem:[#allocation7 + $0xa8] ss:$16 sps:$4 sm:$0xff]   ;;  %v12873_v28 = vld [vmem:[#allocation7 + $0xc4] ss:$16 sps:$4 sm:$0xff]  }
 0xd37   :  { %v6831_v22 = vadd.f32 %v6830_v31, %v12360_v13  ;;  %v6832_v10 = vpop.f32.mrb[50].mxu0  ;;  %v6873_v33 = vpop.f32.mrb[50].mxu1  ;;  %v6872_v44 = vadd.f32 %v6871_v32, %v12366_v45  ;;  %v12877_v31 = vld [vmem:[#allocation7 + $0xc0] ss:$16 sps:$4 sm:$0xff]   ;;  %v12879_v32 = vld [vmem:[#allocation7 + $0xc8] ss:$16 sps:$4 sm:$0xff]  }
 0xd38   :  { %v9718_v0 = vmul.f32 -1.442695, %v6829_v30  ;;  %v6833_v7 = vpop.f32.mrb[51].mxu0  ;;  %v6874_v38 = vpop.f32.mrb[51].mxu1  ;;  %v12875_v30 = vld [vmem:[#allocation7 + $0xcc] ss:$16 sps:$4 sm:$0xff]  }
 0xd39   :  { %v9719_v40 = vmul.f32 -1.442695, %v6831_v22  ;;  %v9720_v9 = vmul.f32 -1.442695, %v6872_v44  ;;  %v12885_v22 = vld [vmem:[#allocation7 + $0xe4] ss:$16 sps:$4 sm:$0xff]  }
 0xd3a   :  { %10819 = vpow2.f32 %v9718_v0  ;;  %v12887_v10 = vld [vmem:[#allocation7 + $0xec] ss:$16 sps:$4 sm:$0xff]   ;;  %v12889_v33 = vld [vmem:[#allocation7 + $0xe0] ss:$16 sps:$4 sm:$0xff]   ;;  %v12891_v0 = vld [vmem:[#allocation7 + $0xe8] ss:$16 sps:$4 sm:$0xff]  }
 0xd3b   :  { %10821 = vpow2.f32 %v9719_v40  ;;  %v12897_v7 = vld [vmem:[#allocation7 + $0x104] ss:$16 sps:$4 sm:$0xff]   ;;  %v12899_v38 = vld [vmem:[#allocation7 + $0x10c] ss:$16 sps:$4 sm:$0xff]   ;;  %v12901_v40 = vld [vmem:[#allocation7 + $0x100] ss:$16 sps:$4 sm:$0xff]  }
 0xd3c   :  { %10823 = vpow2.f32 %v9720_v9  ;;  %v12903_v44 = vld [vmem:[#allocation7 + $0x108] ss:$16 sps:$4 sm:$0xff]   ;;  %v12909_v9 = vld [vmem:[#allocation7 + $0x124] ss:$16 sps:$4 sm:$0xff]  }
 0xd3d   :  { %10825 = vtanh.f32 %v6870_v39  ;;  %v12911_v39 = vld [vmem:[#allocation7 + $0x12c] ss:$16 sps:$4 sm:$0xff]  }
 0xd44   :  { %v10820_v8 = vpop.eup %10819 }
 0xd45   :  { %v10822_v2 = vpop.eup %10821  ;;  %v6879_v6 = vadd.f32 1.0, %v10820_v8  ;;  %v12913_v8 = vld [vmem:[#allocation7 + $0x120] ss:$16 sps:$4 sm:$0xff]  }
 0xd46   :  { %v6885_v23 = vadd.f32 1.0, %v10822_v2  ;;  %v10824_v54 = vpop.eup %10823  ;;  %v12915_v2 = vld [vmem:[#allocation7 + $0x128] ss:$16 sps:$4 sm:$0xff]  }
 0xd47   :  { %10827 = vrcp.f32 %v6879_v6  ;;  %v10826_v27 = vpop.eup %10825  ;;  %v6892_v20 = vadd.f32 1.0, %v10824_v54  ;;  %v12921_v6 = vld [vmem:[#allocation7 + $0x144] ss:$16 sps:$4 sm:$0xff]   ;;  %v12925_v54 = vld [vmem:[#allocation7 + $0x140] ss:$16 sps:$4 sm:$0xff]  }
 0xd48   :  { %10829 = vrcp.f32 %v6885_v23  ;;  %v12923_v23 = vld [vmem:[#allocation7 + $0x14c] ss:$16 sps:$4 sm:$0xff]  }
 0xd49   :  { %10831 = vrcp.f32 %v6892_v20  ;;  %v12939_v20 = vld [vmem:[#allocation7 + $0x168] ss:$16 sps:$4 sm:$0xff]  }
 0xd4a   :  { %13633 = vst [vmem:[#allocation15_spill] sm:$0xff] %v12939_v20 }
 0xd51   :  { %v10828_v50 = vpop.eup %10827 }
 0xd52   :  { %v10830_v17 = vpop.eup %10829  ;;  %v6896_v48 = vmul.f32 %v10828_v50, %v10826_v27  ;;  %v12927_v27 = vld [vmem:[#allocation7 + $0x148] ss:$16 sps:$4 sm:$0xff]   ;;  %v12933_v50 = vld [vmem:[#allocation7 + $0x164] ss:$16 sps:$4 sm:$0xff]  }
 0xd53   :  { %v6895_v36 = vmul.f32 %v10830_v17, %v12724_v34  ;;  %v10832_v35 = vpop.eup %10831  ;;  %v12808_v34 = vld [vmem:[#allocation7 + $0x8] ss:$16 sps:$4 sm:$0xff]   ;;  %13629 = vst [vmem:[#allocation34_spill] sm:$0xff] %v12927_v27  ;;  %13630 = vst [vmem:[#allocation36_spill] sm:$0xff] %v12933_v50  ;;  %v12935_v17 = vld [vmem:[#allocation7 + $0x16c] ss:$16 sps:$4 sm:$0xff]  }
 0xd54   :  { %13631 = vst [vmem:[#allocation40_spill] sm:$0xff] %v12935_v17 }
 0xd55   :  { %v12802_v46 = vadd.f32 %v6896_v48, %v6895_v36  ;;  %v12937_v48 = vld [vmem:[#allocation7 + $0x160] ss:$16 sps:$4 sm:$0xff]   ;;  %v12945_v36 = vld [vmem:[#allocation7 + $0x184] ss:$16 sps:$4 sm:$0xff]  }
 0xd56   :  { %13632 = vst [vmem:[#allocation14_spill] sm:$0xff] %v12937_v48  ;;  %13634 = vst [vmem:[#allocation16_spill] sm:$0xff] %v12945_v36 }
 0xd57   :  { %10833 = vtanh.f32 %v12802_v46 }
 0xd61   :  { %v10834_v21 = vpop.eup %10833 }
 0xd62   :  { %v6899_v11 = vmul.f32 %v10834_v21, %v10832_v35  ;;  %v12947_v35 = vld [vmem:[#allocation7 + $0x18c] ss:$16 sps:$4 sm:$0xff]   ;;  %v12949_v21 = vld [vmem:[#allocation7 + $0x180] ss:$16 sps:$4 sm:$0xff]  }
 0xd63   :  { %13635 = vst [vmem:[#allocation17_spill] sm:$0xff] %v12947_v35  ;;  %13636 = vst [vmem:[#allocation37_spill] sm:$0xff] %v12949_v21 }
 0xd64   :  { %v6900_v15 = vpack.c.bf16 %v6899_v11, %v6899_v11  ;;  %v12951_v11 = vld [vmem:[#allocation7 + $0x188] ss:$16 sps:$4 sm:$0xff]  }
 0xd65   :  { %13637 = vst [vmem:[#allocation13_spill] sm:$0xff] %v12951_v11 }
 0xd66   :  { %6901 = vst [vmem:[#allocation2 + $0x4] sm:$0x1] %v6900_v15  ;;  %6902 = vst [vmem:[#allocation3] sm:$0x1] %v6900_v15  ;;  %v12957_v15 = vld [vmem:[#allocation7 + $0x1a0] ss:$16 sps:$4 sm:$0xff]  }
 0xd67   :  { %13638 = vst [vmem:[#allocation39_spill] sm:$0xff] %v12957_v15 }
 0xd6d   :  { %v9721_v62 = vld.sshfl [vmem:[#allocation3] sm:$0x11 pattern:$0x75316420] }
 0xd6e   :  { %v6978_v3 = vcombine.high %v9721_v62, %v9721_v62  ;;  %7425 = vst [vmem:[#allocation3 + $0x1] sm:$0x1] %v7424_v60  ;;  %v6985_v37 = vrot.slane %v9721_v62, %v11267_v56  ;;  %v12959_v60 = vld [vmem:[#allocation7 + $0x1a4] ss:$16 sps:$4 sm:$0xff]   ;;  %v12961_v62 = vld [vmem:[#allocation7 + $0x1a8] ss:$16 sps:$4 sm:$0xff]  }
 0xd6f   :  { %13639 = vst [vmem:[#allocation18_spill] sm:$0xff] %v12959_v60  ;;  %13640 = vst [vmem:[#allocation19_spill] sm:$0xff] %v12961_v62 }
 0xd70   :  { %v6992_v12 = vrot.slane %v6978_v3, %v11267_v56  ;;  %v12963_v3 = vld [vmem:[#allocation7 + $0x1ac] ss:$16 sps:$4 sm:$0xff]  }
 0xd71   :  { %13641 = vst [vmem:[#allocation20_spill] sm:$0xff] %v12963_v3 }
 0xd72   :  { %7347 = vmatprep.mubr.bf16.mxu0 %v6992_v12  ;;  %7388 = vmatprep.mubr.bf16.mxu1 %v6992_v12  ;;  %v12965_v12 = vld [vmem:[#allocation7 + $0x1c4] ss:$16 sps:$4 sm:$0xff]  }
 0xd73   :  { %7348 = vmatmul.mubr.bf16.vlgmr.msra.gmra.mrb[52].mxu0 %v6985_v37  ;;  %7389 = vmatmul.mubr.bf16.vlgmr.msra.gmra.mrb[52].mxu1 %v6985_v37  ;;  %13642 = vst [vmem:[#allocation21_spill] sm:$0xff] %v12965_v12  ;;  %v12968_v37 = vld [vmem:[#allocation7 + $0x1cc] ss:$16 sps:$4 sm:$0xff]  }
 0xd74   :  { %7837 = vmatpush1.bf16.msra.mxu0 %v12806_v47  ;;  %7878 = vmatpush1.bf16.msra.mxu1 %v12808_v34  ;;  %13643 = vst [vmem:[#allocation23_spill] sm:$0xff] %v12968_v37 }
 0xd75   :  { %7838 = vmatprep.subr.bf16.mxu0 %v12813_v49  ;;  %7879 = vmatprep.subr.bf16.mxu1 %v12815_v52 }
 0xd78   :  { %7839 = vmatpush1.bf16.msra.mxu0 %v12817_v53  ;;  %7880 = vmatpush1.bf16.msra.mxu1 %v12819_v55 }
 0xd79   :  { %7840 = vmatprep.subr.bf16.mxu0 %v12825_v58  ;;  %7881 = vmatprep.subr.bf16.mxu1 %v12827_v59 }
 0xd7c   :  { %7841 = vmatpush1.bf16.msra.mxu0 %v12829_v41  ;;  %7882 = vmatpush1.bf16.msra.mxu1 %v12831_v43 }
 0xd7d   :  { %7842 = vmatprep.subr.bf16.mxu0 %v12837_v51  ;;  %7883 = vmatprep.subr.bf16.mxu1 %v12839_v61 }
 0xd80   :  { %7843 = vmatpush1.bf16.msra.mxu0 %v12841_v1  ;;  %7884 = vmatpush1.bf16.msra.mxu1 %v12843_v57 }
 0xd81   :  { %7844 = vmatprep.subr.bf16.mxu0 %v12849_v4  ;;  %7885 = vmatprep.subr.bf16.mxu1 %v12851_v63 }
 0xd84   :  { %7845 = vmatpush1.bf16.msra.mxu0 %v12853_v5  ;;  %7886 = vmatpush1.bf16.msra.mxu1 %v12855_v14 }
 0xd85   :  { %7846 = vmatprep.subr.bf16.mxu0 %v12861_v16  ;;  %7887 = vmatprep.subr.bf16.mxu1 %v12863_v18 }
 0xd88   :  { %7847 = vmatpush1.bf16.msra.mxu0 %v12865_v19  ;;  %7888 = vmatpush1.bf16.msra.mxu1 %v12867_v26 }
 0xd89   :  { %7848 = vmatprep.subr.bf16.mxu0 %v12873_v28  ;;  %7889 = vmatprep.subr.bf16.mxu1 %v12875_v30 }
 0xd8c   :  { %7849 = vmatpush1.bf16.msra.mxu0 %v12877_v31  ;;  %7890 = vmatpush1.bf16.msra.mxu1 %v12879_v32 }
 0xd8d   :  { %7850 = vmatprep.subr.bf16.mxu0 %v12885_v22  ;;  %7891 = vmatprep.subr.bf16.mxu1 %v12887_v10 }
 0xd90   :  { %7851 = vmatpush1.bf16.msra.mxu0 %v12889_v33  ;;  %7892 = vmatpush1.bf16.msra.mxu1 %v12891_v0 }
 0xd91   :  { %7852 = vmatprep.subr.bf16.mxu0 %v12897_v7  ;;  %7893 = vmatprep.subr.bf16.mxu1 %v12899_v38 }
 0xd94   :  { %7853 = vmatpush1.bf16.msra.mxu0 %v12901_v40  ;;  %7894 = vmatpush1.bf16.msra.mxu1 %v12903_v44 }
 0xd95   :  { %7854 = vmatprep.subr.bf16.mxu0 %v12909_v9  ;;  %7895 = vmatprep.subr.bf16.mxu1 %v12911_v39 }
 0xd98   :  { %7855 = vmatpush1.bf16.msra.mxu0 %v12913_v8  ;;  %7896 = vmatpush1.bf16.msra.mxu1 %v12915_v2 }
 0xd99   :  { %7856 = vmatprep.subr.bf16.mxu0 %v12921_v6  ;;  %7897 = vmatprep.subr.bf16.mxu1 %v12923_v23 }
 0xd9c   :  { %7857 = vmatpush1.bf16.msra.mxu0 %v12925_v54  ;;  %7898 = vmatpush1.bf16.msra.mxu1 %v12927_v27 }
 0xd9d   :  { %7858 = vmatprep.subr.bf16.mxu0 %v12933_v50  ;;  %7899 = vmatprep.subr.bf16.mxu1 %v12935_v17 }
 0xda0   :  { %7859 = vmatpush1.bf16.msra.mxu0 %v12937_v48  ;;  %7900 = vmatpush1.bf16.msra.mxu1 %v12939_v20 }
 0xda1   :  { %7860 = vmatprep.subr.bf16.mxu0 %v12945_v36  ;;  %7901 = vmatprep.subr.bf16.mxu1 %v12947_v35  ;;  %v12978_v35 = vld [vmem:[#allocation7 + $0x1e4] ss:$16 sps:$4 sm:$0xff]   ;;  %v12981_v36 = vld [vmem:[#allocation7 + $0x1ec] ss:$16 sps:$4 sm:$0xff]  }
 0xda2   :  { %13646 = vst [vmem:[#allocation24_spill] sm:$0xff] %v12978_v35  ;;  %13647 = vst [vmem:[#allocation26_spill] sm:$0xff] %v12981_v36 }
 0xda4   :  { %7861 = vmatpush1.bf16.msra.mxu0 %v12949_v21  ;;  %7902 = vmatpush1.bf16.msra.mxu1 %v12951_v11  ;;  %v12972_v21 = vld [vmem:[#allocation7 + $0x1c0] ss:$16 sps:$4 sm:$0xff]   ;;  %v12976_v11 = vld [vmem:[#allocation7 + $0x1c8] ss:$16 sps:$4 sm:$0xff]  }
 0xda5   :  { %7862 = vmatprep.subr.bf16.mxu0 %v12959_v60  ;;  %7903 = vmatprep.subr.bf16.mxu1 %v12963_v3  ;;  %13644 = vst [vmem:[#allocation25_spill] sm:$0xff] %v12972_v21  ;;  %13645 = vst [vmem:[#allocation22_spill] sm:$0xff] %v12976_v11  ;;  %v12984_v60 = vld [vmem:[#allocation7 + $0x1e0] ss:$16 sps:$4 sm:$0xff]  }
 0xda6   :  { %13648 = vst [vmem:[#allocation27_spill] sm:$0xff] %v12984_v60 }
 0xda8   :  { %7863 = vmatpush1.bf16.msra.mxu0 %v12957_v15  ;;  %7904 = vmatpush1.bf16.msra.mxu1 %v12961_v62  ;;  %v12988_v15 = vld [vmem:[#allocation7 + $0x1e8] ss:$16 sps:$4 sm:$0xff]  }
 0xda9   :  { %7864 = vmatprep.subr.bf16.mxu0 %v12965_v12  ;;  %7905 = vmatprep.subr.bf16.mxu1 %v12968_v37  ;;  %13649 = vst [vmem:[#allocation28_spill] sm:$0xff] %v12988_v15 }
 0xdac   :  { %7865 = vmatpush1.bf16.msra.mxu0 %v12972_v21  ;;  %7906 = vmatpush1.bf16.msra.mxu1 %v12976_v11 }
 0xdad   :  { %7866 = vmatprep.subr.bf16.mxu0 %v12978_v35  ;;  %7907 = vmatprep.subr.bf16.mxu1 %v12981_v36 }
 0xdb0   :  { %7867 = vmatpush1.bf16.msra.mxu0 %v12984_v60  ;;  %7908 = vmatpush1.bf16.msra.mxu1 %v12988_v15 }
 0xdb1   :  { %8357 = vmatprep.subr.bf16.mxu0 %v12791_v24  ;;  %8398 = vmatprep.subr.bf16.mxu1 %v12793_v25 }
 0xe46   :  { %v7349_v37 = vpop.f32.mrb[52].mxu0  ;;  %v7390_v21 = vpop.f32.mrb[52].mxu1 }
 0xe47   :  { %v7350_v12 = vadd.f32 %v7349_v37, %v13628_v29  ;;  %v7351_v62 = vpop.f32.mrb[53].mxu0  ;;  %v7392_v11 = vpop.f32.mrb[53].mxu1  ;;  %v7391_v25 = vadd.f32 %v7390_v21, %v12371_v42 }
 0xe48   :  { %v7352_v35 = vadd.f32 %v7351_v62, %v12360_v13  ;;  %v7353_v3 = vpop.f32.mrb[54].mxu0  ;;  %v7394_v20 = vpop.f32.mrb[54].mxu1  ;;  %v7393_v24 = vadd.f32 %v7392_v11, %v12366_v45 }
 0xe49   :  { %v9786_v48 = vmul.f32 -1.442695, %v7350_v12  ;;  %v7354_v36 = vpop.f32.mrb[55].mxu0  ;;  %v7395_v17 = vpop.f32.mrb[55].mxu1 }
 0xe4a   :  { %v9787_v60 = vmul.f32 -1.442695, %v7352_v35  ;;  %v9788_v15 = vmul.f32 -1.442695, %v7393_v24 }
 0xe4b   :  { %10835 = vpow2.f32 %v9786_v48 }
 0xe4c   :  { %10837 = vpow2.f32 %v9787_v60 }
 0xe4d   :  { %10839 = vpow2.f32 %v9788_v15 }
 0xe4e   :  { %10841 = vtanh.f32 %v7391_v25 }
 0xe55   :  { %v10836_v50 = vpop.eup %10835 }
 0xe56   :  { %v10838_v27 = vpop.eup %10837  ;;  %v7400_v37 = vadd.f32 1.0, %v10836_v50 }
 0xe57   :  { %v7406_v29 = vadd.f32 1.0, %v10838_v27  ;;  %v10840_v20 = vpop.eup %10839 }
 0xe58   :  { %10843 = vrcp.f32 %v7400_v37  ;;  %v10842_v62 = vpop.eup %10841  ;;  %v7413_v48 = vadd.f32 1.0, %v10840_v20 }
 0xe59   :  { %10845 = vrcp.f32 %v7406_v29  ;;  %v7945_v29 = vld [vmem:[#allocation2 + $0x7] sm:$0x1] }
 0xe5a   :  { %10847 = vrcp.f32 %v7413_v48 }
 0xe62   :  { %v10844_v36 = vpop.eup %10843 }
 0xe63   :  { %v10846_v17 = vpop.eup %10845  ;;  %v7417_v35 = vmul.f32 %v10844_v36, %v10842_v62 }
 0xe64   :  { %v7416_v60 = vmul.f32 %v10846_v17, %v12802_v46  ;;  %v10848_v21 = vpop.eup %10847  ;;  %v13650_v46 = vld [vmem:[#allocation34_spill] sm:$0xff] }
 0xe66   :  { %v13000_v11 = vadd.f32 %v7417_v35, %v7416_v60 }
 0xe68   :  { %10849 = vtanh.f32 %v13000_v11 }
 0xe72   :  { %v10850_v50 = vpop.eup %10849 }
 0xe73   :  { %v7420_v15 = vmul.f32 %v10850_v50, %v10848_v21 }
 0xe75   :  { %v7421_v3 = vpack.c.bf16 %v7420_v15, %v7420_v15 }
 0xe77   :  { %7422 = vst [vmem:[#allocation2 + $0x5] sm:$0x1] %v7421_v3  ;;  %7423 = vst [vmem:[#allocation3] sm:$0x1] %v7421_v3 }
 0xe7e   :  { %v9789_v27 = vld.sshfl [vmem:[#allocation3] sm:$0x11 pattern:$0x75316420] }
 0xe7f   :  { %v7499_v12 = vcombine.high %v9789_v27, %v9789_v27  ;;  %7946 = vst [vmem:[#allocation3 + $0x1] sm:$0x1] %v7945_v29  ;;  %v7506_v25 = vrot.slane %v9789_v27, %v11267_v56 }
 0xe81   :  { %v7513_v24 = vrot.slane %v7499_v12, %v11267_v56  ;;  %v8466_v12 = vld [vmem:[%s13199_s8] sm:$0x3] }
 0xe83   :  { %7868 = vmatprep.mubr.bf16.mxu0 %v7513_v24  ;;  %7909 = vmatprep.mubr.bf16.mxu1 %v7513_v24  ;;  %v10609_v24 = vld [vmem:[%s13197_s6] sm:$0xff]  }
 0xe84   :  { %7869 = vmatmul.mubr.bf16.vlgmr.msra.gmra.mrb[56].mxu0 %v7506_v25  ;;  %7910 = vmatmul.mubr.bf16.vlgmr.msra.gmra.mrb[56].mxu1 %v7506_v25 }
 0xe85   :  { %8358 = vmatpush1.bf16.msra.mxu0 %v12806_v47  ;;  %8399 = vmatpush1.bf16.msra.mxu1 %v12808_v34  ;;  %v13651_v47 = vld [vmem:[#allocation36_spill] sm:$0xff] }
 0xe86   :  { %8359 = vmatprep.subr.bf16.mxu0 %v12813_v49  ;;  %8400 = vmatprep.subr.bf16.mxu1 %v12815_v52  ;;  %v13652_v34 = vld [vmem:[#allocation40_spill] sm:$0xff]  ;;  %v13653_v49 = vld [vmem:[#allocation14_spill] sm:$0xff]  ;;  %v13654_v52 = vld [vmem:[#allocation15_spill] sm:$0xff] }
 0xe89   :  { %8360 = vmatpush1.bf16.msra.mxu0 %v12817_v53  ;;  %8401 = vmatpush1.bf16.msra.mxu1 %v12819_v55  ;;  %v13655_v53 = vld [vmem:[#allocation16_spill] sm:$0xff]  ;;  %v13656_v55 = vld [vmem:[#allocation17_spill] sm:$0xff] }
 0xe8a   :  { %8361 = vmatprep.subr.bf16.mxu0 %v12825_v58  ;;  %8402 = vmatprep.subr.bf16.mxu1 %v12827_v59  ;;  %v13657_v58 = vld [vmem:[#allocation37_spill] sm:$0xff] }
 0xe8b   :  { %v13658_v59 = vld [vmem:[#allocation13_spill] sm:$0xff] }
 0xe8d   :  { %8362 = vmatpush1.bf16.msra.mxu0 %v12829_v41  ;;  %8403 = vmatpush1.bf16.msra.mxu1 %v12831_v43  ;;  %v13659_v41 = vld [vmem:[#allocation18_spill] sm:$0xff]  ;;  %v13660_v43 = vld [vmem:[#allocation20_spill] sm:$0xff] }
 0xe8e   :  { %8363 = vmatprep.subr.bf16.mxu0 %v12837_v51  ;;  %8404 = vmatprep.subr.bf16.mxu1 %v12839_v61  ;;  %v13661_v51 = vld [vmem:[#allocation39_spill] sm:$0xff] }
 0xe8f   :  { %v13662_v61 = vld [vmem:[#allocation19_spill] sm:$0xff] }
 0xe91   :  { %8364 = vmatpush1.bf16.msra.mxu0 %v12841_v1  ;;  %8405 = vmatpush1.bf16.msra.mxu1 %v12843_v57  ;;  %v13663_v1 = vld [vmem:[#allocation21_spill] sm:$0xff]  ;;  %v13664_v57 = vld [vmem:[#allocation23_spill] sm:$0xff] }
 0xe92   :  { %8365 = vmatprep.subr.bf16.mxu0 %v12849_v4  ;;  %8406 = vmatprep.subr.bf16.mxu1 %v12851_v63  ;;  %v13665_v4 = vld [vmem:[#allocation25_spill] sm:$0xff]  ;;  %v13666_v63 = vld [vmem:[#allocation22_spill] sm:$0xff] }
 0xe95   :  { %8366 = vmatpush1.bf16.msra.mxu0 %v12853_v5  ;;  %8407 = vmatpush1.bf16.msra.mxu1 %v12855_v14  ;;  %v13667_v5 = vld [vmem:[#allocation24_spill] sm:$0xff]  ;;  %v13668_v14 = vld [vmem:[#allocation26_spill] sm:$0xff] }
 0xe96   :  { %8367 = vmatprep.subr.bf16.mxu0 %v12861_v16  ;;  %8408 = vmatprep.subr.bf16.mxu1 %v12863_v18  ;;  %v13669_v16 = vld [vmem:[#allocation27_spill] sm:$0xff]  ;;  %v13670_v18 = vld [vmem:[#allocation28_spill] sm:$0xff] }
 0xe99   :  { %8368 = vmatpush1.bf16.msra.mxu0 %v12865_v19  ;;  %8409 = vmatpush1.bf16.msra.mxu1 %v12867_v26  ;;  %v11026_v19 = vmov 0.0  }
 0xe9a   :  { %8369 = vmatprep.subr.bf16.mxu0 %v12873_v28  ;;  %8410 = vmatprep.subr.bf16.mxu1 %v12875_v30  ;;  %v13671_v30 = vld [vmem:[#allocation38_spill] sm:$0xff] }
 0xe9d   :  { %8370 = vmatpush1.bf16.msra.mxu0 %v12877_v31  ;;  %8411 = vmatpush1.bf16.msra.mxu1 %v12879_v32 }
 0xe9e   :  { %8371 = vmatprep.subr.bf16.mxu0 %v12885_v22  ;;  %8412 = vmatprep.subr.bf16.mxu1 %v12887_v10 }
 0xea1   :  { %8372 = vmatpush1.bf16.msra.mxu0 %v12889_v33  ;;  %8413 = vmatpush1.bf16.msra.mxu1 %v12891_v0 }
 0xea2   :  { %8373 = vmatprep.subr.bf16.mxu0 %v12897_v7  ;;  %8414 = vmatprep.subr.bf16.mxu1 %v12899_v38 }
 0xea5   :  { %8374 = vmatpush1.bf16.msra.mxu0 %v12901_v40  ;;  %8415 = vmatpush1.bf16.msra.mxu1 %v12903_v44 }
 0xea6   :  { %8375 = vmatprep.subr.bf16.mxu0 %v12909_v9  ;;  %8416 = vmatprep.subr.bf16.mxu1 %v12911_v39 }
 0xea9   :  { %8376 = vmatpush1.bf16.msra.mxu0 %v12913_v8  ;;  %8417 = vmatpush1.bf16.msra.mxu1 %v12915_v2 }
 0xeaa   :  { %8377 = vmatprep.subr.bf16.mxu0 %v12921_v6  ;;  %8418 = vmatprep.subr.bf16.mxu1 %v12923_v23 }
 0xead   :  { %8378 = vmatpush1.bf16.msra.mxu0 %v12925_v54  ;;  %8419 = vmatpush1.bf16.msra.mxu1 %v13650_v46  ;;  %v8577_v46 = vsel %vm8575_vm0, %v8466_v12, 0  ;;  %v10625_v12 = vld [vmem:[%s13201_s10] sm:$0xff]  }
 0xeae   :  { %8379 = vmatprep.subr.bf16.mxu0 %v13651_v47  ;;  %8420 = vmatprep.subr.bf16.mxu1 %v13652_v34  ;;  %v10610_v47 = vld [vmem:[%s13197_s6 + $0x8] sm:$0xff]   ;;  %v8465_v34 = vld [vmem:[%s13192_s1] sm:$0x1] }
 0xeb1   :  { %8380 = vmatpush1.bf16.msra.mxu0 %v13653_v49  ;;  %8421 = vmatpush1.bf16.msra.mxu1 %v13654_v52  ;;  %v10612_v49 = vld [vmem:[%s13197_s6 + $0x18] sm:$0xff]   ;;  %v10613_v52 = vld [vmem:[%s13197_s6 + $0x20] sm:$0xff]  }
 0xeb2   :  { %8381 = vmatprep.subr.bf16.mxu0 %v13655_v53  ;;  %8422 = vmatprep.subr.bf16.mxu1 %v13656_v55  ;;  %v10614_v53 = vld [vmem:[%s13197_s6 + $0x28] sm:$0xff]   ;;  %v10615_v55 = vld [vmem:[%s13197_s6 + $0x30] sm:$0xff]  }
 0xeb5   :  { %8382 = vmatpush1.bf16.msra.mxu0 %v13657_v58  ;;  %8423 = vmatpush1.bf16.msra.mxu1 %v13658_v59  ;;  %v10616_v58 = vld [vmem:[%s13197_s6 + $0x38] sm:$0xff]  }
 0xeb6   :  { %8383 = vmatprep.subr.bf16.mxu0 %v13659_v41  ;;  %8424 = vmatprep.subr.bf16.mxu1 %v13660_v43  ;;  %v13672_v59 = vld [vmem:[#allocation35_spill] sm:$0xff]  ;;  %v10618_v43 = vld [vmem:[%s13198_s7 + $0x8] sm:$0xff]  }
 0xeb7   :  { %v10617_v41 = vld [vmem:[%s13198_s7] sm:$0xff]  }
 0xeb9   :  { %8384 = vmatpush1.bf16.msra.mxu0 %v13661_v51  ;;  %8425 = vmatpush1.bf16.msra.mxu1 %v13662_v61  ;;  %v10619_v51 = vld [vmem:[%s13198_s7 + $0x10] sm:$0xff]   ;;  %v10620_v61 = vld [vmem:[%s13198_s7 + $0x18] sm:$0xff]  }
 0xeba   :  { %8385 = vmatprep.subr.bf16.mxu0 %v13663_v1  ;;  %8426 = vmatprep.subr.bf16.mxu1 %v13664_v57  ;;  %v10621_v1 = vld [vmem:[%s13198_s7 + $0x20] sm:$0xff]   ;;  %v10622_v57 = vld [vmem:[%s13198_s7 + $0x28] sm:$0xff]  }
 0xebd   :  { %8386 = vmatpush1.bf16.msra.mxu0 %v13665_v4  ;;  %8427 = vmatpush1.bf16.msra.mxu1 %v13666_v63  ;;  %v10623_v4 = vld [vmem:[%s13198_s7 + $0x30] sm:$0xff]   ;;  %v10624_v63 = vld [vmem:[%s13198_s7 + $0x38] sm:$0xff]  }
 0xebe   :  { %8387 = vmatprep.subr.bf16.mxu0 %v13667_v5  ;;  %8428 = vmatprep.subr.bf16.mxu1 %v13668_v14 }
 0xec1   :  { %8388 = vmatpush1.bf16.msra.mxu0 %v13669_v16  ;;  %8429 = vmatpush1.bf16.msra.mxu1 %v13670_v18 }
 0xec2   :  { %9970 = vmatprep.subr.bf16.mxu0 %v11026_v19  ;;  %9990 = vmatprep.subr.bf16.mxu1 %v11026_v19 }
 0xf57   :  { %v7870_v26 = vpop.f32.mrb[56].mxu0  ;;  %v7911_v28 = vpop.f32.mrb[56].mxu1 }
 0xf58   :  { %v7871_v31 = vadd.f32 %v7870_v26, %v13671_v30  ;;  %v7872_v32 = vpop.f32.mrb[57].mxu0  ;;  %v7913_v22 = vpop.f32.mrb[57].mxu1  ;;  %v7912_v8 = vadd.f32 %v7911_v28, %v12371_v42 }
 0xf59   :  { %v7873_v10 = vadd.f32 %v7872_v32, %v12360_v13  ;;  %v7874_v33 = vpop.f32.mrb[58].mxu0  ;;  %v7915_v0 = vpop.f32.mrb[58].mxu1  ;;  %v7914_v9 = vadd.f32 %v7913_v22, %v12366_v45 }
 0xf5a   :  { %v9854_v7 = vmul.f32 -1.442695, %v7871_v31  ;;  %v7875_v38 = vpop.f32.mrb[59].mxu0  ;;  %v7916_v40 = vpop.f32.mrb[59].mxu1 }
 0xf5b   :  { %v9855_v44 = vmul.f32 -1.442695, %v7873_v10  ;;  %v9856_v39 = vmul.f32 -1.442695, %v7914_v9 }
 0xf5c   :  { %10851 = vpow2.f32 %v9854_v7 }
 0xf5d   :  { %10853 = vpow2.f32 %v9855_v44 }
 0xf5e   :  { %10855 = vpow2.f32 %v9856_v39 }
 0xf5f   :  { %10857 = vtanh.f32 %v7912_v8 }
 0xf66   :  { %v10852_v2 = vpop.eup %10851 }
 0xf67   :  { %v10854_v6 = vpop.eup %10853  ;;  %v7921_v23 = vadd.f32 1.0, %v10852_v2 }
 0xf68   :  { %v7927_v54 = vadd.f32 1.0, %v10854_v6  ;;  %v10856_v37 = vpop.eup %10855 }
 0xf69   :  { %10859 = vrcp.f32 %v7921_v23  ;;  %v10858_v20 = vpop.eup %10857  ;;  %v7934_v35 = vadd.f32 1.0, %v10856_v37 }
 0xf6a   :  { %10861 = vrcp.f32 %v7927_v54 }
 0xf6b   :  { %10863 = vrcp.f32 %v7934_v35 }
 0xf73   :  { %v10860_v62 = vpop.eup %10859 }
 0xf74   :  { %v10862_v36 = vpop.eup %10861  ;;  %v7938_v17 = vmul.f32 %v10860_v62, %v10858_v20 }
 0xf75   :  { %v7937_v48 = vmul.f32 %v10862_v36, %v13000_v11  ;;  %v10864_v21 = vpop.eup %10863 }
 0xf77   :  { %v13074_v60 = vadd.f32 %v7938_v17, %v7937_v48 }
 0xf79   :  { %10865 = vtanh.f32 %v13074_v60 }
 0xf83   :  { %v10866_v50 = vpop.eup %10865 }
 0xf84   :  { %v7941_v15 = vmul.f32 %v10866_v50, %v10864_v21 }
 0xf86   :  { %v7942_v3 = vpack.c.bf16 %v7941_v15, %v7941_v15 }
 0xf88   :  { %7943 = vst [vmem:[#allocation2 + $0x6] sm:$0x1] %v7942_v3  ;;  %7944 = vst [vmem:[#allocation3] sm:$0x1] %v7942_v3 }
 0xf8f   :  { %v9857_v29 = vld.sshfl [vmem:[#allocation3] sm:$0x11 pattern:$0x75316420] }
 0xf90   :  { %v8020_v27 = vcombine.high %v9857_v29, %v9857_v29  ;;  %v8027_v25 = vrot.slane %v9857_v29, %v11267_v56 }
 0xf92   :  { %v8034_v11 = vrot.slane %v8020_v27, %v11267_v56  ;;  %v10611_v56 = vld [vmem:[%s13197_s6 + $0x10] sm:$0xff]  }
 0xf94   :  { %8389 = vmatprep.mubr.bf16.mxu0 %v8034_v11  ;;  %8430 = vmatprep.mubr.bf16.mxu1 %v8034_v11 }
 0xf95   :  { %8390 = vmatmul.mubr.bf16.vlgmr.msra.gmra.mrb[60].mxu0 %v8027_v25  ;;  %8431 = vmatmul.mubr.bf16.vlgmr.msra.gmra.mrb[60].mxu1 %v8027_v25 }
 0xf96   :  { %9971 = vmatpush3.bf16.msra.mxu0 %v10609_v24  ;;  %9991 = vmatpush3.bf16.msra.mxu1 %v8577_v46  ;;  %v9942_v24 = vld [vmem:[%s13200_s9] ss:$0 sm:$0xff]  ;;  %s11028_s9 = smov [#allocation9]  }
 0xf97   :  { %9972 = vmatprep.subr.bf16.mxu0 %v11026_v19  ;;  %9986 = vmatprep.mubr.msk.bf16.mxu0 %vm11027_vm1, %v11026_v19 }
 0xf98   :  { %9992 = vmatprep.mubr.msk.bf16.mxu1 %vm11027_vm1, %v11026_v19  ;;  %9996 = vmatprep.subr.bf16.mxu1 %v11026_v19 }
 0xf9a   :  { %9973 = vmatpush3.bf16.msra.mxu0 %v10610_v47 }
 0xf9b   :  { %9974 = vmatprep.subr.bf16.mxu0 %v11026_v19 }
 0xf9d   :  { %9993 = vmatmul.mubr.msk.bf16.vlgmr.msra.gmra.mrb[64].mxu1 %vm8571_vm2, %v8465_v34 }
 0xf9e   :  { %9975 = vmatpush3.bf16.msra.mxu0 %v10611_v56  ;;  %10012 = vmatprep.mubr.msk.bf16.mxu1 %vm11027_vm1, %v11026_v19 }
 0xf9f   :  { %9976 = vmatprep.subr.bf16.mxu0 %v11026_v19  ;;  %9997 = vmatpush3.bf16.msra.mxu1 %v10617_v41 }
 0xfa0   :  { %9998 = vmatprep.subr.bf16.mxu1 %v11026_v19 }
 0xfa2   :  { %9977 = vmatpush3.bf16.msra.mxu0 %v10612_v49 }
 0xfa3   :  { %9978 = vmatprep.subr.bf16.mxu0 %v11026_v19  ;;  %9999 = vmatpush3.bf16.msra.mxu1 %v10618_v43 }
 0xfa4   :  { %10000 = vmatprep.subr.bf16.mxu1 %v11026_v19 }
 0xfa6   :  { %9979 = vmatpush3.bf16.msra.mxu0 %v10613_v52 }
 0xfa7   :  { %9980 = vmatprep.subr.bf16.mxu0 %v11026_v19  ;;  %10001 = vmatpush3.bf16.msra.mxu1 %v10619_v51 }
 0xfa8   :  { %10002 = vmatprep.subr.bf16.mxu1 %v11026_v19 }
 0xfaa   :  { %9981 = vmatpush3.bf16.msra.mxu0 %v10614_v53 }
 0xfab   :  { %9982 = vmatprep.subr.bf16.mxu0 %v11026_v19  ;;  %10003 = vmatpush3.bf16.msra.mxu1 %v10620_v61 }
 0xfac   :  { %10004 = vmatprep.subr.bf16.mxu1 %v11026_v19 }
 0xfae   :  { %9983 = vmatpush3.bf16.msra.mxu0 %v10615_v55 }
 0xfaf   :  { %9984 = vmatprep.subr.bf16.mxu0 %v11026_v19  ;;  %10005 = vmatpush3.bf16.msra.mxu1 %v10621_v1 }
 0xfb0   :  { %10006 = vmatprep.subr.bf16.mxu1 %v11026_v19 }
 0xfb2   :  { %9985 = vmatpush3.bf16.msra.mxu0 %v10616_v58 }
 0xfb3   :  { %10016 = vmatprep.subr.bf16.mxu0 %v11026_v19  ;;  %10007 = vmatpush3.bf16.msra.mxu1 %v10622_v57 }
 0xfb4   :  { %10008 = vmatprep.subr.bf16.mxu1 %v11026_v19 }
 0xfb5   :  { %9987 = vmatmul.mubr.bf16.vlgmr.msra.gmra.mrb[64].mxu0 %v13672_v59 }
 0xfb6   :  { %10020 = vmatprep.mubr.msk.bf16.mxu0 %vm11027_vm1, %v11026_v19  ;;  %10017 = vmatpush3.bf16.msra.mxu0 %v10625_v12 }
 0xfb7   :  { %10009 = vmatpush3.bf16.msra.mxu1 %v10623_v4  ;;  %10018 = vmatprep.subr.bf16.mxu0 %v11026_v19 }
 0xfb8   :  { %10010 = vmatprep.subr.bf16.mxu1 %v11026_v19  ;;  %v9943_v19 = vld [vmem:[%s13202_s11] ss:$0 sm:$0xff] }
 0xfbb   :  { %10011 = vmatpush3.bf16.msra.mxu1 %v10624_v63 }
0x1068   :  { %v8391_v5 = vpop.f32.mrb[60].mxu0  ;;  %v8432_v14 = vpop.f32.mrb[60].mxu1 }
0x1069   :  { %v8392_v16 = vadd.f32 %v8391_v5, %v13671_v30  ;;  %v8393_v18 = vpop.f32.mrb[61].mxu0  ;;  %v8434_v26 = vpop.f32.mrb[61].mxu1  ;;  %v8433_v30 = vadd.f32 %v8432_v14, %v12371_v42 }
0x106a   :  { %v8394_v28 = vadd.f32 %v8393_v18, %v12360_v13  ;;  %v8395_v31 = vpop.f32.mrb[62].mxu0  ;;  %v8436_v32 = vpop.f32.mrb[62].mxu1  ;;  %v8435_v7 = vadd.f32 %v8434_v26, %v12366_v45 }
0x106b   :  { %v9922_v22 = vmul.f32 -1.442695, %v8392_v16  ;;  %v8396_v10 = vpop.f32.mrb[63].mxu0  ;;  %v8437_v33 = vpop.f32.mrb[63].mxu1 }
0x106c   :  { %v9923_v0 = vmul.f32 -1.442695, %v8394_v28  ;;  %v9924_v39 = vmul.f32 -1.442695, %v8435_v7 }
0x106d   :  { %10867 = vpow2.f32 %v9922_v22 }
0x106e   :  { %10869 = vpow2.f32 %v9923_v0 }
0x106f   :  { %10871 = vpow2.f32 %v9924_v39 }
0x1070   :  { %v8613_v38 = vpop.f32.mrb[64].mxu1  ;;  %10873 = vtanh.f32 %v8433_v30 }
0x1071   :  { %v9994_v40 = vpop.f32.mrb[65].mxu1 }
0x1072   :  { %v8616_v44 = vpop.f32.mrb[66].mxu1 }
0x1073   :  { %v9995_v9 = vpop.f32.mrb[67].mxu1 }
0x1077   :  { %v10868_v8 = vpop.eup %10867 }
0x1078   :  { %v10870_v2 = vpop.eup %10869  ;;  %v8442_v13 = vadd.f32 1.0, %v10868_v8 }
0x1079   :  { %v8448_v6 = vadd.f32 1.0, %v10870_v2  ;;  %v10872_v23 = vpop.eup %10871 }
0x107a   :  { %10875 = vrcp.f32 %v8442_v13  ;;  %v10874_v54 = vpop.eup %10873  ;;  %v8455_v62 = vadd.f32 1.0, %v10872_v23 }
0x107b   :  { %10877 = vrcp.f32 %v8448_v6 }
0x107c   :  { %10879 = vrcp.f32 %v8455_v62 }
0x1084   :  { %v10876_v37 = vpop.eup %10875 }
0x1085   :  { %v10878_v20 = vpop.eup %10877  ;;  %v8459_v45 = vmul.f32 %v10876_v37, %v10874_v54 }
0x1086   :  { %v8458_v36 = vmul.f32 %v10878_v20, %v13074_v60  ;;  %v10880_v15 = vpop.eup %10879  ;;  %v10626_v60 = vld [vmem:[%s13201_s10 + $0x8] sm:$0xff]   ;;  %s8820_s10 = sshll.u32 %s11028_s9, 4  ;;  %s8821_s10 = int_to_ptr.vmem [resolvable:$true] %s8820_s10 }
0x1087   :  { %10019 = vmatpush3.bf16.msra.mxu0 %v10626_v60  ;;  %s10992_s11 = scalar_lea.vmem %s8821_s10, 32  ;;  %p10997_p3 = scmp.lt.s32.totalorder %s8821_s10, %s8821_s10 }
0x1088   :  { %v8460_v17 = vadd.f32 %v8459_v45, %v8458_v36  ;;  %v8565_v35 = vpop.f32.mrb[64].mxu0  ;;  %p10993_p2 = scmp.ne.s32.totalorder %s8821_s10, %s10992_s11  ;;  %p10998_p4 = scmp.lt.s32.totalorder %s10992_s11, %s10992_s11 }
0x1089   :  { %v8614_v42 = vadd.f32 %v8613_v38, %v8565_v35  ;;  %v9988_v48 = vpop.f32.mrb[65].mxu0 }
0x108a   :  { %10881 = vtanh.f32 %v8460_v17  ;;  %v8568_v21 = vpop.f32.mrb[66].mxu0  ;;  %p10999_p5 = por %p10998_p4, %p10997_p3 }
0x108b   :  { %v9989_v50 = vpop.f32.mrb[67].mxu0 }
0x108c   :  { %p11000_p6 = pnand %p10999_p5, %p10993_p2 }
0x1094   :  { %v10882_v3 = vpop.eup %10881 }
0x1095   :  { %v8462_v29 = vmul.f32 %v10882_v3, %v10880_v15 }
0x1097   :  { %v8463_v27 = vpack.c.bf16 %v8462_v29, %v8462_v29 }
0x1099   :  { %8464 = vst [vmem:[#allocation2 + $0x7] sm:$0x1] %v8463_v27  ;;  %10013 = vmatmul.mubr.bf16.vlgmr.msra.gmra.mrb[68].mxu1 %v8463_v27 }
0x116c   :  { %v8717_v11 = vpop.f32.mrb[68].mxu1 }
0x116d   :  { %v8723_v25 = vadd.f32 %v8717_v11, %v8614_v42  ;;  %v10014_v46 = vpop.f32.mrb[69].mxu1 }
0x116e   :  { %v8720_v47 = vpop.f32.mrb[70].mxu1 }
0x116f   :  { %v8731_v56 = vadd.f32 %v9942_v24, %v8723_v25  ;;  %v10015_v34 = vpop.f32.mrb[71].mxu1 }
0x1171   :  { %v8732_v49 = vmax.f32 %v8731_v56, 0.0 }
0x1173   :  { %v8733_v52 = vpack.c.bf16 %v8732_v49, %v8732_v49 }
0x1175   :  { %10021 = vmatmul.mubr.msk.bf16.vlgmr.msra.gmra.mrb[68].mxu0 %vm8757_vm3, %v8733_v52 }
0x1248   :  { %v8795_v53 = vpop.f32.mrb[68].mxu0 }
0x1249   :  { %v8796_v55 = vadd.f32 %v9943_v19, %v8795_v53  ;;  %v10022_v58 = vpop.f32.mrb[69].mxu0 }
0x124a   :  { %v8798_v59 = vpop.f32.mrb[70].mxu0 }
0x124b   :  { %v10023_v41 = vpop.f32.mrb[71].mxu0  ;;  %v8802_v43 = vsel %vm8801_vm4, %v8796_v55, -inf }
0x124c   :  { %8803 = vmax.xlane.f32.xlu0 %v8802_v43 }
0x12d9   :  { %v8804_v51 = vpop.xlane.xlu0 %8803 }
0x12da   :  { %v8805_v61 = vsub.f32 %v8796_v55, %v8804_v51 }
0x12dc   :  { %v8806_v1 = vmul.f32 1.442695, %v8805_v61 }
0x12de   :  { %10883 = vpow2.f32 %v8806_v1 }
0x12e8   :  { %v10884_v57 = vpop.eup %10883 }
0x12e9   :  { %v8808_v4 = vsel %vm8801_vm4, %v10884_v57, 0.0 }
0x12ea   :  { %8809 = vadd.xlane.f32.xlu0 %v8808_v4 }
0x1377   :  { %v8810_v63 = vpop.xlane.xlu0 %8809 }
0x1378   :  { %10885 = vrcp.f32 %v8810_v63 }
0x1382   :  { %v10886_v5 = vpop.eup %10885 }
0x1383   :  { %v8812_v14 = vmul.f32 %v10886_v5, %v10884_v57 }
0x1385   :  { %8813 = vst.msk [vmem:[#allocation9] sm:$0x3] %vm8801_vm4, %v8812_v14 }
0x1386   :  { %11003 = shalt.err (!%p11000_p6)
}
0x1387   :  { %s11004_s23 = scalar_lea.hbm %s13203_s12, 32 }
0x1388   :  { %p11005_p7 = scmp.ne.s32.totalorder %s13203_s12, %s11004_s23  ;;  %p11008_p8 = scmp.lt.u32.totalorder %s11004_s23, %s13203_s12 }
0x138a   :  { %p11010_p9 = pnand %p11008_p8, %p11005_p7 }
0x138c   :  { %11013 = shalt.err (!%p11010_p9)
}
0x138d   :  { %8823 = dma.vmem_to_hbm [thread:$0]  %s8821_s10, 32, %s13203_s12, [#allocation6]  }
0x138e   :  { %11018 = dma.done.wait [#allocation6], 32  }
0x138f   :  { %11019 = vsyncadd [#allocation6], 4294967264 }
0x1390   :  { %8827 = vsyncpa [#allocation5], 1 }
0x1391   :  { %8828 = vsyncpa [#allocation8], 1 }
0x1392   :  { %8829 = vsyncpa [#allocation6], 1 }

</bundles_post_ra>
